<compile_context>
chip_gen: v7x
topology: tpu7x:2x2x1
jax: 0.10.0
libtpu: 0.0.40
codegen_flags: <defaults>
</compile_context>

<pallas_src>
import jax
import jax.numpy as jnp
import numpy as np
from jax.experimental import pallas as pl
from jax.experimental.pallas import tpu as pltpu

LANE = 128


def _round_up(x, m):
    return (x + m - 1) // m * m


def _make_fused_kernel(Ho, Wo, Cin, Cp):
    """Fused [conv1(s2) -> conv2(s1) -> conv3(s1)], each + BN(eval) + ReLU."""
    KH = KW = 3
    M = Ho * Wo
    bf16, f32 = jnp.bfloat16, jnp.float32

    def kernel(xph_ref, w1_ref, s1_ref, b1_ref,
               w2_ref, s2_ref, b2_ref,
               w3_ref, s3_ref, b3_ref,
               o_ref, pad_ref, col1_ref):
        # ----- layer 1: stride-2 conv.  im2col assembled in VMEM from the
        # phase-split padded input (contiguous slices only), then ONE MXU
        # matmul with K = 9*Cin.
        t = 0
        for kh in range(KH):
            for kw in range(KW):
                ph = (kh % 2) * 2 + (kw % 2)
                tap = xph_ref[ph, kh // 2:kh // 2 + Ho, kw // 2:kw // 2 + Wo, :]
                col1_ref[:, t * Cin:(t + 1) * Cin] = tap.reshape(M, Cin)
                t += 1
        y = jnp.dot(col1_ref[...], w1_ref[...], preferred_element_type=f32)
        y = jnp.maximum(y * s1_ref[...] + b1_ref[...], 0.0)        # BN + ReLU (f32)

        # Zero only the 1-pixel border of the resident padded intermediate.
        zrow = jnp.zeros((1, Wo + 2, Cp), bf16)
        zcol = jnp.zeros((Ho + 2, 1, Cp), bf16)
        pad_ref[0:1, :, :] = zrow
        pad_ref[Ho + 1:Ho + 2, :, :] = zrow
        pad_ref[:, 0:1, :] = zcol
        pad_ref[:, Wo + 1:Wo + 2, :] = zcol

        pad_ref[1:1 + Ho, 1:1 + Wo, :] = y.astype(bf16).reshape(Ho, Wo, Cp)

        # ----- layers 2 & 3: stride-1 convs as 9 accumulating MXU dots
        # (K = Cp >= 128 each); no materialized im2col matrix.
        for w_ref, s_ref, b_ref, is_last in ((w2_ref, s2_ref, b2_ref, False),
                                             (w3_ref, s3_ref, b3_ref, True)):
            acc = jnp.zeros((M, Cp), f32)
            t = 0
            for kh in range(KH):
                for kw in range(KW):
                    tap = pad_ref[kh:kh + Ho, kw:kw + Wo, :].reshape(M, Cp)
                    acc = acc + jnp.dot(tap, w_ref[t * Cp:(t + 1) * Cp, :],
                                        preferred_element_type=f32)
                    t += 1
            y = jnp.maximum(acc * s_ref[...] + b_ref[...], 0.0)    # BN + ReLU (f32)
            if is_last:
                o_ref[...] = y.astype(o_ref.dtype)
            else:
                pad_ref[1:1 + Ho, 1:1 + Wo, :] = y.astype(bf16).reshape(Ho, Wo, Cp)

    return kernel


def basic_conv_block(x_nchw, params):
    """Equivalent of the PyTorch basic_conv_block forward (eval-mode BN)."""
    (w1, s1, b1), (w2, s2, b2), (w3, s3, b3) = params
    N, Cin, H, W = x_nchw.shape
    C = w1.shape[-1]
    KH = KW = 3
    assert H % 2 == 0 and W % 2 == 0, "even spatial dims expected"
    Ho, Wo = H // 2, W // 2
    M = Ho * Wo
    Cp = _round_up(C, LANE)                    # lane-dense channel padding
    Hq, Wq = (H + 2) // 2, (W + 2) // 2
    f32, bf16 = jnp.float32, jnp.bfloat16

    # NCHW -> padded NHWC -> 2x2 stride-phase layout (same element count as the
    # input, one XLA transpose); the kernel builds the layer-1 im2col from
    # contiguous slices of this block in VMEM.
    x = jnp.transpose(x_nchw, (0, 2, 3, 1)).astype(f32)
    xpad = jnp.pad(x, ((0, 0), (1, 1), (1, 1), (0, 0)))
    xph = (xpad.reshape(N, Hq, 2, Wq, 2, Cin)
               .transpose(0, 2, 4, 1, 3, 5)
               .reshape(N, 4, Hq, Wq, Cin)
               .astype(bf16))

    def _pad_w(w, ci_to, co_to):
        _, _, ci, co = w.shape
        return jnp.pad(w, ((0, 0), (0, 0), (0, ci_to - ci), (0, co_to - co)))

    w1f = _pad_w(w1, Cin, Cp).reshape(KH * KW * Cin, Cp).astype(bf16)
    w2f = _pad_w(w2, Cp, Cp).reshape(KH * KW * Cp, Cp).astype(bf16)
    w3f = _pad_w(w3, Cp, Cp).reshape(KH * KW * Cp, Cp).astype(bf16)

    def _v(v):                                 # per-channel scale/bias -> (1, Cp)
        return jnp.pad(v, (0, Cp - C)).reshape(1, Cp).astype(f32)

    vec_spec = pl.BlockSpec((1, Cp), lambda n: (0, 0))
    kernel = _make_fused_kernel(Ho, Wo, Cin, Cp)

    # Explicit VMEM budget: double-buffered in/out blocks + weights + scratches.
    need_bytes = (2 * (4 * Hq * Wq * Cin * 2 + M * Cp * 4)
                  + 2 * (KH * KW * Cin * Cp + 2 * KH * KW * Cp * Cp) * 2
                  + 6 * Cp * 4
                  + (Ho + 2) * (Wo + 2) * Cp * 2
                  + M * KH * KW * Cin * 2)
    vmem_limit = int(min(max(4 * need_bytes, 16 << 20), 48 << 20))

    out = pl.pallas_call(
        kernel,
        out_shape=jax.ShapeDtypeStruct((N, M, Cp), f32),
        grid=(N,),
        in_specs=[
            pl.BlockSpec((None, 4, Hq, Wq, Cin), lambda n: (n, 0, 0, 0, 0)),
            pl.BlockSpec((KH * KW * Cin, Cp), lambda n: (0, 0)),
            vec_spec, vec_spec,
            pl.BlockSpec((KH * KW * Cp, Cp), lambda n: (0, 0)),
            vec_spec, vec_spec,
            pl.BlockSpec((KH * KW * Cp, Cp), lambda n: (0, 0)),
            vec_spec, vec_spec,
        ],
        out_specs=pl.BlockSpec((None, M, Cp), lambda n: (n, 0, 0)),
        scratch_shapes=[pltpu.VMEM((Ho + 2, Wo + 2, Cp), bf16),   # resident intermediate
                        pltpu.VMEM((M, KH * KW * Cin), bf16)],    # layer-1 im2col
        compiler_params=pltpu.CompilerParams(
            dimension_semantics=("parallel",),
            vmem_limit_bytes=vmem_limit),
    )(xph, w1f, _v(s1), _v(b1), w2f, _v(s2), _v(b2), w3f, _v(s3), _v(b3))

    # lane-dense (N, M, Cp) slab -> drop channel padding -> NCHW
    return jnp.transpose(out.reshape(N, Ho, Wo, Cp)[..., :C], (0, 3, 1, 2))


def _init_layer(key, cin, cout, eps=1e-5):
    ks = jax.random.split(key, 6)
    w = 0.1 * jax.random.normal(ks[0], (3, 3, cin, cout), jnp.float32)   # HWIO
    b = 0.05 * jax.random.normal(ks[1], (cout,), jnp.float32)
    gamma = 1.0 + 0.1 * jax.random.normal(ks[2], (cout,), jnp.float32)
    beta = 0.1 * jax.random.normal(ks[3], (cout,), jnp.float32)
    rmean = 0.1 * jax.random.normal(ks[4], (cout,), jnp.float32)
    rvar = 1.0 + jax.random.uniform(ks[5], (cout,), jnp.float32)
    # fold conv bias + BN(eval) into a per-channel scale/bias pair
    scale = gamma / jnp.sqrt(rvar + eps)
    bias = (b - rmean) * scale + beta
    return w, scale, bias


def _ref_forward(x_nchw, params):
    """Plain-JAX reference with matching bf16-operand / f32-accumulate math."""
    x = jnp.transpose(x_nchw, (0, 2, 3, 1)).astype(jnp.bfloat16)
    strides = (2, 1, 1)
    y = None
    for (w, scale, bias), s in zip(params, strides):
        y = jax.lax.conv_general_dilated(
            x, w.astype(jnp.bfloat16), (s, s), ((1, 1), (1, 1)),
            dimension_numbers=("NHWC", "HWIO", "NHWC"),
            preferred_element_type=jnp.float32)
        y = jnp.maximum(y * scale + bias, 0.0)
        x = y.astype(jnp.bfloat16)
    return jnp.transpose(y, (0, 3, 1, 2))


if __name__ == "__main__":
    key = jax.random.PRNGKey(0)
    kx, k1, k2, k3 = jax.random.split(key, 4)

    N, in_channels, out_channels, H, W = 2, 4, 8, 16, 16
    x = jax.random.normal(kx, (N, in_channels, H, W), jnp.float32)   # NCHW

    params = [
        _init_layer(k1, in_channels, out_channels),
        _init_layer(k2, out_channels, out_channels),
        _init_layer(k3, out_channels, out_channels),
    ]

    out = basic_conv_block(x, params)
    out = jax.block_until_ready(out)
    assert out.shape == (N, out_channels, H // 2, W // 2), out.shape

    ref = jax.block_until_ready(_ref_forward(x, params))
    np.testing.assert_allclose(np.asarray(out), np.asarray(ref),
                               rtol=2e-2, atol=2e-2)

    print("KERNEL_OK")
</pallas_src>

<mosaic_0001>
module attributes {stable_mosaic.version = 11 : i64} {
  func.func @kernel(%arg0: i32, %arg1: memref<1x4x9x9x4xbf16, #tpu.memory_space<vmem>>, %arg2: memref<36x128xbf16, #tpu.memory_space<vmem>>, %arg3: memref<1x128xf32, #tpu.memory_space<vmem>>, %arg4: memref<1x128xf32, #tpu.memory_space<vmem>>, %arg5: memref<1152x128xbf16, #tpu.memory_space<vmem>>, %arg6: memref<1x128xf32, #tpu.memory_space<vmem>>, %arg7: memref<1x128xf32, #tpu.memory_space<vmem>>, %arg8: memref<1152x128xbf16, #tpu.memory_space<vmem>>, %arg9: memref<1x128xf32, #tpu.memory_space<vmem>>, %arg10: memref<1x128xf32, #tpu.memory_space<vmem>>, %arg11: memref<1x64x128xf32, #tpu.memory_space<vmem>>, %arg12: memref<10x10x128xbf16, #tpu.memory_space<vmem>>, %arg13: memref<64x36xbf16, #tpu.memory_space<vmem>>) attributes {dimension_semantics = [#tpu.dimension_semantics<parallel>], iteration_bounds = array<i64: 2>, scalar_prefetch = 0 : i64, scratch_operands = 2 : i64, tpu.core_type = #tpu.core_type<tc>, window_params = [{transform_indices = @transform_0, window_bounds = array<i64: 1, 4, 9, 9, 4>}, {pipeline_mode = #tpu.pipeline_mode<synchronous>, transform_indices = @transform_1, window_bounds = array<i64: 36, 128>}, {pipeline_mode = #tpu.pipeline_mode<synchronous>, transform_indices = @transform_2, window_bounds = array<i64: 1, 128>}, {pipeline_mode = #tpu.pipeline_mode<synchronous>, transform_indices = @transform_3, window_bounds = array<i64: 1, 128>}, {pipeline_mode = #tpu.pipeline_mode<synchronous>, transform_indices = @transform_4, window_bounds = array<i64: 1152, 128>}, {pipeline_mode = #tpu.pipeline_mode<synchronous>, transform_indices = @transform_5, window_bounds = array<i64: 1, 128>}, {pipeline_mode = #tpu.pipeline_mode<synchronous>, transform_indices = @transform_6, window_bounds = array<i64: 1, 128>}, {pipeline_mode = #tpu.pipeline_mode<synchronous>, transform_indices = @transform_7, window_bounds = array<i64: 1152, 128>}, {pipeline_mode = #tpu.pipeline_mode<synchronous>, transform_indices = @transform_8, window_bounds = array<i64: 1, 128>}, {pipeline_mode = #tpu.pipeline_mode<synchronous>, transform_indices = @transform_9, window_bounds = array<i64: 1, 128>}, {transform_indices = @transform_10, window_bounds = array<i64: 1, 64, 128>}]} {
    %c0 = arith.constant 0 : index
    %c0_0 = arith.constant 0 : index
    %c0_1 = arith.constant 0 : index
    %c0_2 = arith.constant 0 : index
    %c0_3 = arith.constant 0 : index
    %0 = vector.load %arg1[%c0, %c0_0, %c0_1, %c0_2, %c0_3] : memref<1x4x9x9x4xbf16, #tpu.memory_space<vmem>>, vector<1x1x8x8x4xbf16>
    %1 = vector.shape_cast %0 : vector<1x1x8x8x4xbf16> to vector<8x8x4xbf16>
    %2 = vector.shape_cast %1 : vector<8x8x4xbf16> to vector<64x4xbf16>
    %c0_4 = arith.constant 0 : index
    %c0_5 = arith.constant 0 : index
    %3 = vector.load %arg13[%c0_4, %c0_5] : memref<64x36xbf16, #tpu.memory_space<vmem>>, vector<64x4xbf16>
    tpu.vector_store %arg13[%c0_4, %c0_5], %2 {strides = array<i32>} : memref<64x36xbf16, #tpu.memory_space<vmem>>, vector<64x4xbf16>,
    %c0_6 = arith.constant 0 : index
    %c1 = arith.constant 1 : index
    %c0_7 = arith.constant 0 : index
    %c0_8 = arith.constant 0 : index
    %c0_9 = arith.constant 0 : index
    %4 = vector.load %arg1[%c0_6, %c1, %c0_7, %c0_8, %c0_9] : memref<1x4x9x9x4xbf16, #tpu.memory_space<vmem>>, vector<1x1x8x8x4xbf16>
    %5 = vector.shape_cast %4 : vector<1x1x8x8x4xbf16> to vector<8x8x4xbf16>
    %6 = vector.shape_cast %5 : vector<8x8x4xbf16> to vector<64x4xbf16>
    %c0_10 = arith.constant 0 : index
    %c4 = arith.constant 4 : index
    %7 = vector.load %arg13[%c0_10, %c4] : memref<64x36xbf16, #tpu.memory_space<vmem>>, vector<64x4xbf16>
    tpu.vector_store %arg13[%c0_10, %c4], %6 {strides = array<i32>} : memref<64x36xbf16, #tpu.memory_space<vmem>>, vector<64x4xbf16>,
    %c0_11 = arith.constant 0 : index
    %c0_12 = arith.constant 0 : index
    %c0_13 = arith.constant 0 : index
    %c1_14 = arith.constant 1 : index
    %c0_15 = arith.constant 0 : index
    %8 = vector.load %arg1[%c0_11, %c0_12, %c0_13, %c1_14, %c0_15] : memref<1x4x9x9x4xbf16, #tpu.memory_space<vmem>>, vector<1x1x8x8x4xbf16>
    %9 = vector.shape_cast %8 : vector<1x1x8x8x4xbf16> to vector<8x8x4xbf16>
    %10 = vector.shape_cast %9 : vector<8x8x4xbf16> to vector<64x4xbf16>
    %c0_16 = arith.constant 0 : index
    %c8 = arith.constant 8 : index
    %11 = vector.load %arg13[%c0_16, %c8] : memref<64x36xbf16, #tpu.memory_space<vmem>>, vector<64x4xbf16>
    tpu.vector_store %arg13[%c0_16, %c8], %10 {strides = array<i32>} : memref<64x36xbf16, #tpu.memory_space<vmem>>, vector<64x4xbf16>,
    %c0_17 = arith.constant 0 : index
    %c2 = arith.constant 2 : index
    %c0_18 = arith.constant 0 : index
    %c0_19 = arith.constant 0 : index
    %c0_20 = arith.constant 0 : index
    %12 = vector.load %arg1[%c0_17, %c2, %c0_18, %c0_19, %c0_20] : memref<1x4x9x9x4xbf16, #tpu.memory_space<vmem>>, vector<1x1x8x8x4xbf16>
    %13 = vector.shape_cast %12 : vector<1x1x8x8x4xbf16> to vector<8x8x4xbf16>
    %14 = vector.shape_cast %13 : vector<8x8x4xbf16> to vector<64x4xbf16>
    %c0_21 = arith.constant 0 : index
    %c12 = arith.constant 12 : index
    %15 = vector.load %arg13[%c0_21, %c12] : memref<64x36xbf16, #tpu.memory_space<vmem>>, vector<64x4xbf16>
    tpu.vector_store %arg13[%c0_21, %c12], %14 {strides = array<i32>} : memref<64x36xbf16, #tpu.memory_space<vmem>>, vector<64x4xbf16>,
    %c0_22 = arith.constant 0 : index
    %c3 = arith.constant 3 : index
    %c0_23 = arith.constant 0 : index
    %c0_24 = arith.constant 0 : index
    %c0_25 = arith.constant 0 : index
    %16 = vector.load %arg1[%c0_22, %c3, %c0_23, %c0_24, %c0_25] : memref<1x4x9x9x4xbf16, #tpu.memory_space<vmem>>, vector<1x1x8x8x4xbf16>
    %17 = vector.shape_cast %16 : vector<1x1x8x8x4xbf16> to vector<8x8x4xbf16>
    %18 = vector.shape_cast %17 : vector<8x8x4xbf16> to vector<64x4xbf16>
    %c0_26 = arith.constant 0 : index
    %c16 = arith.constant 16 : index
    %19 = vector.load %arg13[%c0_26, %c16] : memref<64x36xbf16, #tpu.memory_space<vmem>>, vector<64x4xbf16>
    tpu.vector_store %arg13[%c0_26, %c16], %18 {strides = array<i32>} : memref<64x36xbf16, #tpu.memory_space<vmem>>, vector<64x4xbf16>,
    %c0_27 = arith.constant 0 : index
    %c2_28 = arith.constant 2 : index
    %c0_29 = arith.constant 0 : index
    %c1_30 = arith.constant 1 : index
    %c0_31 = arith.constant 0 : index
    %20 = vector.load %arg1[%c0_27, %c2_28, %c0_29, %c1_30, %c0_31] : memref<1x4x9x9x4xbf16, #tpu.memory_space<vmem>>, vector<1x1x8x8x4xbf16>
    %21 = vector.shape_cast %20 : vector<1x1x8x8x4xbf16> to vector<8x8x4xbf16>
    %22 = vector.shape_cast %21 : vector<8x8x4xbf16> to vector<64x4xbf16>
    %c0_32 = arith.constant 0 : index
    %c20 = arith.constant 20 : index
    %23 = vector.load %arg13[%c0_32, %c20] : memref<64x36xbf16, #tpu.memory_space<vmem>>, vector<64x4xbf16>
    tpu.vector_store %arg13[%c0_32, %c20], %22 {strides = array<i32>} : memref<64x36xbf16, #tpu.memory_space<vmem>>, vector<64x4xbf16>,
    %c0_33 = arith.constant 0 : index
    %c0_34 = arith.constant 0 : index
    %c1_35 = arith.constant 1 : index
    %c0_36 = arith.constant 0 : index
    %c0_37 = arith.constant 0 : index
    %24 = vector.load %arg1[%c0_33, %c0_34, %c1_35, %c0_36, %c0_37] : memref<1x4x9x9x4xbf16, #tpu.memory_space<vmem>>, vector<1x1x8x8x4xbf16>
    %25 = vector.shape_cast %24 : vector<1x1x8x8x4xbf16> to vector<8x8x4xbf16>
    %26 = vector.shape_cast %25 : vector<8x8x4xbf16> to vector<64x4xbf16>
    %c0_38 = arith.constant 0 : index
    %c24 = arith.constant 24 : index
    %27 = vector.load %arg13[%c0_38, %c24] : memref<64x36xbf16, #tpu.memory_space<vmem>>, vector<64x4xbf16>
    tpu.vector_store %arg13[%c0_38, %c24], %26 {strides = array<i32>} : memref<64x36xbf16, #tpu.memory_space<vmem>>, vector<64x4xbf16>,
    %c0_39 = arith.constant 0 : index
    %c1_40 = arith.constant 1 : index
    %c1_41 = arith.constant 1 : index
    %c0_42 = arith.constant 0 : index
    %c0_43 = arith.constant 0 : index
    %28 = vector.load %arg1[%c0_39, %c1_40, %c1_41, %c0_42, %c0_43] : memref<1x4x9x9x4xbf16, #tpu.memory_space<vmem>>, vector<1x1x8x8x4xbf16>
    %29 = vector.shape_cast %28 : vector<1x1x8x8x4xbf16> to vector<8x8x4xbf16>
    %30 = vector.shape_cast %29 : vector<8x8x4xbf16> to vector<64x4xbf16>
    %c0_44 = arith.constant 0 : index
    %c28 = arith.constant 28 : index
    %31 = vector.load %arg13[%c0_44, %c28] : memref<64x36xbf16, #tpu.memory_space<vmem>>, vector<64x4xbf16>
    tpu.vector_store %arg13[%c0_44, %c28], %30 {strides = array<i32>} : memref<64x36xbf16, #tpu.memory_space<vmem>>, vector<64x4xbf16>,
    %c0_45 = arith.constant 0 : index
    %c0_46 = arith.constant 0 : index
    %c1_47 = arith.constant 1 : index
    %c1_48 = arith.constant 1 : index
    %c0_49 = arith.constant 0 : index
    %32 = vector.load %arg1[%c0_45, %c0_46, %c1_47, %c1_48, %c0_49] : memref<1x4x9x9x4xbf16, #tpu.memory_space<vmem>>, vector<1x1x8x8x4xbf16>
    %33 = vector.shape_cast %32 : vector<1x1x8x8x4xbf16> to vector<8x8x4xbf16>
    %34 = vector.shape_cast %33 : vector<8x8x4xbf16> to vector<64x4xbf16>
    %c0_50 = arith.constant 0 : index
    %c32 = arith.constant 32 : index
    %35 = vector.load %arg13[%c0_50, %c32] : memref<64x36xbf16, #tpu.memory_space<vmem>>, vector<64x4xbf16>
    tpu.vector_store %arg13[%c0_50, %c32], %34 {strides = array<i32>} : memref<64x36xbf16, #tpu.memory_space<vmem>>, vector<64x4xbf16>,
    %c0_51 = arith.constant 0 : index
    %c0_52 = arith.constant 0 : index
    %36 = vector.load %arg13[%c0_51, %c0_52] : memref<64x36xbf16, #tpu.memory_space<vmem>>, vector<64x36xbf16>
    %c0_53 = arith.constant 0 : index
    %c0_54 = arith.constant 0 : index
    %37 = vector.load %arg2[%c0_53, %c0_54] : memref<36x128xbf16, #tpu.memory_space<vmem>>, vector<36x128xbf16>
    %cst = arith.constant dense<0.000000e+00> : vector<64x128xf32>
    %38 = tpu.matmul %36, %37, %cst {dimension_numbers = #tpu.dot_dimension_numbers<[1], [0], [0], [1], [0, 0, 1, 1], [], []>} : vector<64x36xbf16>, vector<36x128xbf16>, vector<64x128xf32> -> vector<64x128xf32>
    %c0_55 = arith.constant 0 : index
    %c0_56 = arith.constant 0 : index
    %39 = vector.load %arg3[%c0_55, %c0_56] : memref<1x128xf32, #tpu.memory_space<vmem>>, vector<1x128xf32>
    %40 = vector.broadcast %39 : vector<1x128xf32> to vector<64x128xf32>
    %41 = arith.mulf %38, %40 : vector<64x128xf32>
    %c0_57 = arith.constant 0 : index
    %c0_58 = arith.constant 0 : index
    %42 = vector.load %arg4[%c0_57, %c0_58] : memref<1x128xf32, #tpu.memory_space<vmem>>, vector<1x128xf32>
    %43 = vector.broadcast %42 : vector<1x128xf32> to vector<64x128xf32>
    %44 = arith.addf %41, %43 : vector<64x128xf32>
    %cst_59 = arith.constant 0.000000e+00 : f32
    %45 = vector.broadcast %cst_59 : f32 to vector<64x128xf32>
    %46 = arith.maximumf %44, %45 : vector<64x128xf32>
    %cst_60 = arith.constant 0.000000e+00 : bf16
    %47 = vector.broadcast %cst_60 : bf16 to vector<1x10x128xbf16>
    %cst_61 = arith.constant 0.000000e+00 : bf16
    %48 = vector.broadcast %cst_61 : bf16 to vector<10x1x128xbf16>
    %c0_62 = arith.constant 0 : index
    %c0_63 = arith.constant 0 : index
    %c0_64 = arith.constant 0 : index
    %49 = vector.load %arg12[%c0_62, %c0_63, %c0_64] : memref<10x10x128xbf16, #tpu.memory_space<vmem>>, vector<1x10x128xbf16>
    tpu.vector_store %arg12[%c0_62, %c0_63, %c0_64], %47 {strides = array<i32>} : memref<10x10x128xbf16, #tpu.memory_space<vmem>>, vector<1x10x128xbf16>,
    %c9 = arith.constant 9 : index
    %c0_65 = arith.constant 0 : index
    %c0_66 = arith.constant 0 : index
    %50 = vector.load %arg12[%c9, %c0_65, %c0_66] : memref<10x10x128xbf16, #tpu.memory_space<vmem>>, vector<1x10x128xbf16>
    tpu.vector_store %arg12[%c9, %c0_65, %c0_66], %47 {strides = array<i32>} : memref<10x10x128xbf16, #tpu.memory_space<vmem>>, vector<1x10x128xbf16>,
    %c0_67 = arith.constant 0 : index
    %c0_68 = arith.constant 0 : index
    %c0_69 = arith.constant 0 : index
    %51 = vector.load %arg12[%c0_67, %c0_68, %c0_69] : memref<10x10x128xbf16, #tpu.memory_space<vmem>>, vector<10x1x128xbf16>
    tpu.vector_store %arg12[%c0_67, %c0_68, %c0_69], %48 {strides = array<i32>} : memref<10x10x128xbf16, #tpu.memory_space<vmem>>, vector<10x1x128xbf16>,
    %c0_70 = arith.constant 0 : index
    %c9_71 = arith.constant 9 : index
    %c0_72 = arith.constant 0 : index
    %52 = vector.load %arg12[%c0_70, %c9_71, %c0_72] : memref<10x10x128xbf16, #tpu.memory_space<vmem>>, vector<10x1x128xbf16>
    tpu.vector_store %arg12[%c0_70, %c9_71, %c0_72], %48 {strides = array<i32>} : memref<10x10x128xbf16, #tpu.memory_space<vmem>>, vector<10x1x128xbf16>,
    %53 = arith.truncf %46 : vector<64x128xf32> to vector<64x128xbf16>
    %54 = vector.shape_cast %53 : vector<64x128xbf16> to vector<8x8x128xbf16>
    %c1_73 = arith.constant 1 : index
    %c1_74 = arith.constant 1 : index
    %c0_75 = arith.constant 0 : index
    %55 = vector.load %arg12[%c1_73, %c1_74, %c0_75] : memref<10x10x128xbf16, #tpu.memory_space<vmem>>, vector<8x8x128xbf16>
    tpu.vector_store %arg12[%c1_73, %c1_74, %c0_75], %54 {strides = array<i32>} : memref<10x10x128xbf16, #tpu.memory_space<vmem>>, vector<8x8x128xbf16>,
    %cst_76 = arith.constant 0.000000e+00 : f32
    %56 = vector.broadcast %cst_76 : f32 to vector<64x128xf32>
    %c0_77 = arith.constant 0 : index
    %c0_78 = arith.constant 0 : index
    %c0_79 = arith.constant 0 : index
    %57 = vector.load %arg12[%c0_77, %c0_78, %c0_79] : memref<10x10x128xbf16, #tpu.memory_space<vmem>>, vector<8x8x128xbf16>
    %58 = vector.shape_cast %57 : vector<8x8x128xbf16> to vector<64x128xbf16>
    %c0_80 = arith.constant 0 : index
    %c0_81 = arith.constant 0 : index
    %59 = vector.load %arg5[%c0_80, %c0_81] : memref<1152x128xbf16, #tpu.memory_space<vmem>>, vector<128x128xbf16>
    %cst_82 = arith.constant dense<0.000000e+00> : vector<64x128xf32>
    %60 = tpu.matmul %58, %59, %cst_82 {dimension_numbers = #tpu.dot_dimension_numbers<[1], [0], [0], [1], [0, 0, 1, 1], [], []>} : vector<64x128xbf16>, vector<128x128xbf16>, vector<64x128xf32> -> vector<64x128xf32>
    %61 = arith.addf %56, %60 : vector<64x128xf32>
    %c0_83 = arith.constant 0 : index
    %c1_84 = arith.constant 1 : index
    %c0_85 = arith.constant 0 : index
    %62 = vector.load %arg12[%c0_83, %c1_84, %c0_85] : memref<10x10x128xbf16, #tpu.memory_space<vmem>>, vector<8x8x128xbf16>
    %63 = vector.shape_cast %62 : vector<8x8x128xbf16> to vector<64x128xbf16>
    %c128 = arith.constant 128 : index
    %c0_86 = arith.constant 0 : index
    %64 = vector.load %arg5[%c128, %c0_86] : memref<1152x128xbf16, #tpu.memory_space<vmem>>, vector<128x128xbf16>
    %cst_87 = arith.constant dense<0.000000e+00> : vector<64x128xf32>
    %65 = tpu.matmul %63, %64, %cst_87 {dimension_numbers = #tpu.dot_dimension_numbers<[1], [0], [0], [1], [0, 0, 1, 1], [], []>} : vector<64x128xbf16>, vector<128x128xbf16>, vector<64x128xf32> -> vector<64x128xf32>
    %66 = arith.addf %61, %65 : vector<64x128xf32>
    %c0_88 = arith.constant 0 : index
    %c2_89 = arith.constant 2 : index
    %c0_90 = arith.constant 0 : index
    %67 = vector.load %arg12[%c0_88, %c2_89, %c0_90] : memref<10x10x128xbf16, #tpu.memory_space<vmem>>, vector<8x8x128xbf16>
    %68 = vector.shape_cast %67 : vector<8x8x128xbf16> to vector<64x128xbf16>
    %c256 = arith.constant 256 : index
    %c0_91 = arith.constant 0 : index
    %69 = vector.load %arg5[%c256, %c0_91] : memref<1152x128xbf16, #tpu.memory_space<vmem>>, vector<128x128xbf16>
    %cst_92 = arith.constant dense<0.000000e+00> : vector<64x128xf32>
    %70 = tpu.matmul %68, %69, %cst_92 {dimension_numbers = #tpu.dot_dimension_numbers<[1], [0], [0], [1], [0, 0, 1, 1], [], []>} : vector<64x128xbf16>, vector<128x128xbf16>, vector<64x128xf32> -> vector<64x128xf32>
    %71 = arith.addf %66, %70 : vector<64x128xf32>
    %c1_93 = arith.constant 1 : index
    %c0_94 = arith.constant 0 : index
    %c0_95 = arith.constant 0 : index
    %72 = vector.load %arg12[%c1_93, %c0_94, %c0_95] : memref<10x10x128xbf16, #tpu.memory_space<vmem>>, vector<8x8x128xbf16>
    %73 = vector.shape_cast %72 : vector<8x8x128xbf16> to vector<64x128xbf16>
    %c384 = arith.constant 384 : index
    %c0_96 = arith.constant 0 : index
    %74 = vector.load %arg5[%c384, %c0_96] : memref<1152x128xbf16, #tpu.memory_space<vmem>>, vector<128x128xbf16>
    %cst_97 = arith.constant dense<0.000000e+00> : vector<64x128xf32>
    %75 = tpu.matmul %73, %74, %cst_97 {dimension_numbers = #tpu.dot_dimension_numbers<[1], [0], [0], [1], [0, 0, 1, 1], [], []>} : vector<64x128xbf16>, vector<128x128xbf16>, vector<64x128xf32> -> vector<64x128xf32>
    %76 = arith.addf %71, %75 : vector<64x128xf32>
    %c1_98 = arith.constant 1 : index
    %c1_99 = arith.constant 1 : index
    %c0_100 = arith.constant 0 : index
    %77 = vector.load %arg12[%c1_98, %c1_99, %c0_100] : memref<10x10x128xbf16, #tpu.memory_space<vmem>>, vector<8x8x128xbf16>
    %78 = vector.shape_cast %77 : vector<8x8x128xbf16> to vector<64x128xbf16>
    %c512 = arith.constant 512 : index
    %c0_101 = arith.constant 0 : index
    %79 = vector.load %arg5[%c512, %c0_101] : memref<1152x128xbf16, #tpu.memory_space<vmem>>, vector<128x128xbf16>
    %cst_102 = arith.constant dense<0.000000e+00> : vector<64x128xf32>
    %80 = tpu.matmul %78, %79, %cst_102 {dimension_numbers = #tpu.dot_dimension_numbers<[1], [0], [0], [1], [0, 0, 1, 1], [], []>} : vector<64x128xbf16>, vector<128x128xbf16>, vector<64x128xf32> -> vector<64x128xf32>
    %81 = arith.addf %76, %80 : vector<64x128xf32>
    %c1_103 = arith.constant 1 : index
    %c2_104 = arith.constant 2 : index
    %c0_105 = arith.constant 0 : index
    %82 = vector.load %arg12[%c1_103, %c2_104, %c0_105] : memref<10x10x128xbf16, #tpu.memory_space<vmem>>, vector<8x8x128xbf16>
    %83 = vector.shape_cast %82 : vector<8x8x128xbf16> to vector<64x128xbf16>
    %c640 = arith.constant 640 : index
    %c0_106 = arith.constant 0 : index
    %84 = vector.load %arg5[%c640, %c0_106] : memref<1152x128xbf16, #tpu.memory_space<vmem>>, vector<128x128xbf16>
    %cst_107 = arith.constant dense<0.000000e+00> : vector<64x128xf32>
    %85 = tpu.matmul %83, %84, %cst_107 {dimension_numbers = #tpu.dot_dimension_numbers<[1], [0], [0], [1], [0, 0, 1, 1], [], []>} : vector<64x128xbf16>, vector<128x128xbf16>, vector<64x128xf32> -> vector<64x128xf32>
    %86 = arith.addf %81, %85 : vector<64x128xf32>
    %c2_108 = arith.constant 2 : index
    %c0_109 = arith.constant 0 : index
    %c0_110 = arith.constant 0 : index
    %87 = vector.load %arg12[%c2_108, %c0_109, %c0_110] : memref<10x10x128xbf16, #tpu.memory_space<vmem>>, vector<8x8x128xbf16>
    %88 = vector.shape_cast %87 : vector<8x8x128xbf16> to vector<64x128xbf16>
    %c768 = arith.constant 768 : index
    %c0_111 = arith.constant 0 : index
    %89 = vector.load %arg5[%c768, %c0_111] : memref<1152x128xbf16, #tpu.memory_space<vmem>>, vector<128x128xbf16>
    %cst_112 = arith.constant dense<0.000000e+00> : vector<64x128xf32>
    %90 = tpu.matmul %88, %89, %cst_112 {dimension_numbers = #tpu.dot_dimension_numbers<[1], [0], [0], [1], [0, 0, 1, 1], [], []>} : vector<64x128xbf16>, vector<128x128xbf16>, vector<64x128xf32> -> vector<64x128xf32>
    %91 = arith.addf %86, %90 : vector<64x128xf32>
    %c2_113 = arith.constant 2 : index
    %c1_114 = arith.constant 1 : index
    %c0_115 = arith.constant 0 : index
    %92 = vector.load %arg12[%c2_113, %c1_114, %c0_115] : memref<10x10x128xbf16, #tpu.memory_space<vmem>>, vector<8x8x128xbf16>
    %93 = vector.shape_cast %92 : vector<8x8x128xbf16> to vector<64x128xbf16>
    %c896 = arith.constant 896 : index
    %c0_116 = arith.constant 0 : index
    %94 = vector.load %arg5[%c896, %c0_116] : memref<1152x128xbf16, #tpu.memory_space<vmem>>, vector<128x128xbf16>
    %cst_117 = arith.constant dense<0.000000e+00> : vector<64x128xf32>
    %95 = tpu.matmul %93, %94, %cst_117 {dimension_numbers = #tpu.dot_dimension_numbers<[1], [0], [0], [1], [0, 0, 1, 1], [], []>} : vector<64x128xbf16>, vector<128x128xbf16>, vector<64x128xf32> -> vector<64x128xf32>
    %96 = arith.addf %91, %95 : vector<64x128xf32>
    %c2_118 = arith.constant 2 : index
    %c2_119 = arith.constant 2 : index
    %c0_120 = arith.constant 0 : index
    %97 = vector.load %arg12[%c2_118, %c2_119, %c0_120] : memref<10x10x128xbf16, #tpu.memory_space<vmem>>, vector<8x8x128xbf16>
    %98 = vector.shape_cast %97 : vector<8x8x128xbf16> to vector<64x128xbf16>
    %c1024 = arith.constant 1024 : index
    %c0_121 = arith.constant 0 : index
    %99 = vector.load %arg5[%c1024, %c0_121] : memref<1152x128xbf16, #tpu.memory_space<vmem>>, vector<128x128xbf16>
    %cst_122 = arith.constant dense<0.000000e+00> : vector<64x128xf32>
    %100 = tpu.matmul %98, %99, %cst_122 {dimension_numbers = #tpu.dot_dimension_numbers<[1], [0], [0], [1], [0, 0, 1, 1], [], []>} : vector<64x128xbf16>, vector<128x128xbf16>, vector<64x128xf32> -> vector<64x128xf32>
    %101 = arith.addf %96, %100 : vector<64x128xf32>
    %c0_123 = arith.constant 0 : index
    %c0_124 = arith.constant 0 : index
    %102 = vector.load %arg6[%c0_123, %c0_124] : memref<1x128xf32, #tpu.memory_space<vmem>>, vector<1x128xf32>
    %103 = vector.broadcast %102 : vector<1x128xf32> to vector<64x128xf32>
    %104 = arith.mulf %101, %103 : vector<64x128xf32>
    %c0_125 = arith.constant 0 : index
    %c0_126 = arith.constant 0 : index
    %105 = vector.load %arg7[%c0_125, %c0_126] : memref<1x128xf32, #tpu.memory_space<vmem>>, vector<1x128xf32>
    %106 = vector.broadcast %105 : vector<1x128xf32> to vector<64x128xf32>
    %107 = arith.addf %104, %106 : vector<64x128xf32>
    %cst_127 = arith.constant 0.000000e+00 : f32
    %108 = vector.broadcast %cst_127 : f32 to vector<64x128xf32>
    %109 = arith.maximumf %107, %108 : vector<64x128xf32>
    %110 = arith.truncf %109 : vector<64x128xf32> to vector<64x128xbf16>
    %111 = vector.shape_cast %110 : vector<64x128xbf16> to vector<8x8x128xbf16>
    %c1_128 = arith.constant 1 : index
    %c1_129 = arith.constant 1 : index
    %c0_130 = arith.constant 0 : index
    %112 = vector.load %arg12[%c1_128, %c1_129, %c0_130] : memref<10x10x128xbf16, #tpu.memory_space<vmem>>, vector<8x8x128xbf16>
    tpu.vector_store %arg12[%c1_128, %c1_129, %c0_130], %111 {strides = array<i32>} : memref<10x10x128xbf16, #tpu.memory_space<vmem>>, vector<8x8x128xbf16>,
    %cst_131 = arith.constant 0.000000e+00 : f32
    %113 = vector.broadcast %cst_131 : f32 to vector<64x128xf32>
    %c0_132 = arith.constant 0 : index
    %c0_133 = arith.constant 0 : index
    %c0_134 = arith.constant 0 : index
    %114 = vector.load %arg12[%c0_132, %c0_133, %c0_134] : memref<10x10x128xbf16, #tpu.memory_space<vmem>>, vector<8x8x128xbf16>
    %115 = vector.shape_cast %114 : vector<8x8x128xbf16> to vector<64x128xbf16>
    %c0_135 = arith.constant 0 : index
    %c0_136 = arith.constant 0 : index
    %116 = vector.load %arg8[%c0_135, %c0_136] : memref<1152x128xbf16, #tpu.memory_space<vmem>>, vector<128x128xbf16>
    %cst_137 = arith.constant dense<0.000000e+00> : vector<64x128xf32>
    %117 = tpu.matmul %115, %116, %cst_137 {dimension_numbers = #tpu.dot_dimension_numbers<[1], [0], [0], [1], [0, 0, 1, 1], [], []>} : vector<64x128xbf16>, vector<128x128xbf16>, vector<64x128xf32> -> vector<64x128xf32>
    %118 = arith.addf %113, %117 : vector<64x128xf32>
    %c0_138 = arith.constant 0 : index
    %c1_139 = arith.constant 1 : index
    %c0_140 = arith.constant 0 : index
    %119 = vector.load %arg12[%c0_138, %c1_139, %c0_140] : memref<10x10x128xbf16, #tpu.memory_space<vmem>>, vector<8x8x128xbf16>
    %120 = vector.shape_cast %119 : vector<8x8x128xbf16> to vector<64x128xbf16>
    %c128_141 = arith.constant 128 : index
    %c0_142 = arith.constant 0 : index
    %121 = vector.load %arg8[%c128_141, %c0_142] : memref<1152x128xbf16, #tpu.memory_space<vmem>>, vector<128x128xbf16>
    %cst_143 = arith.constant dense<0.000000e+00> : vector<64x128xf32>
    %122 = tpu.matmul %120, %121, %cst_143 {dimension_numbers = #tpu.dot_dimension_numbers<[1], [0], [0], [1], [0, 0, 1, 1], [], []>} : vector<64x128xbf16>, vector<128x128xbf16>, vector<64x128xf32> -> vector<64x128xf32>
    %123 = arith.addf %118, %122 : vector<64x128xf32>
    %c0_144 = arith.constant 0 : index
    %c2_145 = arith.constant 2 : index
    %c0_146 = arith.constant 0 : index
    %124 = vector.load %arg12[%c0_144, %c2_145, %c0_146] : memref<10x10x128xbf16, #tpu.memory_space<vmem>>, vector<8x8x128xbf16>
    %125 = vector.shape_cast %124 : vector<8x8x128xbf16> to vector<64x128xbf16>
    %c256_147 = arith.constant 256 : index
    %c0_148 = arith.constant 0 : index
    %126 = vector.load %arg8[%c256_147, %c0_148] : memref<1152x128xbf16, #tpu.memory_space<vmem>>, vector<128x128xbf16>
    %cst_149 = arith.constant dense<0.000000e+00> : vector<64x128xf32>
    %127 = tpu.matmul %125, %126, %cst_149 {dimension_numbers = #tpu.dot_dimension_numbers<[1], [0], [0], [1], [0, 0, 1, 1], [], []>} : vector<64x128xbf16>, vector<128x128xbf16>, vector<64x128xf32> -> vector<64x128xf32>
    %128 = arith.addf %123, %127 : vector<64x128xf32>
    %c1_150 = arith.constant 1 : index
    %c0_151 = arith.constant 0 : index
    %c0_152 = arith.constant 0 : index
    %129 = vector.load %arg12[%c1_150, %c0_151, %c0_152] : memref<10x10x128xbf16, #tpu.memory_space<vmem>>, vector<8x8x128xbf16>
    %130 = vector.shape_cast %129 : vector<8x8x128xbf16> to vector<64x128xbf16>
    %c384_153 = arith.constant 384 : index
    %c0_154 = arith.constant 0 : index
    %131 = vector.load %arg8[%c384_153, %c0_154] : memref<1152x128xbf16, #tpu.memory_space<vmem>>, vector<128x128xbf16>
    %cst_155 = arith.constant dense<0.000000e+00> : vector<64x128xf32>
    %132 = tpu.matmul %130, %131, %cst_155 {dimension_numbers = #tpu.dot_dimension_numbers<[1], [0], [0], [1], [0, 0, 1, 1], [], []>} : vector<64x128xbf16>, vector<128x128xbf16>, vector<64x128xf32> -> vector<64x128xf32>
    %133 = arith.addf %128, %132 : vector<64x128xf32>
    %c1_156 = arith.constant 1 : index
    %c1_157 = arith.constant 1 : index
    %c0_158 = arith.constant 0 : index
    %134 = vector.load %arg12[%c1_156, %c1_157, %c0_158] : memref<10x10x128xbf16, #tpu.memory_space<vmem>>, vector<8x8x128xbf16>
    %135 = vector.shape_cast %134 : vector<8x8x128xbf16> to vector<64x128xbf16>
    %c512_159 = arith.constant 512 : index
    %c0_160 = arith.constant 0 : index
    %136 = vector.load %arg8[%c512_159, %c0_160] : memref<1152x128xbf16, #tpu.memory_space<vmem>>, vector<128x128xbf16>
    %cst_161 = arith.constant dense<0.000000e+00> : vector<64x128xf32>
    %137 = tpu.matmul %135, %136, %cst_161 {dimension_numbers = #tpu.dot_dimension_numbers<[1], [0], [0], [1], [0, 0, 1, 1], [], []>} : vector<64x128xbf16>, vector<128x128xbf16>, vector<64x128xf32> -> vector<64x128xf32>
    %138 = arith.addf %133, %137 : vector<64x128xf32>
    %c1_162 = arith.constant 1 : index
    %c2_163 = arith.constant 2 : index
    %c0_164 = arith.constant 0 : index
    %139 = vector.load %arg12[%c1_162, %c2_163, %c0_164] : memref<10x10x128xbf16, #tpu.memory_space<vmem>>, vector<8x8x128xbf16>
    %140 = vector.shape_cast %139 : vector<8x8x128xbf16> to vector<64x128xbf16>
    %c640_165 = arith.constant 640 : index
    %c0_166 = arith.constant 0 : index
    %141 = vector.load %arg8[%c640_165, %c0_166] : memref<1152x128xbf16, #tpu.memory_space<vmem>>, vector<128x128xbf16>
    %cst_167 = arith.constant dense<0.000000e+00> : vector<64x128xf32>
    %142 = tpu.matmul %140, %141, %cst_167 {dimension_numbers = #tpu.dot_dimension_numbers<[1], [0], [0], [1], [0, 0, 1, 1], [], []>} : vector<64x128xbf16>, vector<128x128xbf16>, vector<64x128xf32> -> vector<64x128xf32>
    %143 = arith.addf %138, %142 : vector<64x128xf32>
    %c2_168 = arith.constant 2 : index
    %c0_169 = arith.constant 0 : index
    %c0_170 = arith.constant 0 : index
    %144 = vector.load %arg12[%c2_168, %c0_169, %c0_170] : memref<10x10x128xbf16, #tpu.memory_space<vmem>>, vector<8x8x128xbf16>
    %145 = vector.shape_cast %144 : vector<8x8x128xbf16> to vector<64x128xbf16>
    %c768_171 = arith.constant 768 : index
    %c0_172 = arith.constant 0 : index
    %146 = vector.load %arg8[%c768_171, %c0_172] : memref<1152x128xbf16, #tpu.memory_space<vmem>>, vector<128x128xbf16>
    %cst_173 = arith.constant dense<0.000000e+00> : vector<64x128xf32>
    %147 = tpu.matmul %145, %146, %cst_173 {dimension_numbers = #tpu.dot_dimension_numbers<[1], [0], [0], [1], [0, 0, 1, 1], [], []>} : vector<64x128xbf16>, vector<128x128xbf16>, vector<64x128xf32> -> vector<64x128xf32>
    %148 = arith.addf %143, %147 : vector<64x128xf32>
    %c2_174 = arith.constant 2 : index
    %c1_175 = arith.constant 1 : index
    %c0_176 = arith.constant 0 : index
    %149 = vector.load %arg12[%c2_174, %c1_175, %c0_176] : memref<10x10x128xbf16, #tpu.memory_space<vmem>>, vector<8x8x128xbf16>
    %150 = vector.shape_cast %149 : vector<8x8x128xbf16> to vector<64x128xbf16>
    %c896_177 = arith.constant 896 : index
    %c0_178 = arith.constant 0 : index
    %151 = vector.load %arg8[%c896_177, %c0_178] : memref<1152x128xbf16, #tpu.memory_space<vmem>>, vector<128x128xbf16>
    %cst_179 = arith.constant dense<0.000000e+00> : vector<64x128xf32>
    %152 = tpu.matmul %150, %151, %cst_179 {dimension_numbers = #tpu.dot_dimension_numbers<[1], [0], [0], [1], [0, 0, 1, 1], [], []>} : vector<64x128xbf16>, vector<128x128xbf16>, vector<64x128xf32> -> vector<64x128xf32>
    %153 = arith.addf %148, %152 : vector<64x128xf32>
    %c2_180 = arith.constant 2 : index
    %c2_181 = arith.constant 2 : index
    %c0_182 = arith.constant 0 : index
    %154 = vector.load %arg12[%c2_180, %c2_181, %c0_182] : memref<10x10x128xbf16, #tpu.memory_space<vmem>>, vector<8x8x128xbf16>
    %155 = vector.shape_cast %154 : vector<8x8x128xbf16> to vector<64x128xbf16>
    %c1024_183 = arith.constant 1024 : index
    %c0_184 = arith.constant 0 : index
    %156 = vector.load %arg8[%c1024_183, %c0_184] : memref<1152x128xbf16, #tpu.memory_space<vmem>>, vector<128x128xbf16>
    %cst_185 = arith.constant dense<0.000000e+00> : vector<64x128xf32>
    %157 = tpu.matmul %155, %156, %cst_185 {dimension_numbers = #tpu.dot_dimension_numbers<[1], [0], [0], [1], [0, 0, 1, 1], [], []>} : vector<64x128xbf16>, vector<128x128xbf16>, vector<64x128xf32> -> vector<64x128xf32>
    %158 = arith.addf %153, %157 : vector<64x128xf32>
    %c0_186 = arith.constant 0 : index
    %c0_187 = arith.constant 0 : index
    %159 = vector.load %arg9[%c0_186, %c0_187] : memref<1x128xf32, #tpu.memory_space<vmem>>, vector<1x128xf32>
    %160 = vector.broadcast %159 : vector<1x128xf32> to vector<64x128xf32>
    %161 = arith.mulf %158, %160 : vector<64x128xf32>
    %c0_188 = arith.constant 0 : index
    %c0_189 = arith.constant 0 : index
    %162 = vector.load %arg10[%c0_188, %c0_189] : memref<1x128xf32, #tpu.memory_space<vmem>>, vector<1x128xf32>
    %163 = vector.broadcast %162 : vector<1x128xf32> to vector<64x128xf32>
    %164 = arith.addf %161, %163 : vector<64x128xf32>
    %cst_190 = arith.constant 0.000000e+00 : f32
    %165 = vector.broadcast %cst_190 : f32 to vector<64x128xf32>
    %166 = arith.maximumf %164, %165 : vector<64x128xf32>
    %c0_191 = arith.constant 0 : index
    %c0_192 = arith.constant 0 : index
    %c0_193 = arith.constant 0 : index
    %167 = vector.load %arg11[%c0_191, %c0_192, %c0_193] : memref<1x64x128xf32, #tpu.memory_space<vmem>>, vector<1x64x128xf32>
    %168 = vector.shape_cast %167 : vector<1x64x128xf32> to vector<64x128xf32>
    %169 = vector.shape_cast %166 : vector<64x128xf32> to vector<1x64x128xf32>
    tpu.vector_store %arg11[%c0_191, %c0_192, %c0_193], %169 {strides = array<i32>} : memref<1x64x128xf32, #tpu.memory_space<vmem>>, vector<1x64x128xf32>,
    return
  }
  func.func @transform_0(%arg0: i32) -> (i32, i32, i32, i32, i32) {
    %c0_i32 = arith.constant 0 : i32
    %c0_i32_0 = arith.constant 0 : i32
    %c0_i32_1 = arith.constant 0 : i32
    %c0_i32_2 = arith.constant 0 : i32
    %c0_i32_3 = arith.constant 0 : i32
    return %arg0, %c0_i32, %c0_i32_0, %c0_i32_1, %c0_i32_2 : i32, i32, i32, i32, i32
  }
  func.func @transform_1(%arg0: i32) -> (i32, i32) {
    %c0_i32 = arith.constant 0 : i32
    %c0_i32_0 = arith.constant 0 : i32
    %c0_i32_1 = arith.constant 0 : i32
    return %c0_i32, %c0_i32_0 : i32, i32
  }
  func.func @transform_2(%arg0: i32) -> (i32, i32) {
    %c0_i32 = arith.constant 0 : i32
    %c0_i32_0 = arith.constant 0 : i32
    %c0_i32_1 = arith.constant 0 : i32
    return %c0_i32, %c0_i32_0 : i32, i32
  }
  func.func @transform_3(%arg0: i32) -> (i32, i32) {
    %c0_i32 = arith.constant 0 : i32
    %c0_i32_0 = arith.constant 0 : i32
    %c0_i32_1 = arith.constant 0 : i32
    return %c0_i32, %c0_i32_0 : i32, i32
  }
  func.func @transform_4(%arg0: i32) -> (i32, i32) {
    %c0_i32 = arith.constant 0 : i32
    %c0_i32_0 = arith.constant 0 : i32
    %c0_i32_1 = arith.constant 0 : i32
    return %c0_i32, %c0_i32_0 : i32, i32
  }
  func.func @transform_5(%arg0: i32) -> (i32, i32) {
    %c0_i32 = arith.constant 0 : i32
    %c0_i32_0 = arith.constant 0 : i32
    %c0_i32_1 = arith.constant 0 : i32
    return %c0_i32, %c0_i32_0 : i32, i32
  }
  func.func @transform_6(%arg0: i32) -> (i32, i32) {
    %c0_i32 = arith.constant 0 : i32
    %c0_i32_0 = arith.constant 0 : i32
    %c0_i32_1 = arith.constant 0 : i32
    return %c0_i32, %c0_i32_0 : i32, i32
  }
  func.func @transform_7(%arg0: i32) -> (i32, i32) {
    %c0_i32 = arith.constant 0 : i32
    %c0_i32_0 = arith.constant 0 : i32
    %c0_i32_1 = arith.constant 0 : i32
    return %c0_i32, %c0_i32_0 : i32, i32
  }
  func.func @transform_8(%arg0: i32) -> (i32, i32) {
    %c0_i32 = arith.constant 0 : i32
    %c0_i32_0 = arith.constant 0 : i32
    %c0_i32_1 = arith.constant 0 : i32
    return %c0_i32, %c0_i32_0 : i32, i32
  }
  func.func @transform_9(%arg0: i32) -> (i32, i32) {
    %c0_i32 = arith.constant 0 : i32
    %c0_i32_0 = arith.constant 0 : i32
    %c0_i32_1 = arith.constant 0 : i32
    return %c0_i32, %c0_i32_0 : i32, i32
  }
  func.func @transform_10(%arg0: i32) -> (i32, i32, i32) {
    %c0_i32 = arith.constant 0 : i32
    %c0_i32_0 = arith.constant 0 : i32
    %c0_i32_1 = arith.constant 0 : i32
    return %arg0, %c0_i32, %c0_i32_0 : i32, i32, i32
  }
}

</mosaic_0001>

<bundles_post_ra>
// kernel: tpu_custom_call.1
= control target key start
LH: loop header
LB: loop body
LE: loop exit
PB: predicated region body
PF: predicated region fallthrough
CT: control target
= control target key end

     0   :  { %15 = vsyncpa [#allocation5], 0  ;;  %s8641_s0 = inlined_call_operand.vmem [shape: bf16[2,4,9,9,4], index: 0, kind: input, shape index: {}]   ;;  %s8642_s1 = inlined_call_operand.vmem [shape: bf16[36,128], index: 1, kind: input, shape index: {}]   ;;  %s8643_s2 = inlined_call_operand.vmem [shape: f32[1,128], index: 2, kind: input, shape index: {}]   ;;  %s8644_s3 = inlined_call_operand.vmem [shape: f32[1,128], index: 3, kind: input, shape index: {}]   ;;  %s8645_s4 = inlined_call_operand.vmem [shape: bf16[1152,128], index: 4, kind: input, shape index: {}]   ;;  %s8646_s5 = inlined_call_operand.vmem [shape: f32[1,128], index: 5, kind: input, shape index: {}]   ;;  %s8647_s6 = inlined_call_operand.vmem [shape: f32[1,128], index: 6, kind: input, shape index: {}]   ;;  %s8648_s7 = inlined_call_operand.hbm [shape: bf16[1152,128], index: 7, kind: input, shape index: {}]   ;;  %s8649_s8 = inlined_call_operand.vmem [shape: f32[1,128], index: 8, kind: input, shape index: {}]   ;;  %s8650_s9 = inlined_call_operand.vmem [shape: f32[1,128], index: 9, kind: input, shape index: {}]   ;;  %s8651_s10 = inlined_call_operand.hbm [shape: f32[2,64,128], index: 10, kind: output, shape index: {}]  }
   0x1   :  { %16 = vsyncpa [#allocation6], 0 }
   0x2   :  { %18 = vsyncpa [#allocation6 + $0x1], 0  ;;  %s7369_s13 = smov 0   ;;  %s7371_s14 = smov 0  }
   0x3   :  { %s7373_s15 = smov 0   ;;  %s7375_s16 = smov 0  }
   0x4 LB: > { %s7390_s17 = sadd.s32 4294967295, %s7298_s16   ;;  %s5717_s18 = sadd.s32 4294967294, %s7298_s16   ;;  %s7298_s16 = sphi %s7375_s16, %s8679_s16   ;;  %s7294_s15 = sphi %s7373_s15, %s8678_s15   ;;  %s7290_s14 = sphi %s7371_s14, %s8677_s14   ;;  %s7286_s13 = sphi %s7369_s13, %s8676_s13  }
   0x5   : > { %s7394_s19 = sadd.s32 1, %s7298_s16   ;;  %s246_s20 = sadd.s32 1, %s7294_s15 }
   0x6   : > { %s243_s21 = ssub.s32 %s7298_s16, %s7394_s19  ;;  %p256_p0 = scmp.ne.s32.totalorder %s7294_s15, %s7290_s14 }
   0x7   : > { %p244_p1 = scmp.eq.s32.totalorder %s243_s21, 0  ;;  %p257_p2 = scmp.eq.s32.totalorder %s7390_s17, 1 }
   0x8   : > { %p262_p3 = scmp.ne.s32.totalorder %s7290_s14, %s7286_s13  ;;  %p263_p4 = scmp.eq.s32.totalorder %s5717_s18, 1 }
   0x9   : > { %s7405_s22 = scalar_select %p244_p1, %s7294_s15, %s246_s20  }
   0xa   : > { %p7407_p5 = por %p257_p2, %p256_p0  ;;  %p7411_p6 = por %p263_p4, %p262_p3 }
   0xb   : > { %p5718_p7 = scmp.ge.s32.totalorder %s7298_s16, 1  ;;  %p270_p8 = scmp.lt.s32.totalorder %s7298_s16, 3 }
   0xc   : > { %s8656_s23 = scalar_select %p7407_p5, 1, 0 }
   0xd   : > { %s8657_s24 = scalar_select %p7411_p6, 1, 0 }
   0xe   : > { %p8652_p9 = scmp.eq.s32.totalorder %s7390_s17, 0  ;;  %p7418_p10 = pnand %p5718_p7, %p270_p8 }
   0xf   : > { %s7300_s26 = smov [#allocation4]   ;;  %s7204_s11 = scalar_lea.hbm %s8648_s7, 9216 }
  0x10   : > { %s8658_s25 = scalar_select %p7418_p10, 1, 0 }
  0x11   : > { %s300_s27 = sshll.u32 %s7300_s26, 4  ;;  %p6953_p11 = pneg %p7418_p10  ;;  %s301_s27 = int_to_ptr.vmem [resolvable:$true] %s300_s27 }
  0x12   : > { %p7205_p13 = scmp.ne.s32.totalorder %s8648_s7, %s7204_s11  ;;  %p7211_p3 = scmp.lt.u32.totalorder %s7204_s11, %s8648_s7 }
  0x13   : > { %p7426_p12 = pnand %p8652_p9, %p6953_p11 }
  0x15   : > { %p7206_p0 = pneg %p7426_p12 }
  0x17   : > { %p7207_p1 = pnand %p7206_p0, %p7205_p13 }
  0x19   : > { %p7208_p2 = pneg %p7207_p1 }
  0x1b   : > { %p7213_p4 = pnand %p7211_p3, %p7208_p2 }
  0x1d   : > { %7216 = shalt.err (!%p7213_p4)
}
  0x1e   : > { %s7217_s26 = scalar_lea.vmem %s301_s27, 9216  ;;  %p7225_p9 = scmp.lt.s32.totalorder %s301_s27, %s301_s27 }
  0x1f   : > { %p7218_p7 = scmp.ne.s32.totalorder %s301_s27, %s7217_s26  ;;  %p7226_p6 = scmp.lt.s32.totalorder %s7217_s26, %s7217_s26 }
  0x21   : > { %p7220_p8 = pnand %p7218_p7, %p7206_p0  ;;  %p7227_p5 = por %p7226_p6, %p7225_p9 }
  0x23   : > { %p7221_p11 = pneg %p7220_p8 }
  0x25   : > { %p7228_p10 = pnand %p7227_p5, %p7221_p11 }
  0x27   : > { %7231 = shalt.err (!%p7228_p10)
}
  0x28   : > { %s7301_s29 = smov 64   ;;  %s7302_s30 = smov 4  }
  0x29   : > { %6956 = dma.hbm_to_vmem [thread:$0]  (!%p7426_p12), %s8648_s7, 9216, %s301_s27, [#allocation5], %s7301_s29, %s7301_s29, %s7302_s30  }
  0x2a   : > { %p8660_p13 = scmp.ne.s32.totalorder %s8658_s25, 0 }
  0x2b   : > { %p8661_p1 = scmp.eq.s32.totalorder (!%p8660_p13), %s7390_s17, 0 }
  0x2c   : > { %330 = sbr.rel (%p8660_p13) target bundleno = 1490 (0x5d2), region = 60 }
  0x33   : > { %7277 = dma.done.wait (%p8661_p1), [#allocation5], 9216   ;;  %p8662_p0 = pmov %p8661_p1 }
  0x34   : > { %p368_p5 = scmp.lt.s32.totalorder %s7390_s17, 1  ;;  %vm473_vm0 = vsmask.f32 3328  ;;  %vm474_vm1 = vsmask.f32 7440  ;;  %s7303_s25 = smov 4  }
  0x35   : > { %7279 = vsyncadd (%p8662_p0), [#allocation5], 4294958080  ;;  %s7304_s27 = smov 12   ;;  %s7305_s29 = smov 16   ;;  %vm406_vm3 = vcmask 31744   ;;  %vm1152_vm4 = vcmask 1041408  }
  0x36   : > { %s369_s11 = scalar_select %p368_p5, %s7390_s17, 1  ;;  %vm7480_vm2 = vmor %vm473_vm0, %vm474_vm1  ;;  %vm452_vm5 = vcmask 64544   ;;  %vm612_vm6 = vcmask 97344   ;;  %vm658_vm7 = vcmask 130144   ;;  %vm704_vm8 = vcmask 162944   ;;  %v7201_v29 = vld [vmem:[#allocation4 + $0x228] sm:$0xff]  }
  0x37   : > { %s8655_s30 = smov 8   ;;  %s7309_s12 = smov 28   ;;  %vm861_vm9 = vcmask 195744   ;;  %vm907_vm10 = vcmask 228544   ;;  %vm953_vm11 = vcmask 261344   ;;  %vm1110_vm12 = vcmask 294144  }
  0x38   : > { %s6946_s20 = smul.u32 288, %s369_s11  ;;  %s7307_s11 = smov 20   ;;  %vm1139_vm13 = vcmask 293888   ;;  %vm1264_vm14 = vcmask 1040384   ;;  %vm1265_vm15 = vsmask.f32 256 }
  0x39   : > { %s7310_s18 = smov 32   ;;  %vm7669_vm0 = vmand %vm1264_vm14, %vm1265_vm15  ;;  %vm1297_vm1 = vsmask.f32 7938  ;;  %p8673_p9 = scmp.ne.s32.totalorder %s8656_s23, 0 }
  0x3a   : > { %s7457_s26 = scalar_lea.vmem %s8641_s0, %s6946_s20  ;;  %s7308_s20 = smov 24  }
  0x3b   : > { %v7009_v0 = vld [vmem:[%s7457_s26 + $0x48] ss:$8 sps:$4 sm:$0xff]   ;;  %v7011_v2 = vld [vmem:[%s7457_s26 + $0x58] ss:$8 sps:$4 sm:$0xff]   ;;  %v458_v6 = vld [vmem:[%s7457_s26 + $0x4] sm:$0x1] }
  0x3c   : > { %v7010_v1 = vld [vmem:[%s7457_s26 + $0xa0] ss:$8 sps:$4 sm:$0xff]   ;;  %440 = vrot.lane.b32.xlu0 %v7009_v0, %s7303_s25  ;;  %v7013_v4 = vld [vmem:[%s7457_s26 + $0x90] ss:$8 sps:$4 sm:$0xff]   ;;  %v460_v8 = vld [vmem:[%s7457_s26 + $0xc] sm:$0x1] }
  0x3d   : > { %648 = vrot.lane.b32.xlu1 %v7010_v1, %s7304_s27  ;;  %v7012_v3 = vld [vmem:[%s7457_s26 + $0xe8] ss:$8 sps:$4 sm:$0xff]   ;;  %v457_v5 = vld [vmem:[%s7457_s26] sm:$0xf]  ;;  %v486_v11 = vshll.u32 %v458_v6, 16  ;;  %v500_v14 = vshll.u32 %v460_v8, 16 }
  0x3e   : > { %v459_v7 = vld [vmem:[%s7457_s26 + $0x8] sm:$0xf]  ;;  %v477_v9 = vshrl.u32 %v457_v5, 16  ;;  %v480_v10 = vshll.u32 %v457_v5, 16  ;;  %v7014_v19 = vld [vmem:[%s7457_s26 + $0xd8] ss:$8 sps:$4 sm:$0xff]  }
  0x3f   : > { %v491_v12 = vshrl.u32 %v459_v7, 16  ;;  %v494_v13 = vshll.u32 %v459_v7, 16  ;;  %v488_v17 = vrot.slane %v486_v11, 5  ;;  %v502_v21 = vrot.slane %v500_v14, 5  ;;  %v461_v22 = vld [vmem:[%s7457_s26 + $0x10] sm:$0xf] }
  0x40   : > { %442 = vrot.lane.b32.xlu0 %v7011_v2, %s7303_s25  ;;  %v479_v15 = vrot.slane %v477_v9, 4  ;;  %v482_v16 = vrot.slane %v480_v10, 5  ;;  %v462_v23 = vld [vmem:[%s7457_s26 + $0x14] sm:$0x1]  ;;  %v463_v25 = vld [vmem:[%s7457_s26 + $0x18] sm:$0xf] }
  0x41   : > { %694 = vrot.lane.b32.xlu1 %v7012_v3, %s7305_s29  ;;  %v493_v18 = vrot.slane %v491_v12, 4  ;;  %v496_v20 = vrot.slane %v494_v13, 5  ;;  %v464_v26 = vld [vmem:[%s7457_s26 + $0x1c] sm:$0x1]  ;;  %v505_v27 = vshrl.u32 %v461_v22, 16  ;;  %v508_v28 = vshll.u32 %v461_v22, 16 }
  0x42   : > { %v483_v24 = vor.u32 %v482_v16, %v479_v15  ;;  %v514_v31 = vshll.u32 %v462_v23, 16  ;;  %v519_v32 = vshrl.u32 %v463_v25, 16  ;;  %v522_v33 = vshll.u32 %v463_v25, 16  ;;  %v5769_v34 = vld [vmem:[%s7457_s26 + $0x90] sm:$0xf] }
  0x43   : > { %v497_v30 = vor.u32 %v496_v20, %v493_v18  ;;  %v507_v36 = vrot.slane %v505_v27, 4  ;;  %v510_v37 = vrot.slane %v508_v28, 5  ;;  %v528_v38 = vshll.u32 %v464_v26, 16  ;;  %v5770_v39 = vld [vmem:[%s7457_s26 + $0x94] sm:$0x1] }
  0x44   : > { %646 = vrot.lane.b32.xlu0 %v7013_v4, %s7304_s27  ;;  %v484_v35 = vrot.slane %v483_v24, 4  ;;  %v516_v41 = vrot.slane %v514_v31, 5  ;;  %v521_v42 = vrot.slane %v519_v32, 4  ;;  %v524_v43 = vrot.slane %v522_v33, 5  ;;  %v5771_v44 = vld [vmem:[%s7457_s26 + $0x98] sm:$0xf] }
  0x45   : > { %v498_v40 = vrot.slane %v497_v30, 4  ;;  %v511_v46 = vor.u32 %v510_v37, %v507_v36  ;;  %v530_v47 = vrot.slane %v528_v38, 5  ;;  %v5772_v48 = vld [vmem:[%s7457_s26 + $0x9c] sm:$0x1]  ;;  %v726_v49 = vshrl.u32 %v5769_v34, 16 }
  0x46   : > { %v489_v45 = vsel %vm7480_vm2, %v484_v35, %v488_v17  ;;  %v525_v51 = vor.u32 %v524_v43, %v521_v42  ;;  %v729_v52 = vshll.u32 %v5769_v34, 16  ;;  %v735_v53 = vshll.u32 %v5770_v39, 16  ;;  %v5773_v54 = vld [vmem:[%s7457_s26 + $0xa0] sm:$0xf]  ;;  %v5774_v55 = vld [vmem:[%s7457_s26 + $0xa4] sm:$0x1] }
  0x47   : > { %v503_v50 = vsel %vm7480_vm2, %v498_v40, %v502_v21  ;;  %v512_v57 = vrot.slane %v511_v46, 4  ;;  %v728_v58 = vrot.slane %v726_v49, 4  ;;  %v740_v59 = vshrl.u32 %v5771_v44, 16  ;;  %v5775_v60 = vld [vmem:[%s7457_s26 + $0xa8] sm:$0xf]  ;;  %v7031_v42 = vld [vmem:[%s8642_s1] sm:$0xff]  }
  0x48   : > { %692 = vrot.lane.b32.xlu0 %v7014_v19, %s7305_s29  ;;  %v5741_v56 = vcombine.low %v489_v45, %v503_v50  ;;  %v526_v61 = vrot.slane %v525_v51, 4  ;;  %v731_v62 = vrot.slane %v729_v52, 5  ;;  %v737_v63 = vrot.slane %v735_v53, 5  ;;  %v5776_v8 = vld [vmem:[%s7457_s26 + $0xac] sm:$0x1]  ;;  %6371 = vmatprep.subr.bf16.mxu0 %v7031_v42 }
  0x49   : > { %v743_v0 = vshll.u32 %v5771_v44, 16  ;;  %v517_v1 = vsel %vm7480_vm2, %v512_v57, %v516_v41  ;;  %v742_v2 = vrot.slane %v740_v59, 4  ;;  %v749_v3 = vshll.u32 %v5772_v48, 16  ;;  %v5813_v30 = vld [vmem:[%s7457_s26 + $0x8] sm:$0xf]  ;;  %6372 = vmatpush3.bf16.msra.mxu0 %v7031_v42 }
  0x4a   : > { %600 = vrot.lane.b32.xlu1 %v5741_v56, %s8655_s30  ;;  %v754_v4 = vshrl.u32 %v5773_v54, 16  ;;  %v531_v5 = vsel %vm7480_vm2, %v526_v61, %v530_v47  ;;  %v732_v6 = vor.u32 %v731_v62, %v728_v58  ;;  %v757_v9 = vshll.u32 %v5773_v54, 16  ;;  %v7015_v33 = vld [vmem:[%s7457_s26 + $0x8] ss:$8 sps:$4 sm:$0xff]   ;;  %v5814_v34 = vld [vmem:[%s7457_s26 + $0xc] sm:$0x1] }
  0x4b   : > { %v745_v7 = vrot.slane %v743_v0, 5  ;;  %v5742_v10 = vcombine.low %v517_v1, %v531_v5  ;;  %v751_v11 = vrot.slane %v749_v3, 5  ;;  %v763_v13 = vshll.u32 %v5774_v55, 16  ;;  %v5815_v35 = vld [vmem:[%s7457_s26 + $0x10] sm:$0xf] }
  0x4c   : > { %v756_v12 = vrot.slane %v754_v4, 4  ;;  %v733_v14 = vrot.slane %v732_v6, 4  ;;  %v759_v16 = vrot.slane %v757_v9, 5  ;;  %v768_v17 = vshrl.u32 %v5775_v60, 16  ;;  %v5816_v36 = vld [vmem:[%s7457_s26 + $0x14] sm:$0x1] }
  0x4d   : > { %v746_v15 = vor.u32 %v745_v7, %v742_v2  ;;  %v765_v18 = vrot.slane %v763_v13, 5  ;;  %v771_v19 = vshll.u32 %v5775_v60, 16  ;;  %v777_v20 = vshll.u32 %v5776_v8, 16  ;;  %v5817_v41 = vld [vmem:[%s7457_s26 + $0x18] sm:$0xf]  ;;  %v7032_v4 = vld [vmem:[%s8642_s1 + $0x8] sm:$0xff]  }
  0x4e   : > { %602 = vrot.lane.b32.xlu1 %v5742_v10, %s8655_s30  ;;  %v738_v21 = vsel %vm7480_vm2, %v733_v14, %v737_v63  ;;  %v760_v23 = vor.u32 %v759_v16, %v756_v12  ;;  %v770_v24 = vrot.slane %v768_v17, 4  ;;  %v975_v38 = vshrl.u32 %v5813_v30, 16  ;;  %v5818_v47 = vld [vmem:[%s7457_s26 + $0x1c] sm:$0x1]  ;;  %v5819_v51 = vld [vmem:[%s7457_s26 + $0x20] sm:$0xf]  ;;  %6373 = vmatprep.subr.bf16.mxu0 %v7032_v4 }
  0x4f   : > { %v747_v22 = vrot.slane %v746_v15, 4  ;;  %v773_v25 = vrot.slane %v771_v19, 5  ;;  %v779_v28 = vrot.slane %v777_v20, 5  ;;  %v978_v39 = vshll.u32 %v5813_v30, 16  ;;  %v5820_v57 = vld [vmem:[%s7457_s26 + $0x24] sm:$0x1]  ;;  %6374 = vmatpush3.bf16.msra.mxu0 %v7032_v4 }
  0x50   : > { %v761_v27 = vrot.slane %v760_v23, 4  ;;  %v984_v40 = vshll.u32 %v5814_v34, 16  ;;  %v989_v44 = vshrl.u32 %v5815_v35, 16  ;;  %v992_v45 = vshll.u32 %v5815_v35, 16  ;;  %v7016_v59 = vld [vmem:[%s7457_s26 + $0x18] ss:$8 sps:$4 sm:$0xff]  }
  0x51   : > { %v752_v26 = vsel %vm7480_vm2, %v747_v22, %v751_v11  ;;  %v774_v32 = vor.u32 %v773_v25, %v770_v24  ;;  %v998_v46 = vshll.u32 %v5816_v36, 16  ;;  %v977_v48 = vrot.slane %v975_v38, 4  ;;  %v7017_v63 = vld [vmem:[%s7457_s26 + $0x50] ss:$8 sps:$4 sm:$0xff]   ;;  %v7018_v11 = vld [vmem:[%s7457_s26 + $0x60] ss:$8 sps:$4 sm:$0xff]  }
  0x52   : > { %v5785_v31 = vcombine.low %v738_v21, %v752_v26  ;;  %v766_v37 = vsel %vm7480_vm2, %v761_v27, %v765_v18  ;;  %v980_v49 = vrot.slane %v978_v39, 5  ;;  %v986_v50 = vrot.slane %v984_v40, 5  ;;  %v465_v16 = vld [vmem:[%s7457_s26 + $0x20] sm:$0xf]  ;;  %v466_v19 = vld [vmem:[%s7457_s26 + $0x24] sm:$0x1] }
  0x53   : > { %v775_v43 = vrot.slane %v774_v32, 4  ;;  %v1003_v52 = vshrl.u32 %v5817_v41, 16  ;;  %v991_v54 = vrot.slane %v989_v44, 4  ;;  %v994_v55 = vrot.slane %v992_v45, 5  ;;  %v467_v20 = vld [vmem:[%s7457_s26 + $0x28] sm:$0xf] }
  0x54   : > { %849 = vrot.lane.b32.xlu0 %v5785_v31, %s7307_s11  ;;  %v1000_v56 = vrot.slane %v998_v46, 5  ;;  %v981_v60 = vor.u32 %v980_v49, %v977_v48  ;;  %v1006_v62 = vshll.u32 %v5817_v41, 16  ;;  %v1012_v1 = vshll.u32 %v5818_v47, 16  ;;  %v468_v21 = vld [vmem:[%s7457_s26 + $0x2c] sm:$0x1] }
  0x55   : > { %v780_v53 = vsel %vm7480_vm2, %v775_v43, %v779_v28  ;;  %v1005_v61 = vrot.slane %v1003_v52, 4  ;;  %v995_v0 = vor.u32 %v994_v55, %v991_v54  ;;  %v1017_v2 = vshrl.u32 %v5819_v51, 16  ;;  %v469_v26 = vld [vmem:[%s7457_s26 + $0x30] sm:$0xf]  ;;  %v471_v38 = vld [vmem:[%s7457_s26 + $0x38] sm:$0xf] }
  0x56   : > { %v5786_v58 = vcombine.low %v766_v37, %v780_v53  ;;  %v1020_v3 = vshll.u32 %v5819_v51, 16  ;;  %v982_v5 = vrot.slane %v981_v60, 4  ;;  %v1008_v6 = vrot.slane %v1006_v62, 5  ;;  %v7019_v28 = vld [vmem:[%s7457_s26 + $0x68] ss:$8 sps:$4 sm:$0xff]  }
  0x57   : > { %v1026_v7 = vshll.u32 %v5820_v57, 16  ;;  %v996_v8 = vrot.slane %v995_v0, 4  ;;  %v1019_v9 = vrot.slane %v1017_v2, 4  ;;  %v1014_v14 = vrot.slane %v1012_v1, 5  ;;  %v472_v43 = vld [vmem:[%s7457_s26 + $0x3c] sm:$0x1] }
  0x58   : > { %895 = vrot.lane.b32.xlu0 %v7015_v33, %s7308_s20  ;;  %851 = vrot.lane.b32.xlu1 %v5786_v58, %s7307_s11  ;;  %v1022_v10 = vrot.slane %v1020_v3, 5  ;;  %v987_v12 = vsel %vm7480_vm2, %v982_v5, %v986_v50  ;;  %v1009_v13 = vor.u32 %v1008_v6, %v1005_v61  ;;  %v533_v24 = vshrl.u32 %v465_v16, 16  ;;  %v470_v33 = vld [vmem:[%s7457_s26 + $0x34] sm:$0x1]  ;;  %v7021_v4 = vld [vmem:[%s7457_s26 + $0xb0] ss:$8 sps:$4 sm:$0xff]  }
  0x59   : > { %v1028_v15 = vrot.slane %v1026_v7, 5  ;;  %v1001_v17 = vsel %vm7480_vm2, %v996_v8, %v1000_v56  ;;  %v536_v25 = vshll.u32 %v465_v16, 16  ;;  %v542_v30 = vshll.u32 %v466_v19, 16  ;;  %v5777_v5 = vld [vmem:[%s7457_s26 + $0xb0] sm:$0xf] }
  0x5a   : > { %v1023_v18 = vor.u32 %v1022_v10, %v1019_v9  ;;  %v5829_v22 = vcombine.low %v987_v12, %v1001_v17  ;;  %v1010_v23 = vrot.slane %v1009_v13, 4  ;;  %v547_v31 = vshrl.u32 %v467_v20, 16  ;;  %v5778_v7 = vld [vmem:[%s7457_s26 + $0xb4] sm:$0x1]  ;;  %v5779_v8 = vld [vmem:[%s7457_s26 + $0xb8] sm:$0xf] }
  0x5b   : > { %v550_v32 = vshll.u32 %v467_v20, 16  ;;  %v535_v35 = vrot.slane %v533_v24, 4  ;;  %v538_v36 = vrot.slane %v536_v25, 5  ;;  %v556_v37 = vshll.u32 %v468_v21, 16  ;;  %v5781_v19 = vld [vmem:[%s7457_s26 + $0xc0] sm:$0xf] }
  0x5c   : > { %941 = vrot.lane.b32.xlu0 %v7017_v63, %s7309_s12  ;;  %897 = vrot.lane.b32.xlu1 %v7016_v59, %s7308_s20  ;;  %v1024_v27 = vrot.slane %v1023_v18, 4  ;;  %v1015_v34 = vsel %vm7480_vm2, %v1010_v23, %v1014_v14  ;;  %v544_v40 = vrot.slane %v542_v30, 5  ;;  %v549_v41 = vrot.slane %v547_v31, 4  ;;  %v7020_v59 = vld [vmem:[%s7457_s26 + $0x78] ss:$8 sps:$4 sm:$0xff]  }
  0x5d   : > { %v552_v42 = vrot.slane %v550_v32, 5  ;;  %v539_v45 = vor.u32 %v538_v36, %v535_v35  ;;  %v558_v46 = vrot.slane %v556_v37, 5  ;;  %v561_v47 = vshrl.u32 %v469_v26, 16  ;;  %v7023_v21 = vld [vmem:[%s7457_s26 + $0xf8] ss:$8 sps:$4 sm:$0xff]  }
  0x5e   : > { %v1029_v39 = vsel %vm7480_vm2, %v1024_v27, %v1028_v15  ;;  %v564_v49 = vshll.u32 %v469_v26, 16  ;;  %v570_v50 = vshll.u32 %v470_v33, 16  ;;  %v575_v51 = vshrl.u32 %v471_v38, 16  ;;  %v5782_v25 = vld [vmem:[%s7457_s26 + $0xc4] sm:$0x1] }
  0x5f   : > { %v5830_v44 = vcombine.low %v1015_v34, %v1029_v39  ;;  %v553_v48 = vor.u32 %v552_v42, %v549_v41  ;;  %v540_v52 = vrot.slane %v539_v45, 4  ;;  %v563_v53 = vrot.slane %v561_v47, 4  ;;  %v7022_v27 = vld [vmem:[%s7457_s26 + $0xc0] ss:$8 sps:$4 sm:$0xff]   ;;  %v5784_v32 = vld [vmem:[%s7457_s26 + $0xcc] sm:$0x1] }
  0x60   : > { %1098 = vrot.lane.b32.xlu0 %v5829_v22, %s7310_s18  ;;  %943 = vrot.lane.b32.xlu1 %v7018_v11, %s7309_s12  ;;  %v578_v54 = vshll.u32 %v471_v38, 16  ;;  %v584_v55 = vshll.u32 %v472_v43, 16  ;;  %v566_v57 = vrot.slane %v564_v49, 5  ;;  %v577_v58 = vrot.slane %v575_v51, 4  ;;  %v5780_v11 = vld [vmem:[%s7457_s26 + $0xbc] sm:$0x1] }
  0x61   : > { %v554_v56 = vrot.slane %v553_v48, 4  ;;  %v545_v60 = vsel %vm7480_vm2, %v540_v52, %v544_v40  ;;  %v572_v0 = vrot.slane %v570_v50, 5  ;;  %v782_v9 = vshrl.u32 %v5777_v5, 16  ;;  %v5783_v31 = vld [vmem:[%s7457_s26 + $0xc8] sm:$0xf] }
  0x62   : > { %v580_v61 = vrot.slane %v578_v54, 5  ;;  %v567_v63 = vor.u32 %v566_v57, %v563_v53  ;;  %v586_v3 = vrot.slane %v584_v55, 5  ;;  %v785_v12 = vshll.u32 %v5777_v5, 16  ;;  %v5825_v5 = vld [vmem:[%s7457_s26 + $0x38] sm:$0xf] }
  0x63   : > { %v559_v62 = vsel %vm7480_vm2, %v554_v56, %v558_v46  ;;  %v791_v13 = vshll.u32 %v5778_v7, 16  ;;  %v796_v14 = vshrl.u32 %v5779_v8, 16  ;;  %v784_v16 = vrot.slane %v782_v9, 4  ;;  %v7025_v56 = vld [vmem:[%s7457_s26 + $0x28] ss:$8 sps:$4 sm:$0xff]  }
  0x64   : > { %444 = vrot.lane.b32.xlu0 %v7019_v28, %s7303_s25  ;;  %1100 = vrot.lane.b32.xlu1 %v5830_v44, %s7310_s18  ;;  %v5743_v1 = vcombine.low %v545_v60, %v559_v62  ;;  %v581_v2 = vor.u32 %v580_v61, %v577_v58  ;;  %v568_v6 = vrot.slane %v567_v63, 4  ;;  %v799_v17 = vshll.u32 %v5779_v8, 16  ;;  %v7024_v44 = vld [vmem:[%s7457_s26 + $0x108] ss:$8 sps:$4 sm:$0xff]   ;;  %v5824_v62 = vld [vmem:[%s7457_s26 + $0x34] sm:$0x1] }
  0x65   : > { %v805_v18 = vshll.u32 %v5780_v11, 16  ;;  %v787_v22 = vrot.slane %v785_v12, 5  ;;  %v793_v23 = vrot.slane %v791_v13, 5  ;;  %v798_v24 = vrot.slane %v796_v14, 4  ;;  %v5821_v58 = vld [vmem:[%s7457_s26 + $0x28] sm:$0xf] }
  0x66   : > { %v582_v10 = vrot.slane %v581_v2, 4  ;;  %v573_v15 = vsel %vm7480_vm2, %v568_v6, %v572_v0  ;;  %v801_v28 = vrot.slane %v799_v17, 5  ;;  %v810_v34 = vshrl.u32 %v5781_v19, 16  ;;  %v5823_v61 = vld [vmem:[%s7457_s26 + $0x30] sm:$0xf] }
  0x67   : > { %v807_v30 = vrot.slane %v805_v18, 5  ;;  %v788_v33 = vor.u32 %v787_v22, %v784_v16  ;;  %v813_v35 = vshll.u32 %v5781_v19, 16  ;;  %v819_v36 = vshll.u32 %v5782_v25, 16  ;;  %v7027_v7 = vld [vmem:[%s7457_s26 + $0x70] ss:$8 sps:$4 sm:$0xff]  }
  0x68   : > { %446 = vrot.lane.b32.xlu1 %v7020_v59, %s7303_s25  ;;  %604 = vrot.lane.b32.xlu0 %v5743_v1, %s8655_s30  ;;  %v587_v20 = vsel %vm7480_vm2, %v582_v10, %v586_v3  ;;  %v802_v37 = vor.u32 %v801_v28, %v798_v24  ;;  %v824_v38 = vshrl.u32 %v5783_v31, 16  ;;  %v827_v39 = vshll.u32 %v5783_v31, 16  ;;  %v5822_v59 = vld [vmem:[%s7457_s26 + $0x2c] sm:$0x1]  ;;  %v5826_v11 = vld [vmem:[%s7457_s26 + $0x3c] sm:$0x1] }
  0x69   : > { %v5744_v26 = vcombine.low %v573_v15, %v587_v20  ;;  %v833_v40 = vshll.u32 %v5784_v32, 16  ;;  %v789_v41 = vrot.slane %v788_v33, 4  ;;  %v812_v42 = vrot.slane %v810_v34, 4  ;;  %v7026_v12 = vld [vmem:[%s7457_s26 + $0x38] ss:$8 sps:$4 sm:$0xff]  }
  0x6a   : > { %v815_v43 = vrot.slane %v813_v35, 5  ;;  %v803_v45 = vrot.slane %v802_v37, 4  ;;  %v826_v46 = vrot.slane %v824_v38, 4  ;;  %v829_v47 = vrot.slane %v827_v39, 5  ;;  %v5827_v16 = vld [vmem:[%s7457_s26 + $0x40] sm:$0xf] }
  0x6b   : > { %v794_v48 = vsel %vm7480_vm2, %v789_v41, %v793_v23  ;;  %v821_v50 = vrot.slane %v819_v36, 5  ;;  %v835_v53 = vrot.slane %v833_v40, 5  ;;  %v1031_v63 = vshrl.u32 %v5821_v58, 16  ;;  %v5828_v20 = vld [vmem:[%s7457_s26 + $0x44] sm:$0x1] }
  0x6c   : > { %650 = vrot.lane.b32.xlu0 %v7021_v4, %s7304_s27  ;;  %606 = vrot.lane.b32.xlu1 %v5744_v26, %s8655_s30  ;;  %v816_v49 = vor.u32 %v815_v43, %v812_v42  ;;  %v808_v51 = vsel %vm7480_vm2, %v803_v45, %v807_v30  ;;  %v830_v52 = vor.u32 %v829_v47, %v826_v46  ;;  %v1034_v0 = vshll.u32 %v5821_v58, 16  ;;  %v7028_v31 = vld [vmem:[%s7457_s26 + $0x80] ss:$8 sps:$4 sm:$0xff]   ;;  %v7030_v42 = vld [vmem:[%s7457_s26 + $0x10] ss:$8 sps:$4 sm:$0xff]  }
  0x6d   : > { %v5787_v54 = vcombine.low %v794_v48, %v808_v51  ;;  %v1040_v2 = vshll.u32 %v5822_v59, 16  ;;  %v1045_v3 = vshrl.u32 %v5823_v61, 16  ;;  %v1048_v4 = vshll.u32 %v5823_v61, 16  ;;  %v7029_v35 = vld [vmem:[%s7457_s26] ss:$8 sps:$4 sm:$0xff]   ;;  %408 = vst.msk [vmem:[#allocation3 + $0x8] sm:$0xff] %vm406_vm3, %v7030_v42 }
  0x6e   : > { %v817_v55 = vrot.slane %v816_v49, 4  ;;  %v831_v57 = vrot.slane %v830_v52, 4  ;;  %v1033_v8 = vrot.slane %v1031_v63, 4  ;;  %v1036_v9 = vrot.slane %v1034_v0, 5  ;;  %407 = vst.msk [vmem:[#allocation3] sm:$0xff] %vm406_vm3, %v7029_v35 }
  0x6f   : > { %v1054_v10 = vshll.u32 %v5824_v62, 16  ;;  %v1042_v13 = vrot.slane %v1040_v2, 5  ;;  %v1047_v14 = vrot.slane %v1045_v3, 4  ;;  %v1050_v15 = vrot.slane %v1048_v4, 5  ;;  %v7033_v47 = vld [vmem:[%s7457_s26 + $0x20] ss:$8 sps:$4 sm:$0xff]  }
  0x70   : > { %696 = vrot.lane.b32.xlu0 %v7023_v21, %s7305_s29  ;;  %652 = vrot.lane.b32.xlu1 %v7022_v27, %s7304_s27  ;;  %v822_v60 = vsel %vm7480_vm2, %v817_v55, %v821_v50  ;;  %v836_v1 = vsel %vm7480_vm2, %v831_v57, %v835_v53  ;;  %v1059_v17 = vshrl.u32 %v5825_v5, 16  ;;  %v1037_v18 = vor.u32 %v1036_v9, %v1033_v8  ;;  %v7034_v49 = vld [vmem:[%s7457_s26 + $0x30] ss:$8 sps:$4 sm:$0xff]   ;;  %s6147_s26 = sshll.u32 %s7390_s17, 10 }
  0x71   : > { %v5788_v6 = vcombine.low %v822_v60, %v836_v1  ;;  %v1056_v19 = vrot.slane %v1054_v10, 5  ;;  %v1062_v21 = vshll.u32 %v5825_v5, 16  ;;  %v1068_v22 = vshll.u32 %v5826_v11, 16  ;;  %409 = vst.msk [vmem:[#allocation3 + $0x10] sm:$0xff] %vm406_vm3, %v7033_v47  ;;  %410 = vst.msk [vmem:[#allocation3 + $0x18] sm:$0xff] %vm406_vm3, %v7034_v49  ;;  %v7038_v47 = vld [vmem:[%s8645_s4 + $0x50] sm:$0xff]   ;;  %s8593_s21 = scalar_lea.hbm %s8651_s10, %s6147_s26 }
  0x72   : > { %v1051_v23 = vor.u32 %v1050_v15, %v1047_v14  ;;  %v1061_v24 = vrot.slane %v1059_v17, 4  ;;  %v1073_v25 = vshrl.u32 %v5827_v16, 16  ;;  %v1076_v26 = vshll.u32 %v5827_v16, 16  ;;  %v7035_v51 = vld [vmem:[%s8642_s1 + $0x10] ss:$0 sps:$4 sm:$0x33]   ;;  %vm7676_vm3 = vmand %vm1264_vm14, %vm1297_vm1 }
  0x73   : > { %v1038_v27 = vrot.slane %v1037_v18, 4  ;;  %v1064_v28 = vrot.slane %v1062_v21, 5  ;;  %v1082_v30 = vshll.u32 %v5828_v20, 16  ;;  %v1070_v38 = vrot.slane %v1068_v22, 5  ;;  %6945 = vmatprep.subr.msk.bf16.mxu0 %vm1152_vm4, %v7035_v51 }
  0x74   : > { %853 = vrot.lane.b32.xlu0 %v5787_v54, %s7307_s11  ;;  %698 = vrot.lane.b32.xlu1 %v7024_v44, %s7305_s29  ;;  %v1052_v32 = vrot.slane %v1051_v23, 4  ;;  %v1075_v33 = vrot.slane %v1073_v25, 4  ;;  %v1078_v34 = vrot.slane %v1076_v26, 5  ;;  %v1154_v52 = vsel %vm1152_vm4, %v7035_v51, 0  ;;  %v1276_v25 = vld [vmem:[#allocation2 + $0x18] sm:$0x1] }
  0x75   : > { %v1043_v36 = vsel %vm7480_vm2, %v1038_v27, %v1042_v13  ;;  %v1065_v37 = vor.u32 %v1064_v28, %v1061_v24  ;;  %v1084_v39 = vrot.slane %v1082_v30, 5  ;;  %6376 = vmatpush3.bf16.msra.mxu0 %v1154_v52  ;;  %v7036_v26 = vld [vmem:[%s8645_s4 + $0x40] sm:$0xff]   ;;  %v1308_v28 = vld [vmem:[#allocation2 + $0x1c] sm:$0x1]  ;;  %v1277_v30 = vsel %vm7669_vm0, 0, %v1276_v25 }
  0x76   : > { %v1057_v40 = vsel %vm7480_vm2, %v1052_v32, %v1056_v19  ;;  %v1079_v41 = vor.u32 %v1078_v34, %v1075_v33  ;;  %v1270_v32 = vld [vmem:[#allocation2 + $0x8] sm:$0x1]  ;;  %v1302_v33 = vld [vmem:[#allocation2 + $0xc] sm:$0x1]  ;;  %6385 = vmatprep.subr.bf16.mxu1 %v7036_v26  ;;  %1278 = vst [vmem:[#allocation2 + $0x18] sm:$0x1] %v1277_v30 }
  0x77   : > { %v5831_v43 = vcombine.low %v1043_v36, %v1057_v40  ;;  %v1066_v44 = vrot.slane %v1065_v37, 4  ;;  %v1309_v34 = vsel %vm7676_vm3, 0, %v1308_v28  ;;  %v1271_v35 = vsel %vm7669_vm0, 0, %v1270_v32  ;;  %v1279_v37 = vld [vmem:[#allocation2 + $0x20] sm:$0x1]  ;;  %6386 = vmatpush3.bf16.msra.mxu1 %v7036_v26 }
  0x78   : > { %899 = vrot.lane.b32.xlu0 %v7025_v56, %s7308_s20  ;;  %855 = vrot.lane.b32.xlu1 %v5788_v6, %s7307_s11  ;;  %v1080_v45 = vrot.slane %v1079_v41, 4  ;;  %v1303_v36 = vsel %vm7676_vm3, 0, %v1302_v33  ;;  %1310 = vst [vmem:[#allocation2 + $0x1c] sm:$0x1] %v1309_v34  ;;  %1272 = vst [vmem:[#allocation2 + $0x8] sm:$0x1] %v1271_v35 }
  0x79   : > { %v1071_v46 = vsel %vm7480_vm2, %v1066_v44, %v1070_v38  ;;  %1304 = vst [vmem:[#allocation2 + $0xc] sm:$0x1] %v1303_v36  ;;  %v1280_v38 = vsel %vm7669_vm0, 0, %v1279_v37  ;;  %v1273_v40 = vld [vmem:[#allocation2 + $0x10] sm:$0x1]  ;;  %v7037_v41 = vld [vmem:[%s8645_s4 + $0x48] sm:$0xff]  }
  0x7a   : > { %v1085_v48 = vsel %vm7480_vm2, %v1080_v45, %v1084_v39  ;;  %v1311_v39 = vld [vmem:[#allocation2 + $0x24] sm:$0x1]  ;;  %v7311_v42 = vmov 0   ;;  %1281 = vst [vmem:[#allocation2 + $0x20] sm:$0x1] %v1280_v38  ;;  %v1274_v44 = vsel %vm7669_vm0, 0, %v1273_v40  ;;  %6387 = vmatprep.subr.bf16.mxu1 %v7037_v41 }
  0x7b   : > { %v5832_v50 = vcombine.low %v1071_v46, %v1085_v48  ;;  %1259 = vst [vmem:[#allocation2] sm:$0xf] %v7311_v42  ;;  %1260 = vst [vmem:[#allocation2 + $0x4] sm:$0x1] %v7311_v42  ;;  %v1305_v45 = vld [vmem:[#allocation2 + $0x14] sm:$0x1]  ;;  %6388 = vmatpush3.bf16.msra.mxu1 %v7037_v41 }
  0x7c   : > { %945 = vrot.lane.b32.xlu0 %v7027_v7, %s7309_s12  ;;  %901 = vrot.lane.b32.xlu1 %v7026_v12, %s7308_s20  ;;  %1262 = vst [vmem:[#allocation2 + $0x48] sm:$0xf] %v7311_v42  ;;  %1263 = vst [vmem:[#allocation2 + $0x4c] sm:$0x1] %v7311_v42  ;;  %v1306_v46 = vsel %vm7676_vm3, 0, %v1305_v45  ;;  %v7039_v48 = vld [vmem:[%s8645_s4 + $0x58] sm:$0xff]  }
  0x7d   : > { %1275 = vst [vmem:[#allocation2 + $0x10] sm:$0x1] %v1274_v44  ;;  %1307 = vst [vmem:[#allocation2 + $0x14] sm:$0x1] %v1306_v46  ;;  %6389 = vmatprep.subr.bf16.mxu1 %v7038_v47  ;;  %v7040_v51 = vld [vmem:[%s8645_s4 + $0x60] sm:$0xff]   ;;  %vm1434_vm4 = vcmask 1043456  }
  0x7e   : > { %s365_s11 = sand.u32 1, %s7290_s14  }
  0x7f   : > { %6390 = vmatpush3.bf16.msra.mxu1 %v7038_v47  ;;  %v1451_v40 = vld [vmem:[#allocation2 + $0x1c] sm:$0x1]  ;;  %v1436_v45 = vld [vmem:[#allocation2 + $0x8] sm:$0xf]  ;;  %s8599_s17 = scalar_lea.sflag [#allocation6], %s365_s11 }
  0x80   : > { %1102 = vrot.lane.b32.xlu0 %v5831_v43, %s7310_s18  ;;  %947 = vrot.lane.b32.xlu1 %v7028_v31, %s7309_s12  ;;  %v1312_v43 = vsel %vm7676_vm3, 0, %v1311_v39  ;;  %v1448_v39 = vld [vmem:[#allocation2 + $0x18] sm:$0xf]  ;;  %s7312_s12 = smov [#allocation7]  }
  0x81   : > { %1313 = vst [vmem:[#allocation2 + $0x24] sm:$0x1] %v1312_v43  ;;  %6391 = vmatprep.subr.bf16.mxu1 %v7039_v48 }
  0x82   : > { %v1267_v49 = vld [vmem:[#allocation2] sm:$0x1]  ;;  %v1299_v52 = vld [vmem:[#allocation2 + $0x4] sm:$0x1] }
  0x83   : > { %6392 = vmatpush3.bf16.msra.mxu1 %v7039_v48 }
  0x84   : > { %1104 = vrot.lane.b32.xlu1 %v5832_v50, %s7310_s18  ;;  %v1268_v50 = vsel %vm7669_vm0, 0, %v1267_v49  ;;  %6393 = vmatprep.subr.bf16.mxu1 %v7040_v51  ;;  %s5723_s18 = sshll.u32 %s365_s11, 6 }
  0x85   : > { %1269 = vst [vmem:[#allocation2] sm:$0x1] %v1268_v50  ;;  %s8578_s25 = scalar_lea.vmem [#allocation7], %s5723_s18  ;;  %s7236_s18 = sshll.u32 %s7312_s12, 4  ;;  %s7237_s18 = int_to_ptr.vmem [resolvable:$false] %s7236_s18 }
  0x86   : > { %s5643_s27 = sshll.u32 %s8578_s25, 4  ;;  %s7238_s30 = scalar_lea.vmem %s7237_s18, 2048  ;;  %s8586_s27 = int_to_ptr.vmem [resolvable:$true] %s5643_s27 }
  0x87   : > { %6394 = vmatpush3.bf16.msra.mxu1 %v7040_v51  ;;  %v1439_v51 = vld [vmem:[#allocation2 + $0xc] sm:$0x1]  ;;  %s7232_s28 = scalar_lea.vmem %s8586_s27, 1024  ;;  %p7239_p2 = scmp.lt.s32.totalorder %s8586_s27, %s7237_s18 }
  0x88   : > { %p7233_p6 = scmp.ne.s32.totalorder %s8586_s27, %s7232_s28  ;;  %p7240_p3 = scmp.lt.s32.totalorder %s7238_s30, %s7232_s28 }
  0x8a   : > { %p7234_p10 = pnand %p7233_p6, %p8673_p9  ;;  %p7241_p4 = por %p7240_p3, %p7239_p2 }
  0x8c   : > { %v7763_v36 = vld [vmem:[#allocation2] sm:$0xf]  ;;  %p7235_p12 = pneg %p7234_p10 }
  0x8d   : > { %v1517_v47 = vshrl.u32 %v7763_v36, 16 }
  0x8e   : > { %p7242_p7 = pnand %p7241_p4, %p7235_p12 }
  0xae   : > { %v441_v53 = vpop.permute.xlu0 %440 }
  0xaf   : > { %453 = vst.msk [vmem:[#allocation3] sm:$0xff] %vm452_vm5, %v441_v53  ;;  %v649_v54 = vpop.permute.xlu1 %648  ;;  %v7041_v53 = vld [vmem:[%s8645_s4 + $0x68] sm:$0xff]  }
  0xb0   : > { %6395 = vmatprep.subr.bf16.mxu1 %v7041_v53 }
  0xb1   : > { %6396 = vmatpush3.bf16.msra.mxu1 %v7041_v53  ;;  %v1520_v53 = vshll.u32 %v7763_v36, 16 }
  0xb2   : > { %v443_v55 = vpop.permute.xlu0 %442 }
  0xb3   : > { %454 = vst.msk [vmem:[#allocation3 + $0x8] sm:$0xff] %vm452_vm5, %v443_v55  ;;  %v695_v56 = vpop.permute.xlu1 %694  ;;  %v7042_v55 = vld [vmem:[%s8645_s4 + $0x70] sm:$0xff]  }
  0xb4   : > { %6397 = vmatprep.subr.bf16.mxu1 %v7042_v55 }
  0xb5   : > { %6398 = vmatpush3.bf16.msra.mxu1 %v7042_v55 }
  0xb6   : > { %v647_v57 = vpop.permute.xlu0 %646 }
  0xba   : > { %v693_v59 = vpop.permute.xlu0 %692 }
  0xbc   : > { %v601_v58 = vpop.permute.xlu1 %600 }
  0xbd   : > { %613 = vst.msk [vmem:[#allocation3] sm:$0xff] %vm612_vm6, %v601_v58  ;;  %v1320_v58 = vld [vmem:[#allocation2 + $0x3c] sm:$0x1] }
  0xbe   : > { %659 = vst.msk [vmem:[#allocation3] sm:$0xff] %vm658_vm7, %v647_v57  ;;  %v1288_v57 = vld [vmem:[#allocation2 + $0x38] sm:$0x1] }
  0xbf   : > { %705 = vst.msk [vmem:[#allocation3] sm:$0xff] %vm704_vm8, %v693_v59  ;;  %v1289_v59 = vsel %vm7669_vm0, 0, %v1288_v57 }
  0xc0   : > { %v603_v60 = vpop.permute.xlu1 %602  ;;  %1290 = vst [vmem:[#allocation2 + $0x38] sm:$0x1] %v1289_v59 }
  0xc1   : > { %614 = vst.msk [vmem:[#allocation3 + $0x8] sm:$0xff] %vm612_vm6, %v603_v60  ;;  %v1321_v60 = vsel %vm7676_vm3, 0, %v1320_v58  ;;  %v1454_v58 = vld [vmem:[#allocation2 + $0x20] sm:$0xf] }
  0xc2   : > { %660 = vst.msk [vmem:[#allocation3 + $0x8] sm:$0xff] %vm658_vm7, %v649_v54  ;;  %v1300_v54 = vsel %vm7676_vm3, 0, %v1299_v52  ;;  %1322 = vst [vmem:[#allocation2 + $0x3c] sm:$0x1] %v1321_v60 }
  0xc3   : > { %706 = vst.msk [vmem:[#allocation3 + $0x8] sm:$0xff] %vm704_vm8, %v695_v56  ;;  %1301 = vst [vmem:[#allocation2 + $0x4] sm:$0x1] %v1300_v54  ;;  %v7043_v56 = vld [vmem:[%s8645_s4 + $0x78] sm:$0xff]  }
  0xc4   : > { %6399 = vmatprep.subr.bf16.mxu1 %v7043_v56 }
  0xc5   : > { %6400 = vmatpush3.bf16.msra.mxu1 %v7043_v56 }
  0xc6   : > { %v850_v61 = vpop.permute.xlu0 %849 }
  0xc7   : > { %862 = vst.msk [vmem:[#allocation3] sm:$0xff] %vm861_vm9, %v850_v61  ;;  %v1282_v61 = vld [vmem:[#allocation2 + $0x28] sm:$0x1] }
  0xca   : > { %v896_v62 = vpop.permute.xlu0 %895  ;;  %v852_v63 = vpop.permute.xlu1 %851 }
  0xcb   : > { %908 = vst.msk [vmem:[#allocation3] sm:$0xff] %vm907_vm10, %v896_v62  ;;  %v1314_v62 = vld [vmem:[#allocation2 + $0x2c] sm:$0x1] }
  0xcc   : > { %863 = vst.msk [vmem:[#allocation3 + $0x8] sm:$0xff] %vm861_vm9, %v852_v63  ;;  %v1283_v63 = vsel %vm7669_vm0, 0, %v1282_v61  ;;  %v1457_v61 = vld [vmem:[#allocation2 + $0x24] sm:$0x1] }
  0xcd   : > { %1284 = vst [vmem:[#allocation2 + $0x28] sm:$0x1] %v1283_v63 }
  0xce   : > { %v942_v0 = vpop.permute.xlu0 %941  ;;  %v898_v1 = vpop.permute.xlu1 %897 }
  0xcf   : > { %954 = vst.msk [vmem:[#allocation3] sm:$0xff] %vm953_vm11, %v942_v0  ;;  %v1315_v0 = vsel %vm7676_vm3, 0, %v1314_v62 }
  0xd0   : > { %909 = vst.msk [vmem:[#allocation3 + $0x8] sm:$0xff] %vm907_vm10, %v898_v1  ;;  %v1291_v1 = vld [vmem:[#allocation2 + $0x40] sm:$0x1]  ;;  %1316 = vst [vmem:[#allocation2 + $0x2c] sm:$0x1] %v1315_v0 }
  0xd2   : > { %v1099_v2 = vpop.permute.xlu0 %1098  ;;  %v944_v3 = vpop.permute.xlu1 %943 }
  0xd3   : > { %1111 = vst.msk [vmem:[#allocation3] sm:$0xff] %vm1110_vm12, %v1099_v2  ;;  %v1323_v2 = vld [vmem:[#allocation2 + $0x44] sm:$0x1] }
  0xd4   : > { %955 = vst.msk [vmem:[#allocation3 + $0x8] sm:$0xff] %vm953_vm11, %v944_v3  ;;  %v1292_v3 = vsel %vm7669_vm0, 0, %v1291_v1 }
  0xd5   : > { %1293 = vst [vmem:[#allocation2 + $0x40] sm:$0x1] %v1292_v3 }
  0xd6   : > { %v445_v4 = vpop.permute.xlu0 %444  ;;  %v1101_v5 = vpop.permute.xlu1 %1100 }
  0xd7   : > { %455 = vst.msk [vmem:[#allocation3 + $0x10] sm:$0xff] %vm452_vm5, %v445_v4  ;;  %v1324_v4 = vsel %vm7676_vm3, 0, %v1323_v2 }
  0xd8   : > { %1112 = vst.msk [vmem:[#allocation3 + $0x8] sm:$0xff] %vm1110_vm12, %v1101_v5  ;;  %v1285_v5 = vld [vmem:[#allocation2 + $0x30] sm:$0x1]  ;;  %1325 = vst [vmem:[#allocation2 + $0x44] sm:$0x1] %v1324_v4 }
  0xd9   : > { %v1442_v4 = vld [vmem:[#allocation2 + $0x10] sm:$0xf] }
  0xda   : > { %v1115_v6 = vld [vmem:[#allocation3] sm:$0xff]  ;;  %v447_v7 = vpop.permute.xlu1 %446  ;;  %v605_v8 = vpop.permute.xlu0 %604 }
  0xdb   : > { %6377 = vmatprep.mubr.msk.bf16.mxu0 %vm1139_vm13, %v1115_v6  ;;  %456 = vst.msk [vmem:[#allocation3 + $0x18] sm:$0xff] %vm452_vm5, %v447_v7  ;;  %v1317_v6 = vld [vmem:[#allocation2 + $0x34] sm:$0x1]  ;;  %v1286_v7 = vsel %vm7669_vm0, 0, %v1285_v5  ;;  %vm7767_vm5 = vmand %vm1434_vm4, %vm1297_vm1 }
  0xdc   : > { %615 = vst.msk [vmem:[#allocation3 + $0x10] sm:$0xff] %vm612_vm6, %v605_v8  ;;  %v1318_v8 = vsel %vm7676_vm3, 0, %v1317_v6  ;;  %1287 = vst [vmem:[#allocation2 + $0x30] sm:$0x1] %v1286_v7  ;;  %v1445_v5 = vld [vmem:[#allocation2 + $0x14] sm:$0x1] }
  0xdd   : > { %1319 = vst [vmem:[#allocation2 + $0x34] sm:$0x1] %v1318_v8 }
  0xde   : > { %v651_v10 = vpop.permute.xlu0 %650  ;;  %v607_v11 = vpop.permute.xlu1 %606 }
  0xdf   : > { %v1116_v9 = vld [vmem:[#allocation3 + $0x8] sm:$0xff]  ;;  %661 = vst.msk [vmem:[#allocation3 + $0x10] sm:$0xff] %vm658_vm7, %v651_v10  ;;  %v1294_v10 = vld [vmem:[#allocation2 + $0x48] sm:$0x1] }
  0xe0   : > { %6378 = vmatmul.mubr.msk.bf16.vlgmr.msra.gmra.mrb[0].mxu0 %vm1139_vm13, %v1116_v9  ;;  %616 = vst.msk [vmem:[#allocation3 + $0x18] sm:$0xff] %vm612_vm6, %v607_v11  ;;  %v7738_v9 = vld [vmem:[%s8645_s4] sm:$0xff]   ;;  %v1295_v11 = vsel %vm7669_vm0, 0, %v1294_v10  ;;  %vm1934_vm6 = vcmask 1042432  }
  0xe1   : > { %6409 = vmatprep.subr.bf16.mxu1 %v7738_v9  ;;  %1296 = vst [vmem:[#allocation2 + $0x48] sm:$0x1] %v1295_v11 }
  0xe2   : > { %v697_v12 = vpop.permute.xlu0 %696  ;;  %v653_v13 = vpop.permute.xlu1 %652 }
  0xe3   : > { %707 = vst.msk [vmem:[#allocation3 + $0x10] sm:$0xff] %vm704_vm8, %v697_v12  ;;  %v1326_v12 = vld [vmem:[#allocation2 + $0x4c] sm:$0x1] }
  0xe4   : > { %662 = vst.msk [vmem:[#allocation3 + $0x18] sm:$0xff] %vm658_vm7, %v653_v13  ;;  %v1327_v13 = vsel %vm7676_vm3, 0, %v1326_v12  ;;  %vm1935_vm7 = vcmask 1046532  }
  0xe5   : > { %1328 = vst [vmem:[#allocation2 + $0x4c] sm:$0x1] %v1327_v13  ;;  %v1519_v13 = vrot.slane %v1517_v47, 4 }
  0xe6   : > { %v854_v14 = vpop.permute.xlu0 %853  ;;  %v699_v15 = vpop.permute.xlu1 %698 }
  0xe7   : > { %864 = vst.msk [vmem:[#allocation3 + $0x10] sm:$0xff] %vm861_vm9, %v854_v14  ;;  %v7748_v14 = vld [vmem:[%s8643_s2] ss:$0 sm:$0xff] }
  0xe8   : > { %708 = vst.msk [vmem:[#allocation3 + $0x18] sm:$0xff] %vm704_vm8, %v699_v15  ;;  %vm7916_vm8 = vmor %vm1934_vm6, %vm1935_vm7 }
  0xea   : > { %v900_v16 = vpop.permute.xlu0 %899  ;;  %v856_v17 = vpop.permute.xlu1 %855 }
  0xeb   : > { %910 = vst.msk [vmem:[#allocation3 + $0x10] sm:$0xff] %vm907_vm10, %v900_v16  ;;  %v7753_v16 = vld [vmem:[%s8644_s3] ss:$0 sm:$0xff] }
  0xec   : > { %865 = vst.msk [vmem:[#allocation3 + $0x18] sm:$0xff] %vm861_vm9, %v856_v17 }
  0xee   : > { %v946_v18 = vpop.permute.xlu0 %945  ;;  %v902_v19 = vpop.permute.xlu1 %901 }
  0xef   : > { %956 = vst.msk [vmem:[#allocation3 + $0x10] sm:$0xff] %vm953_vm11, %v946_v18 }
  0xf0   : > { %911 = vst.msk [vmem:[#allocation3 + $0x18] sm:$0xff] %vm907_vm10, %v902_v19 }
  0xf2   : > { %v1103_v20 = vpop.permute.xlu0 %1102  ;;  %v948_v21 = vpop.permute.xlu1 %947 }
  0xf3   : > { %1113 = vst.msk [vmem:[#allocation3 + $0x10] sm:$0xff] %vm1110_vm12, %v1103_v20 }
  0xf4   : > { %957 = vst.msk [vmem:[#allocation3 + $0x18] sm:$0xff] %vm953_vm11, %v948_v21 }
  0xf6   : > { %v1105_v22 = vpop.permute.xlu1 %1104 }
  0xf7   : > { %1114 = vst.msk [vmem:[#allocation3 + $0x18] sm:$0xff] %vm1110_vm12, %v1105_v22 }
  0xfa   : > { %v1117_v23 = vld [vmem:[#allocation3 + $0x10] sm:$0xff] }
  0xfb   : > { %6381 = vmatprep.mubr.msk.bf16.mxu0 %vm1139_vm13, %v1117_v23 }
  0xfe   : > { %v1118_v24 = vld [vmem:[#allocation3 + $0x18] sm:$0xff] }
  0xff   : > { %6382 = vmatmul.mubr.msk.bf16.gmra.mrb[4].mxu0 %vm1139_vm13, %v1118_v24 }
 0x1b3   : > { %v6379_v15 = vpop.f32.mrb[0].mxu0 }
 0x1b4   : > { %v1230_v17 = vmul.f32 %v6379_v15, %v7748_v14  ;;  %v1190_v18 = vpop.f32.mrb[1].mxu0  ;;  %v1522_v15 = vrot.slane %v1520_v53, 5 }
 0x1b5   : > { %v1228_v19 = vmul.f32 %v7748_v14, %v1190_v18  ;;  %v6380_v20 = vpop.f32.mrb[2].mxu0 }
 0x1b6   : > { %v1245_v21 = vadd.f32 %v7753_v16, %v1230_v17  ;;  %v1231_v22 = vmul.f32 %v6380_v20, %v7748_v14  ;;  %v1193_v23 = vpop.f32.mrb[3].mxu0  ;;  %v1523_v20 = vor.u32 %v1522_v15, %v1519_v13 }
 0x1b7   : > { %v1243_v24 = vadd.f32 %v7753_v16, %v1228_v19  ;;  %v1229_v25 = vmul.f32 %v7748_v14, %v1193_v23  ;;  %v7788_v19 = vld [vmem:[#allocation2 + $0x4] sm:$0x1] }
 0x1b8   : > { %v1253_v26 = vmax.f32 %v1245_v21, 0.0  ;;  %v1246_v28 = vadd.f32 %v7753_v16, %v1231_v22  ;;  %v1526_v21 = vshll.u32 %v7788_v19, 16 }
 0x1b9   : > { %v1251_v30 = vmax.f32 %v1243_v24, 0.0  ;;  %v1244_v31 = vadd.f32 %v7753_v16, %v1229_v25 }
 0x1ba   : > { %v6133_v32 = vpack.c.bf16 %v1253_v26, %v1253_v26  ;;  %v1254_v33 = vmax.f32 %v1246_v28, 0.0  ;;  %v1524_v28 = vrot.slane %v1523_v20, 4 }
 0x1bb   : > { %v6131_v34 = vpack.c.bf16 %v1251_v30, %v1251_v30  ;;  %v1252_v35 = vmax.f32 %v1244_v31, 0.0  ;;  %v1528_v30 = vrot.slane %v1526_v21, 5 }
 0x1bc   : > { %v1370_v37 = vshrl.u32 %v6133_v32, 16  ;;  %v6134_v38 = vpack.c.bf16 %v1254_v33, %v1254_v33  ;;  %v1373_v44 = vshll.u32 %v6133_v32, 16 }
 0x1bd   : > { %v1354_v41 = vshrl.u32 %v6131_v34, 16  ;;  %v6132_v42 = vpack.c.bf16 %v1252_v35, %v1252_v35  ;;  %v1357_v50 = vshll.u32 %v6131_v34, 16 }
 0x1be   : > { %v1372_v43 = vrot.slane %v1370_v37, 7  ;;  %v1378_v46 = vshrl.u32 %v6134_v38, 16  ;;  %v1381_v57 = vshll.u32 %v6134_v38, 16 }
 0x1bf   : > { %v1356_v49 = vrot.slane %v1354_v41, 7  ;;  %v1362_v52 = vshrl.u32 %v6132_v42, 16  ;;  %v1365_v63 = vshll.u32 %v6132_v42, 16 }
 0x1c0   : > { %v1375_v54 = vor.u32 %v1373_v44, %v1372_v43  ;;  %v1376_v55 = vrot.slane %v1372_v43, 4  ;;  %v1380_v56 = vrot.slane %v1378_v46, 7 }
 0x1c1   : > { %v1359_v59 = vor.u32 %v1357_v50, %v1356_v49  ;;  %v1360_v60 = vrot.slane %v1356_v49, 4  ;;  %v1364_v62 = vrot.slane %v1362_v52, 7 }
 0x1c2   : > { %v1449_v0 = vsel %vm7767_vm5, %v1375_v54, %v1448_v39  ;;  %v1452_v1 = vsel %vm7669_vm0, %v1376_v55, %v1451_v40  ;;  %v1383_v2 = vor.u32 %v1381_v57, %v1380_v56  ;;  %v1384_v3 = vrot.slane %v1380_v56, 4 }
 0x1c3   : > { %1450 = vst [vmem:[#allocation2 + $0x18] sm:$0xf] %v1449_v0  ;;  %1453 = vst [vmem:[#allocation2 + $0x1c] sm:$0x1] %v1452_v1  ;;  %v1437_v6 = vsel %vm7767_vm5, %v1359_v59, %v1436_v45  ;;  %v1440_v7 = vsel %vm7669_vm0, %v1360_v60, %v1439_v51  ;;  %v1367_v8 = vor.u32 %v1365_v63, %v1364_v62  ;;  %v1368_v10 = vrot.slane %v1364_v62, 4 }
 0x1c4   : > { %1438 = vst [vmem:[#allocation2 + $0x8] sm:$0xf] %v1437_v6  ;;  %1441 = vst [vmem:[#allocation2 + $0xc] sm:$0x1] %v1440_v7  ;;  %v1455_v11 = vsel %vm7767_vm5, %v1383_v2, %v1454_v58  ;;  %v1458_v12 = vsel %vm7669_vm0, %v1384_v3, %v1457_v61  ;;  %v1529_v51 = vsel %vm7480_vm2, %v1524_v28, %v1528_v30  ;;  %v1472_v30 = vld [vmem:[#allocation2 + $0x38] sm:$0xf] }
 0x1c5   : > { %1456 = vst [vmem:[#allocation2 + $0x20] sm:$0xf] %v1455_v11  ;;  %1459 = vst [vmem:[#allocation2 + $0x24] sm:$0x1] %v1458_v12  ;;  %v1443_v17 = vsel %vm7767_vm5, %v1367_v8, %v1442_v4  ;;  %v1446_v18 = vsel %vm7669_vm0, %v1368_v10, %v1445_v5  ;;  %v7045_v11 = vld [vmem:[%s8645_s4 + $0x8] sm:$0xff]  }
 0x1c6   : > { %1444 = vst [vmem:[#allocation2 + $0x10] sm:$0xf] %v1443_v17  ;;  %1447 = vst [vmem:[#allocation2 + $0x14] sm:$0x1] %v1446_v18 }
 0x1ca   : > { %v7791_v22 = vld [vmem:[#allocation2 + $0x18] sm:$0xf]  ;;  %v7803_v34 = vld [vmem:[#allocation2 + $0x1c] sm:$0x1] }
 0x1cb   : > { %v7793_v23 = vld [vmem:[#allocation2 + $0x8] sm:$0xf]  ;;  %v7795_v24 = vld [vmem:[#allocation2 + $0xc] sm:$0x1]  ;;  %v1559_v25 = vshrl.u32 %v7791_v22, 16  ;;  %v1562_v26 = vshll.u32 %v7791_v22, 16 }
 0x1cc   : > { %v1531_v31 = vshrl.u32 %v7793_v23, 16  ;;  %v1534_v32 = vshll.u32 %v7793_v23, 16  ;;  %v1540_v40 = vshll.u32 %v7795_v24, 16  ;;  %v1568_v47 = vshll.u32 %v7803_v34, 16 }
 0x1cd   : > { %v7801_v33 = vld [vmem:[#allocation2 + $0x10] sm:$0xf]  ;;  %v1561_v35 = vrot.slane %v1559_v25, 4  ;;  %v1564_v37 = vrot.slane %v1562_v26, 5  ;;  %v7806_v41 = vld [vmem:[#allocation2 + $0x14] sm:$0x1] }
 0x1ce   : > { %v1533_v38 = vrot.slane %v1531_v31, 4  ;;  %v1536_v39 = vrot.slane %v1534_v32, 5  ;;  %v1545_v42 = vshrl.u32 %v7801_v33, 16  ;;  %v1548_v43 = vshll.u32 %v7801_v33, 16  ;;  %v1475_v31 = vld [vmem:[#allocation2 + $0x3c] sm:$0x1] }
 0x1cf   : > { %v1565_v44 = vor.u32 %v1564_v37, %v1561_v35  ;;  %v1554_v50 = vshll.u32 %v7806_v41, 16  ;;  %v1542_v53 = vrot.slane %v1540_v40, 5  ;;  %v1570_v58 = vrot.slane %v1568_v47, 5 }
 0x1d0   : > { %v1537_v45 = vor.u32 %v1536_v39, %v1533_v38  ;;  %v1547_v46 = vrot.slane %v1545_v42, 4  ;;  %v1550_v49 = vrot.slane %v1548_v43, 5  ;;  %v1460_v38 = vld [vmem:[#allocation2 + $0x28] sm:$0xf]  ;;  %v1463_v39 = vld [vmem:[#allocation2 + $0x2c] sm:$0x1] }
 0x1d1   : > { %v1566_v55 = vrot.slane %v1565_v44, 4  ;;  %v1556_v63 = vrot.slane %v1554_v50, 5  ;;  %v1478_v43 = vld [vmem:[#allocation2 + $0x40] sm:$0xf] }
 0x1d2   : > { %v1538_v52 = vrot.slane %v1537_v45, 4  ;;  %v1551_v54 = vor.u32 %v1550_v49, %v1547_v46  ;;  %v6383_v56 = vpop.f32.mrb[4].mxu0  ;;  %v7047_v45 = vld [vmem:[%s8645_s4 + $0x18] sm:$0xff]  }
 0x1d3   : > { %v1234_v59 = vmul.f32 %v6383_v56, %v7748_v14  ;;  %v1206_v60 = vpop.f32.mrb[5].mxu0  ;;  %v1571_v6 = vsel %vm7480_vm2, %v1566_v55, %v1570_v58  ;;  %v7838_v56 = vld [vmem:[#allocation2 + $0x20] sm:$0xf] }
 0x1d4   : > { %v1543_v57 = vsel %vm7480_vm2, %v1538_v52, %v1542_v53  ;;  %v1552_v62 = vrot.slane %v1551_v54, 4  ;;  %v1232_v0 = vmul.f32 %v7748_v14, %v1206_v60  ;;  %v6384_v1 = vpop.f32.mrb[6].mxu0 }
 0x1d5   : > { %v5850_v61 = vcombine.low %v1529_v51, %v1543_v57  ;;  %v1249_v2 = vadd.f32 %v7753_v16, %v1234_v59  ;;  %v1235_v3 = vmul.f32 %v6384_v1, %v7748_v14  ;;  %v1209_v4 = vpop.f32.mrb[7].mxu0  ;;  %v1481_v51 = vld [vmem:[#allocation2 + $0x44] sm:$0x1] }
 0x1d6   : > { %v1557_v5 = vsel %vm7480_vm2, %v1552_v62, %v1556_v63  ;;  %v1247_v7 = vadd.f32 %v7753_v16, %v1232_v0  ;;  %v1233_v8 = vmul.f32 %v7748_v14, %v1209_v4  ;;  %v7046_v14 = vld [vmem:[%s8645_s4 + $0x10] sm:$0xff]  }
 0x1d7   : > { %6401 = vmatprep.mubr.bf16.mxu1 %v5850_v61  ;;  %v5851_v10 = vcombine.low %v1557_v5, %v1571_v6  ;;  %v1257_v12 = vmax.f32 %v1249_v2, 0.0  ;;  %v1250_v13 = vadd.f32 %v7753_v16, %v1235_v3  ;;  %v1466_v61 = vld [vmem:[#allocation2 + $0x30] sm:$0xf]  ;;  %v1469_v62 = vld [vmem:[#allocation2 + $0x34] sm:$0x1]  ;;  %v7048_v3 = vld [vmem:[%s8645_s4 + $0x20] sm:$0xff]  }
 0x1d8   : > { %v1255_v15 = vmax.f32 %v1247_v7, 0.0  ;;  %v1248_v17 = vadd.f32 %v7753_v16, %v1233_v8  ;;  %v1573_v6 = vshrl.u32 %v7838_v56, 16  ;;  %v1576_v7 = vshll.u32 %v7838_v56, 16 }
 0x1d9   : > { %6402 = vmatmul.mubr.bf16.vlgmr.msra.gmra.mrb[0].mxu1 %v5851_v10  ;;  %v6137_v18 = vpack.c.bf16 %v1257_v12, %v1257_v12  ;;  %v1258_v20 = vmax.f32 %v1250_v13, 0.0 }
 0x1da   : > { %6410 = vmatpush3.bf16.msra.mxu1 %v7738_v9  ;;  %v6135_v21 = vpack.c.bf16 %v1255_v15, %v1255_v15  ;;  %v1256_v25 = vmax.f32 %v1248_v17, 0.0  ;;  %v1575_v12 = vrot.slane %v1573_v6, 4  ;;  %v1578_v13 = vrot.slane %v1576_v7, 5  ;;  %v7864_v15 = vld [vmem:[#allocation2 + $0x24] sm:$0x1]  ;;  %v7050_v17 = vld [vmem:[%s8645_s4 + $0x30] sm:$0xff]  }
 0x1db   : > { %6411 = vmatprep.subr.bf16.mxu1 %v7045_v11  ;;  %v1402_v26 = vshrl.u32 %v6137_v18, 16  ;;  %v6138_v28 = vpack.c.bf16 %v1258_v20, %v1258_v20  ;;  %v1405_v16 = vshll.u32 %v6137_v18, 16  ;;  %v1910_v6 = vld [vmem:[#allocation2] sm:$0xe]  ;;  %v1911_v7 = vld [vmem:[#allocation2 + $0x8] sm:$0xe] }
 0x1dc   : > { %v1386_v32 = vshrl.u32 %v6135_v21, 16  ;;  %v6136_v35 = vpack.c.bf16 %v1256_v25, %v1256_v25  ;;  %v1389_v42 = vshll.u32 %v6135_v21, 16 }
 0x1dd   : > { %v1404_v37 = vrot.slane %v1402_v26, 7  ;;  %v1410_v40 = vshrl.u32 %v6138_v28, 16  ;;  %v1413_v50 = vshll.u32 %v6138_v28, 16  ;;  %v1579_v26 = vor.u32 %v1578_v13, %v1575_v12 }
 0x1de   : > { %6412 = vmatpush3.bf16.msra.mxu1 %v7045_v11  ;;  %v1388_v9 = vrot.slane %v1386_v32, 7  ;;  %v1394_v44 = vshrl.u32 %v6136_v35, 16  ;;  %v1397_v55 = vshll.u32 %v6136_v35, 16  ;;  %v7049_v11 = vld [vmem:[%s8645_s4 + $0x28] sm:$0xff]   ;;  %v1582_v28 = vshll.u32 %v7864_v15, 16 }
 0x1df   : > { %6413 = vmatprep.subr.bf16.mxu1 %v7046_v14  ;;  %v1407_v46 = vor.u32 %v1405_v16, %v1404_v37  ;;  %v1408_v47 = vrot.slane %v1404_v37, 4  ;;  %v1412_v49 = vrot.slane %v1410_v40, 7  ;;  %v1939_v12 = vrot.slane %v7788_v19, 5 }
 0x1e0   : > { %v1391_v52 = vor.u32 %v1389_v42, %v1388_v9  ;;  %v1392_v53 = vrot.slane %v1388_v9, 4  ;;  %v1396_v54 = vrot.slane %v1394_v44, 7  ;;  %v1943_v13 = vrot.slane %v7795_v24, 5 }
 0x1e1   : > { %v1473_v57 = vsel %vm7767_vm5, %v1407_v46, %v1472_v30  ;;  %v1476_v58 = vsel %vm7669_vm0, %v1408_v47, %v1475_v31  ;;  %v1415_v59 = vor.u32 %v1413_v50, %v1412_v49  ;;  %v1416_v60 = vrot.slane %v1412_v49, 4 }
 0x1e2   : > { %6414 = vmatpush3.bf16.msra.mxu1 %v7046_v14  ;;  %1474 = vst [vmem:[#allocation2 + $0x38] sm:$0xf] %v1473_v57  ;;  %1477 = vst [vmem:[#allocation2 + $0x3c] sm:$0x1] %v1476_v58  ;;  %v1461_v63 = vsel %vm7767_vm5, %v1391_v52, %v1460_v38  ;;  %v1464_v0 = vsel %vm7669_vm0, %v1392_v53, %v1463_v39  ;;  %v1399_v1 = vor.u32 %v1397_v55, %v1396_v54 }
 0x1e3   : > { %v1400_v2 = vrot.slane %v1396_v54, 4  ;;  %6415 = vmatprep.subr.bf16.mxu1 %v7047_v45  ;;  %1462 = vst [vmem:[#allocation2 + $0x28] sm:$0xf] %v1461_v63  ;;  %1465 = vst [vmem:[#allocation2 + $0x2c] sm:$0x1] %v1464_v0  ;;  %v1479_v4 = vsel %vm7767_vm5, %v1415_v59, %v1478_v43  ;;  %v1482_v5 = vsel %vm7669_vm0, %v1416_v60, %v1481_v51  ;;  %v1580_v46 = vrot.slane %v1579_v26, 4 }
 0x1e4   : > { %1480 = vst [vmem:[#allocation2 + $0x40] sm:$0xf] %v1479_v4  ;;  %1483 = vst [vmem:[#allocation2 + $0x44] sm:$0x1] %v1482_v5  ;;  %v1467_v8 = vsel %vm7767_vm5, %v1399_v1, %v1466_v61  ;;  %v1584_v53 = vrot.slane %v1582_v28, 5  ;;  %v7053_v59 = vld [vmem:[%s8645_s4 + $0x80] sm:$0xff]   ;;  %v5862_v5 = vcombine.low %v7763_v36, %v7793_v23 }
 0x1e5   : > { %v1470_v10 = vsel %vm7669_vm0, %v1400_v2, %v1469_v62  ;;  %1468 = vst [vmem:[#allocation2 + $0x30] sm:$0xf] %v1467_v8  ;;  %v5863_v8 = vcombine.low %v7801_v33, %v7791_v22  ;;  %v5874_v36 = vrot.slane %v1910_v6, 9  ;;  %v5875_v23 = vrot.slane %v1911_v7, 9  ;;  %v7057_v33 = vld [vmem:[%s8645_s4 + $0x90] sm:$0xff]  }
 0x1e6   : > { %1471 = vst [vmem:[#allocation2 + $0x34] sm:$0x1] %v1470_v10  ;;  %6416 = vmatpush3.bf16.msra.mxu1 %v7047_v45  ;;  %v7052_v45 = vld [vmem:[%s8645_s4 + $0x38] sm:$0xff]   ;;  %v1585_v60 = vsel %vm7480_vm2, %v1580_v46, %v1584_v53  ;;  %v7056_v10 = vld [vmem:[%s8645_s4 + $0x88] sm:$0xff]   ;;  %v1912_v26 = vld [vmem:[#allocation2 + $0x10] sm:$0xe] }
 0x1e7   : > { %6417 = vmatprep.subr.bf16.mxu1 %v7048_v3  ;;  %v1944_v19 = vsel %vm7916_vm8, %v5875_v23, %v1943_v13  ;;  %v7995_v13 = vld [vmem:[#allocation2 + $0xc] sm:$0x1] }
 0x1e9   : > { %v7869_v18 = vld [vmem:[#allocation2 + $0x38] sm:$0xf]  ;;  %v7882_v35 = vld [vmem:[#allocation2 + $0x3c] sm:$0x1] }
 0x1ea   : > { %6418 = vmatpush3.bf16.msra.mxu1 %v7048_v3  ;;  %v7871_v20 = vld [vmem:[#allocation2 + $0x28] sm:$0xf]  ;;  %v7873_v21 = vld [vmem:[#allocation2 + $0x2c] sm:$0x1]  ;;  %v1615_v25 = vshrl.u32 %v7869_v18, 16  ;;  %v1618_v14 = vshll.u32 %v7869_v18, 16 }
 0x1eb   : > { %6419 = vmatprep.subr.bf16.mxu1 %v7049_v11  ;;  %v1587_v30 = vshrl.u32 %v7871_v20, 16  ;;  %v1590_v31 = vshll.u32 %v7871_v20, 16  ;;  %v1596_v40 = vshll.u32 %v7873_v21, 16  ;;  %v1624_v52 = vshll.u32 %v7882_v35, 16  ;;  %v1915_v28 = vld [vmem:[#allocation2 + $0x28] sm:$0xe] }
 0x1ec   : > { %v7880_v32 = vld [vmem:[#allocation2 + $0x30] sm:$0xf]  ;;  %v1617_v37 = vrot.slane %v1615_v25, 4  ;;  %v1620_v16 = vrot.slane %v1618_v14, 5  ;;  %v7060_v25 = vld [vmem:[%s8645_s4 + $0xa0] sm:$0xff]   ;;  %v7061_v14 = vld [vmem:[%s8645_s4 + $0xa8] sm:$0xff]  }
 0x1ed   : > { %v1589_v38 = vrot.slane %v1587_v30, 4  ;;  %v1592_v39 = vrot.slane %v1590_v31, 5  ;;  %v7885_v9 = vld [vmem:[#allocation2 + $0x34] sm:$0x1]  ;;  %v1601_v42 = vshrl.u32 %v7880_v32, 16  ;;  %v1604_v43 = vshll.u32 %v7880_v32, 16 }
 0x1ee   : > { %6420 = vmatpush3.bf16.msra.mxu1 %v7049_v11  ;;  %v1621_v44 = vor.u32 %v1620_v16, %v1617_v37  ;;  %v1610_v51 = vshll.u32 %v7885_v9, 16  ;;  %v1598_v55 = vrot.slane %v1596_v40, 5  ;;  %v1626_v1 = vrot.slane %v1624_v52, 5  ;;  %v7063_v30 = vld [vmem:[%s8645_s4 + $0xb8] sm:$0xff]   ;;  %v1914_v16 = vld [vmem:[#allocation2 + $0x20] sm:$0xe] }
 0x1ef   : > { %6421 = vmatprep.subr.bf16.mxu1 %v7050_v17  ;;  %v1593_v47 = vor.u32 %v1592_v39, %v1589_v38  ;;  %v1603_v49 = vrot.slane %v1601_v42, 4  ;;  %v1606_v50 = vrot.slane %v1604_v43, 5  ;;  %v5864_v11 = vcombine.low %v7838_v56, %v7871_v20  ;;  %v1913_v31 = vld [vmem:[#allocation2 + $0x18] sm:$0xe]  ;;  %v7064_v43 = vld [vmem:[%s8645_s4 + $0xc0] sm:$0xff]  }
 0x1f0   : > { %v1622_v58 = vrot.slane %v1621_v44, 4  ;;  %v1612_v0 = vrot.slane %v1610_v51, 5  ;;  %v1940_v56 = vsel %vm7916_vm8, %v5874_v36, %v1939_v12  ;;  %v5865_v24 = vcombine.low %v7880_v32, %v7869_v18  ;;  %v7062_v18 = vld [vmem:[%s8645_s4 + $0xb0] sm:$0xff]  }
 0x1f1   : > { %v1594_v54 = vrot.slane %v1593_v47, 4  ;;  %v1607_v57 = vor.u32 %v1606_v50, %v1603_v49  ;;  %v5882_v20 = vcombine.low %v1940_v56, %v1944_v19  ;;  %v1947_v32 = vrot.slane %v7806_v41, 5  ;;  %v1916_v47 = vld [vmem:[#allocation2 + $0x30] sm:$0xe]  ;;  %v1917_v50 = vld [vmem:[#allocation2 + $0x38] sm:$0xe] }
 0x1f2   : > { %6422 = vmatpush3.bf16.msra.mxu1 %v7050_v17  ;;  %v1627_v3 = vsel %vm7480_vm2, %v1622_v58, %v1626_v1  ;;  %v7059_v17 = vld [vmem:[%s8645_s4 + $0x98] sm:$0xff]   ;;  %v5876_v37 = vrot.slane %v1912_v26, 9  ;;  %v5879_v38 = vrot.slane %v1915_v28, 9  ;;  %v1959_v39 = vrot.slane %v7873_v21, 5  ;;  %v7983_v1 = vld [vmem:[#allocation2 + $0x8] sm:$0xf] }
 0x1f3   : > { %6423 = vmatprep.subr.bf16.mxu1 %v7052_v45  ;;  %v1599_v61 = vsel %vm7480_vm2, %v1594_v54, %v1598_v55  ;;  %v1608_v63 = vrot.slane %v1607_v57, 4  ;;  %v1951_v40 = vrot.slane %v7803_v34, 5  ;;  %v5877_v42 = vrot.slane %v1913_v31, 9  ;;  %v7066_v57 = vld [vmem:[%s8645_s4 + $0xd0] sm:$0xff]   ;;  %v7076_v56 = vld [vmem:[%s8645_s4 + $0x108] sm:$0xff]  }
 0x1f4   : > { %v5852_v62 = vcombine.low %v1585_v60, %v1599_v61  ;;  %v5878_v44 = vrot.slane %v1914_v16, 9  ;;  %v1948_v41 = vsel %vm7916_vm8, %v5876_v37, %v1947_v32  ;;  %v1960_v46 = vsel %vm7916_vm8, %v5879_v38, %v1959_v39  ;;  %v7067_v61 = vld [vmem:[#allocation2 + $0x8] ss:$8 sps:$4 sm:$0xff]   ;;  %v7993_v36 = vld [vmem:[#allocation2 + $0x14] sm:$0x1]  ;;  %v7079_v37 = vld [vmem:[%s8645_s4 + $0x118] sm:$0xff]  }
 0x1f5   : > { %v1613_v2 = vsel %vm7480_vm2, %v1608_v63, %v1612_v0  ;;  %v1952_v34 = vsel %vm7916_vm8, %v5877_v42, %v1951_v40  ;;  %v5880_v52 = vrot.slane %v1916_v47, 9  ;;  %v1963_v53 = vrot.slane %v7885_v9, 5  ;;  %v7068_v9 = vld [vmem:[%s8645_s4 + $0xd8] sm:$0xff]   ;;  %v2293_v63 = vld [vmem:[#allocation2 + $0x10] sm:$0xf]  ;;  %v7080_v40 = vld [vmem:[%s8645_s4 + $0x120] sm:$0xff]  }
 0x1f6   : > { %6424 = vmatpush3.bf16.msra.mxu1 %v7052_v45  ;;  %6405 = vmatprep.mubr.bf16.mxu1 %v5852_v62  ;;  %v5853_v4 = vcombine.low %v1613_v2, %v1627_v3  ;;  %v1955_v45 = vrot.slane %v7864_v15, 5  ;;  %v5883_v21 = vcombine.low %v1948_v41, %v1952_v34  ;;  %v7065_v15 = vld [vmem:[%s8645_s4 + $0xc8] sm:$0xff]   ;;  %v5881_v54 = vrot.slane %v1917_v50, 9  ;;  %v7071_v0 = vld [vmem:[%s8645_s4 + $0xf0] sm:$0xff]   ;;  %v7077_v31 = vld [vmem:[#allocation2 + $0x38] ss:$8 sps:$4 sm:$0xff]  }
 0x1f7   : > { %6433 = vmatprep.subr.bf16.mxu1 %v7053_v59  ;;  %v1967_v55 = vrot.slane %v7882_v35, 5  ;;  %v1964_v58 = vsel %vm7916_vm8, %v5880_v52, %v1963_v53  ;;  %v7069_v35 = vld [vmem:[%s8645_s4 + $0xe0] sm:$0xff]   ;;  %v7070_v62 = vld [vmem:[%s8645_s4 + $0xe8] sm:$0xff]   ;;  %v2322_v2 = vshrl.u32 %v2293_v63, 16  ;;  %v2325_v3 = vshll.u32 %v2293_v63, 16 }
 0x1f8   : > { %6406 = vmatmul.mubr.bf16.gmra.mrb[4].mxu1 %v5853_v4  ;;  %v1956_v49 = vsel %vm7916_vm8, %v5878_v44, %v1955_v45  ;;  %v7072_v4 = vld [vmem:[%s8645_s4 + $0xf8] sm:$0xff]   ;;  %v2311_v6 = vshll.u32 %v7983_v1, 16  ;;  %v2297_v38 = vld [vmem:[#allocation2 + $0x20] sm:$0xf]  ;;  %v2301_v39 = vld [vmem:[#allocation2 + $0x30] sm:$0xf] }
 0x1f9   : > { %6425 = vmatprep.mubr.bf16.mxu1 %v5862_v5  ;;  %v5884_v51 = vcombine.low %v1956_v49, %v1960_v46  ;;  %v2308_v5 = vshrl.u32 %v7983_v1, 16  ;;  %v2324_v7 = vrot.slane %v2322_v2, 4  ;;  %v2295_v42 = vld [vmem:[#allocation2 + $0x18] sm:$0xf]  ;;  %v2353_v44 = vshll.u32 %v2297_v38, 16 }
 0x1fa   : > { %v2313_v12 = vrot.slane %v2311_v6, 5  ;;  %v2299_v45 = vld [vmem:[#allocation2 + $0x28] sm:$0xf]  ;;  %v2378_v41 = vshrl.u32 %v2301_v39, 16  ;;  %v2381_v46 = vshll.u32 %v2301_v39, 16  ;;  %v2336_v47 = vshrl.u32 %v2295_v42, 16 }
 0x1fb   : > { %v2339_v34 = vshll.u32 %v2295_v42, 16  ;;  %v2364_v49 = vshrl.u32 %v2299_v45, 16  ;;  %v8025_v2 = vld [vmem:[#allocation2 + $0x1c] sm:$0x1]  ;;  %v8028_v6 = vld [vmem:[#allocation2 + $0x2c] sm:$0x1] }
 0x1fc   : > { %v2380_v52 = vrot.slane %v2378_v41, 4  ;;  %v2383_v53 = vrot.slane %v2381_v46, 5 }
 0x200   : > { %6426 = vmatmul.mubr.bf16.vlgmr.msra.gmra.mrb[0].mxu1 %v5863_v8  ;;  %v2327_v8 = vrot.slane %v2325_v3, 5  ;;  %v2384_v3 = vor.u32 %v2383_v53, %v2380_v52 }
 0x201   : > { %6434 = vmatpush3.bf16.msra.mxu1 %v7053_v59  ;;  %6429 = vmatprep.mubr.bf16.mxu1 %v5864_v11  ;;  %v1968_v59 = vsel %vm7916_vm8, %v5881_v54, %v1967_v55  ;;  %v2310_v11 = vrot.slane %v2308_v5, 4  ;;  %v2305_v54 = vld [vmem:[#allocation2 + $0x40] sm:$0xf]  ;;  %v7082_v55 = vld [vmem:[%s8645_s4 + $0x130] sm:$0xff]  }
 0x202   : > { %6435 = vmatprep.subr.bf16.mxu1 %v7056_v10  ;;  %v5885_v60 = vcombine.low %v1964_v58, %v1968_v59  ;;  %v2328_v23 = vor.u32 %v2327_v8, %v2324_v7  ;;  %v2341_v58 = vrot.slane %v2339_v34, 5  ;;  %v8021_v59 = vld [vmem:[#allocation2 + $0x24] sm:$0x1]  ;;  %v2406_v63 = vshrl.u32 %v2305_v54, 16 }
 0x203   : > { %v2314_v19 = vor.u32 %v2313_v12, %v2310_v11  ;;  %v2359_v5 = vshll.u32 %v8021_v59, 16 }
 0x205   : > { %6436 = vmatpush3.bf16.msra.mxu1 %v7056_v10  ;;  %v7074_v10 = vld [vmem:[%s8645_s4 + $0x100] sm:$0xff]  }
 0x206   : > { %6437 = vmatprep.subr.bf16.mxu1 %v7057_v33 }
 0x208   : > { %6430 = vmatmul.mubr.bf16.gmra.mrb[4].mxu1 %v5865_v24  ;;  %v2331_v24 = vshll.u32 %v7993_v36, 16 }
 0x209   : > { %6438 = vmatpush3.bf16.msra.mxu1 %v7057_v33  ;;  %6449 = vmatprep.mubr.bf16.mxu1 %v5882_v20  ;;  %v7073_v33 = vld [vmem:[#allocation2 + $0x18] ss:$8 sps:$4 sm:$0xff]   ;;  %v2317_v20 = vshll.u32 %v7995_v13, 16 }
 0x20a   : > { %6439 = vmatprep.subr.bf16.mxu1 %v7059_v17  ;;  %v2333_v26 = vrot.slane %v2331_v24, 5  ;;  %v2373_v24 = vshll.u32 %v8028_v6, 16 }
 0x20b   : > { %v2319_v28 = vrot.slane %v2317_v20, 5 }
 0x20d   : > { %6440 = vmatpush3.bf16.msra.mxu1 %v7059_v17  ;;  %v7075_v17 = vld [vmem:[#allocation2 + $0x28] ss:$8 sps:$4 sm:$0xff]  }
 0x20e   : > { %6441 = vmatprep.subr.bf16.mxu1 %v7060_v25 }
 0x211   : > { %6442 = vmatpush3.bf16.msra.mxu1 %v7060_v25  ;;  %v2329_v25 = vrot.slane %v2328_v23, 4  ;;  %v2345_v23 = vshll.u32 %v8025_v2, 16 }
 0x212   : > { %6443 = vmatprep.subr.bf16.mxu1 %v7061_v14 }
 0x215   : > { %6444 = vmatpush3.bf16.msra.mxu1 %v7061_v14  ;;  %v7078_v14 = vld [vmem:[%s8645_s4 + $0x110] sm:$0xff]  }
 0x216   : > { %6445 = vmatprep.subr.bf16.mxu1 %v7062_v18 }
 0x219   : > { %6446 = vmatpush3.bf16.msra.mxu1 %v7062_v18  ;;  %v2315_v18 = vrot.slane %v2314_v19, 4 }
 0x21a   : > { %6447 = vmatprep.subr.bf16.mxu1 %v7063_v30 }
 0x21b   : > { %v2320_v32 = vsel %vm7480_vm2, %v2315_v18, %v2319_v28 }
 0x21d   : > { %6448 = vmatpush3.bf16.msra.mxu1 %v7063_v30  ;;  %v2334_v30 = vsel %vm7480_vm2, %v2329_v25, %v2333_v26  ;;  %v2361_v25 = vrot.slane %v2359_v5, 5  ;;  %v7084_v26 = vld [vmem:[%s8645_s4 + $0x140] sm:$0xff]  }
 0x21e   : > { %6457 = vmatprep.subr.bf16.mxu1 %v7064_v43  ;;  %v5906_v16 = vcombine.low %v2320_v32, %v2334_v30  ;;  %v2347_v32 = vrot.slane %v2345_v23, 5  ;;  %v2575_v5 = vld [vmem:[#allocation2 + $0x20] sm:$0xe]  ;;  %v2576_v23 = vld [vmem:[#allocation2 + $0x28] sm:$0xe] }
 0x220   : > { %6450 = vmatmul.mubr.bf16.vlgmr.msra.gmra.mrb[0].mxu1 %v5883_v21  ;;  %v7081_v21 = vld [vmem:[%s8645_s4 + $0x128] sm:$0xff]  }
 0x221   : > { %6453 = vmatprep.mubr.bf16.mxu1 %v5884_v51  ;;  %6458 = vmatpush3.bf16.msra.mxu1 %v7064_v43  ;;  %v2350_v43 = vshrl.u32 %v2297_v38, 16  ;;  %v2355_v51 = vrot.slane %v2353_v44, 5  ;;  %v2375_v38 = vrot.slane %v2373_v24, 5  ;;  %v2606_v24 = vrot.slane %v8025_v2, 5 }
 0x222   : > { %6459 = vmatprep.subr.bf16.mxu1 %v7065_v15 }
 0x223   : > { %v2352_v50 = vrot.slane %v2350_v43, 4 }
 0x225   : > { %6460 = vmatpush3.bf16.msra.mxu1 %v7065_v15  ;;  %v2367_v15 = vshll.u32 %v2299_v45, 16  ;;  %v2573_v45 = vld [vmem:[#allocation2 + $0x10] sm:$0xe] }
 0x226   : > { %6461 = vmatprep.subr.bf16.mxu1 %v7066_v57 }
 0x228   : > { %6454 = vmatmul.mubr.bf16.gmra.mrb[4].mxu1 %v5885_v60  ;;  %v2366_v60 = vrot.slane %v2364_v49, 4 }
 0x229   : > { %6462 = vmatpush3.bf16.msra.mxu1 %v7066_v57  ;;  %6473 = vmatprep.mubr.bf16.mxu1 %v7067_v61  ;;  %v2338_v57 = vrot.slane %v2336_v47, 4  ;;  %v2303_v61 = vld [vmem:[#allocation2 + $0x38] sm:$0xf]  ;;  %v7085_v47 = vld [vmem:[%s8645_s4 + $0x148] sm:$0xff]  }
 0x22a   : > { %6463 = vmatprep.subr.bf16.mxu1 %v7068_v9  ;;  %v2392_v7 = vshrl.u32 %v2303_v61, 16  ;;  %v2395_v8 = vshll.u32 %v2303_v61, 16 }
 0x22c   : > { %v2397_v18 = vrot.slane %v2395_v8, 5  ;;  %v7091_v8 = vld [vmem:[%s8645_s4 + $0x178] sm:$0xff]  }
 0x22d   : > { %6464 = vmatpush3.bf16.msra.mxu1 %v7068_v9  ;;  %v2369_v9 = vrot.slane %v2367_v15, 5  ;;  %v2572_v15 = vld [vmem:[#allocation2 + $0x8] sm:$0xe] }
 0x22e   : > { %6465 = vmatprep.subr.bf16.mxu1 %v7069_v35 }
 0x22f   : > { %v2370_v11 = vor.u32 %v2369_v9, %v2366_v60 }
 0x231   : > { %6466 = vmatpush3.bf16.msra.mxu1 %v7069_v35  ;;  %v2356_v35 = vor.u32 %v2355_v51, %v2352_v50  ;;  %v2371_v28 = vrot.slane %v2370_v11, 4  ;;  %v5919_v50 = vrot.slane %v2573_v45, 9  ;;  %v2602_v51 = vrot.slane %v7993_v36, 5  ;;  %v7095_v45 = vld [vmem:[#allocation2 + $0x10] ss:$8 sps:$4 sm:$0xff]  }
 0x232   : > { %6467 = vmatprep.subr.bf16.mxu1 %v7070_v62  ;;  %v5921_v11 = vrot.slane %v2575_v5, 9 }
 0x233   : > { %v2376_v46 = vsel %vm7480_vm2, %v2371_v28, %v2375_v38  ;;  %v2603_v9 = vsel %vm7916_vm8, %v5919_v50, %v2602_v51  ;;  %v2578_v28 = vld [vmem:[#allocation2 + $0x38] sm:$0xe] }
 0x235   : > { %6468 = vmatpush3.bf16.msra.mxu1 %v7070_v62  ;;  %v8023_v62 = vld [vmem:[#allocation2 + $0x34] sm:$0x1] }
 0x236   : > { %6469 = vmatprep.subr.bf16.mxu1 %v7071_v0  ;;  %v2387_v12 = vshll.u32 %v8023_v62, 16 }
 0x238   : > { %v2389_v30 = vrot.slane %v2387_v12, 5  ;;  %v2610_v12 = vrot.slane %v8021_v59, 5 }
 0x239   : > { %6470 = vmatpush3.bf16.msra.mxu1 %v7071_v0  ;;  %v2409_v0 = vshll.u32 %v2305_v54, 16  ;;  %v7086_v54 = vld [vmem:[%s8645_s4 + $0x150] sm:$0xff]  }
 0x23a   : > { %6471 = vmatprep.subr.bf16.mxu1 %v7072_v4 }
 0x23b   : > { %v2411_v19 = vrot.slane %v2409_v0, 5  ;;  %v7088_v0 = vld [vmem:[%s8645_s4 + $0x160] sm:$0xff]  }
 0x23d   : > { %6472 = vmatpush3.bf16.msra.mxu1 %v7072_v4  ;;  %v2342_v4 = vor.u32 %v2341_v58, %v2338_v57  ;;  %v2598_v57 = vrot.slane %v7995_v13, 5  ;;  %v7087_v13 = vld [vmem:[%s8645_s4 + $0x158] sm:$0xff]  }
 0x23e   : > { %6481 = vmatprep.subr.bf16.mxu1 %v7074_v10 }
 0x23f   : > { %v2343_v20 = vrot.slane %v2342_v4, 4  ;;  %v7090_v4 = vld [vmem:[%s8645_s4 + $0x170] sm:$0xff]  }
 0x240   : > { %6474 = vmatmul.mubr.bf16.vlgmr.msra.gmra.mrb[0].mxu1 %v7073_v33  ;;  %v2357_v33 = vrot.slane %v2356_v35, 4 }
 0x241   : > { %6477 = vmatprep.mubr.bf16.mxu1 %v7075_v17  ;;  %6482 = vmatpush3.bf16.msra.mxu1 %v7074_v10  ;;  %v7083_v10 = vld [vmem:[%s8645_s4 + $0x138] sm:$0xff]   ;;  %v2385_v17 = vrot.slane %v2384_v3, 4  ;;  %v2348_v42 = vsel %vm7480_vm2, %v2343_v20, %v2347_v32  ;;  %v7089_v3 = vld [vmem:[%s8645_s4 + $0x168] sm:$0xff]   ;;  %v5922_v20 = vrot.slane %v2576_v23, 9 }
 0x242   : > { %6483 = vmatprep.subr.bf16.mxu1 %v7076_v56  ;;  %v7107_v23 = vld [vmem:[%s8645_s4 + $0x1d8] sm:$0xff]  }
 0x243   : > { %v2390_v39 = vsel %vm7480_vm2, %v2385_v17, %v2389_v30  ;;  %v7092_v17 = vld [vmem:[%s8645_s4 + $0x180] sm:$0xff]  }
 0x244   : > { %v5908_v34 = vcombine.low %v2376_v46, %v2390_v39  ;;  %v7094_v39 = vld [vmem:[%s8645_s4 + $0x190] sm:$0xff]  }
 0x245   : > { %6484 = vmatpush3.bf16.msra.mxu1 %v7076_v56  ;;  %v2408_v56 = vrot.slane %v2406_v63, 4  ;;  %v2951_v46 = vld [vmem:[#allocation2 + $0x10] sm:$0xf] }
 0x246   : > { %6485 = vmatprep.subr.bf16.mxu1 %v7078_v14 }
 0x248   : > { %6478 = vmatmul.mubr.bf16.gmra.mrb[4].mxu1 %v7077_v31  ;;  %v8039_v31 = vld [vmem:[#allocation2 + $0x44] sm:$0x1] }
 0x249   : > { %6486 = vmatpush3.bf16.msra.mxu1 %v7078_v14  ;;  %6497 = vmatprep.mubr.bf16.mxu1 %v5906_v16  ;;  %v2394_v14 = vrot.slane %v2392_v7, 4  ;;  %v2412_v16 = vor.u32 %v2411_v19, %v2408_v56  ;;  %v2415_v44 = vshll.u32 %v8039_v31, 16  ;;  %v2577_v7 = vld [vmem:[#allocation2 + $0x30] sm:$0xe]  ;;  %v2618_v56 = vrot.slane %v8023_v62, 5 }
 0x24a   : > { %6487 = vmatprep.subr.bf16.mxu1 %v7079_v37 }
 0x24b   : > { %v2398_v43 = vor.u32 %v2397_v18, %v2394_v14  ;;  %v2413_v49 = vrot.slane %v2412_v16, 4  ;;  %v2417_v53 = vrot.slane %v2415_v44, 5  ;;  %v2611_v14 = vsel %vm7916_vm8, %v5921_v11, %v2610_v12  ;;  %v2579_v18 = vld [vmem:[#allocation2 + $0x40] sm:$0xe] }
 0x24c   : > { %v5925_v32 = vrot.slane %v2579_v18, 9  ;;  %v5924_v16 = vrot.slane %v2578_v28, 9  ;;  %v7105_v11 = vld [vmem:[#allocation2 + $0x40] ss:$8 sps:$4 sm:$0xff]  }
 0x24d   : > { %6488 = vmatpush3.bf16.msra.mxu1 %v7079_v37  ;;  %v2362_v37 = vsel %vm7480_vm2, %v2357_v33, %v2361_v25  ;;  %v2399_v52 = vrot.slane %v2398_v43, 4  ;;  %v2418_v60 = vsel %vm7480_vm2, %v2413_v49, %v2417_v53  ;;  %v5923_v33 = vrot.slane %v2577_v7, 9 }
 0x24e   : > { %6489 = vmatprep.subr.bf16.mxu1 %v7080_v40  ;;  %v5907_v41 = vcombine.low %v2348_v42, %v2362_v37  ;;  %v2614_v25 = vrot.slane %v8028_v6, 5  ;;  %v7093_v6 = vld [vmem:[%s8645_s4 + $0x188] sm:$0xff]   ;;  %v2626_v37 = vrot.slane %v8039_v31, 5  ;;  %v7096_v31 = vld [vmem:[%s8645_s4 + $0x198] sm:$0xff]   ;;  %v2971_v49 = vshll.u32 %v2951_v46, 16 }
 0x24f   : > { %v2619_v59 = vsel %vm7916_vm8, %v5923_v33, %v2618_v56  ;;  %v2957_v56 = vld [vmem:[#allocation2 + $0x28] sm:$0xf] }
 0x250   : > { %v2627_v42 = vsel %vm7916_vm8, %v5925_v32, %v2626_v37  ;;  %v2973_v53 = vrot.slane %v2971_v49, 5 }
 0x251   : > { %6490 = vmatpush3.bf16.msra.mxu1 %v7080_v40  ;;  %v8045_v40 = vld [vmem:[#allocation2 + $0x3c] sm:$0x1] }
 0x252   : > { %6491 = vmatprep.subr.bf16.mxu1 %v7081_v21  ;;  %v2622_v38 = vrot.slane %v8045_v40, 5 }
 0x254   : > { %v2623_v43 = vsel %vm7916_vm8, %v5924_v16, %v2622_v38 }
 0x255   : > { %6492 = vmatpush3.bf16.msra.mxu1 %v7081_v21  ;;  %v2401_v21 = vshll.u32 %v8045_v40, 16  ;;  %v5929_v44 = vcombine.low %v2623_v43, %v2627_v42  ;;  %v7097_v40 = vld [vmem:[%s8645_s4 + $0x1a0] sm:$0xff]  }
 0x256   : > { %6493 = vmatprep.subr.bf16.mxu1 %v7082_v55 }
 0x257   : > { %v2403_v58 = vrot.slane %v2401_v21, 5  ;;  %v2968_v21 = vshrl.u32 %v2951_v46, 16 }
 0x259   : > { %6494 = vmatpush3.bf16.msra.mxu1 %v7082_v55  ;;  %v5918_v55 = vrot.slane %v2572_v15, 9  ;;  %v2404_v36 = vsel %vm7480_vm2, %v2399_v52, %v2403_v58  ;;  %v7100_v15 = vld [vmem:[%s8645_s4 + $0x1b8] sm:$0xff]   ;;  %v2970_v52 = vrot.slane %v2968_v21, 4  ;;  %v8129_v58 = vld [vmem:[#allocation2 + $0x14] sm:$0x1] }
 0x25a   : > { %6495 = vmatprep.subr.bf16.mxu1 %v7083_v10  ;;  %v5909_v61 = vcombine.low %v2404_v36, %v2418_v60  ;;  %v7101_v36 = vld [vmem:[#allocation2 + $0x20] ss:$8 sps:$4 sm:$0xff]  }
 0x25b   : > { %v2599_v35 = vsel %vm7916_vm8, %v5918_v55, %v2598_v57  ;;  %v2974_v60 = vor.u32 %v2973_v53, %v2970_v52  ;;  %v8164_v53 = vld [vmem:[#allocation2 + $0x3c] sm:$0x1] }
 0x25c   : > { %v5926_v63 = vcombine.low %v2599_v35, %v2603_v9  ;;  %v8131_v9 = vld [vmem:[#allocation2 + $0x1c] sm:$0x1]  ;;  %v2977_v35 = vshll.u32 %v8129_v58, 16 }
 0x25d   : > { %6496 = vmatpush3.bf16.msra.mxu1 %v7083_v10  ;;  %v2574_v10 = vld [vmem:[#allocation2 + $0x18] sm:$0xe] }
 0x25e   : > { %6505 = vmatprep.subr.bf16.mxu1 %v7084_v26  ;;  %v5920_v19 = vrot.slane %v2574_v10, 9  ;;  %v2979_v5 = vrot.slane %v2977_v35, 5 }
 0x260   : > { %6498 = vmatmul.mubr.bf16.vlgmr.msra.gmra.mrb[0].mxu1 %v5907_v41  ;;  %v2607_v62 = vsel %vm7916_vm8, %v5920_v19, %v2606_v24  ;;  %v7098_v41 = vld [vmem:[%s8645_s4 + $0x1a8] sm:$0xff]   ;;  %v2959_v19 = vld [vmem:[#allocation2 + $0x30] sm:$0xf]  ;;  %v7108_v24 = vld [vmem:[%s8645_s4 + $0x1e0] sm:$0xff]  }
 0x261   : > { %6501 = vmatprep.mubr.bf16.mxu1 %v5908_v34  ;;  %6506 = vmatpush3.bf16.msra.mxu1 %v7084_v26  ;;  %v5927_v2 = vcombine.low %v2607_v62, %v2611_v14  ;;  %v2615_v26 = vsel %vm7916_vm8, %v5922_v20, %v2614_v25  ;;  %v2953_v34 = vld [vmem:[#allocation2 + $0x18] sm:$0xf]  ;;  %v3010_v20 = vshrl.u32 %v2957_v56, 16  ;;  %v3013_v25 = vshll.u32 %v2957_v56, 16 }
 0x262   : > { %6507 = vmatprep.subr.bf16.mxu1 %v7085_v47  ;;  %v5928_v30 = vcombine.low %v2615_v26, %v2619_v59  ;;  %v2982_v50 = vshrl.u32 %v2953_v34, 16  ;;  %v2985_v51 = vshll.u32 %v2953_v34, 16  ;;  %v2961_v14 = vld [vmem:[#allocation2 + $0x38] sm:$0xf]  ;;  %v3024_v59 = vshrl.u32 %v2959_v19, 16  ;;  %v7109_v26 = vld [vmem:[%s8645_s4 + $0x1e8] sm:$0xff]  }
 0x263   : > { %v3027_v18 = vshll.u32 %v2959_v19, 16  ;;  %v3041_v28 = vshll.u32 %v2961_v14, 16  ;;  %v3012_v32 = vrot.slane %v3010_v20, 4  ;;  %v3015_v37 = vrot.slane %v3013_v25, 5  ;;  %v8159_v34 = vld [vmem:[#allocation2 + $0x34] sm:$0x1] }
 0x264   : > { %v2984_v55 = vrot.slane %v2982_v50, 4  ;;  %v2987_v57 = vrot.slane %v2985_v51, 5  ;;  %v3026_v16 = vrot.slane %v3024_v59, 4  ;;  %v3232_v59 = vld [vmem:[#allocation2 + $0x10] sm:$0xe] }
 0x265   : > { %6508 = vmatpush3.bf16.msra.mxu1 %v7085_v47  ;;  %v7099_v47 = vld [vmem:[%s8645_s4 + $0x1b0] sm:$0xff]   ;;  %v3029_v38 = vrot.slane %v3027_v18, 5 }
 0x266   : > { %6509 = vmatprep.subr.bf16.mxu1 %v7086_v54 }
 0x267   : > { %v3030_v50 = vor.u32 %v3029_v38, %v3026_v16  ;;  %v3258_v16 = vrot.slane %v8129_v58, 5 }
 0x268   : > { %6502 = vmatmul.mubr.bf16.gmra.mrb[4].mxu1 %v5909_v61  ;;  %v7104_v61 = vld [vmem:[%s8645_s4 + $0x1c8] sm:$0xff]  }
 0x269   : > { %6510 = vmatpush3.bf16.msra.mxu1 %v7086_v54  ;;  %6521 = vmatprep.mubr.bf16.mxu1 %v5926_v63  ;;  %v7102_v54 = vld [vmem:[%s8645_s4 + $0x1c0] sm:$0xff]   ;;  %v7103_v63 = vld [vmem:[#allocation2 + $0x30] ss:$8 sps:$4 sm:$0xff]  }
 0x26a   : > { %6511 = vmatprep.subr.bf16.mxu1 %v7087_v13 }
 0x26d   : > { %6512 = vmatpush3.bf16.msra.mxu1 %v7087_v13  ;;  %v2988_v13 = vor.u32 %v2987_v57, %v2984_v55  ;;  %v3033_v55 = vshll.u32 %v8159_v34, 16 }
 0x26e   : > { %6513 = vmatprep.subr.bf16.mxu1 %v7088_v0 }
 0x26f   : > { %v2989_v7 = vrot.slane %v2988_v13, 4 }
 0x271   : > { %6514 = vmatpush3.bf16.msra.mxu1 %v7088_v0  ;;  %v2975_v0 = vrot.slane %v2974_v60, 4 }
 0x272   : > { %6515 = vmatprep.subr.bf16.mxu1 %v7089_v3 }
 0x275   : > { %6516 = vmatpush3.bf16.msra.mxu1 %v7089_v3  ;;  %v2991_v3 = vshll.u32 %v8131_v9, 16 }
 0x276   : > { %6517 = vmatprep.subr.bf16.mxu1 %v7090_v4 }
 0x277   : > { %v2993_v10 = vrot.slane %v2991_v3, 5  ;;  %v3047_v3 = vshll.u32 %v8164_v53, 16 }
 0x279   : > { %6518 = vmatpush3.bf16.msra.mxu1 %v7090_v4  ;;  %v7106_v4 = vld [vmem:[%s8645_s4 + $0x1d0] sm:$0xff]   ;;  %v2994_v12 = vsel %vm7480_vm2, %v2989_v7, %v2993_v10  ;;  %v8172_v7 = vld [vmem:[#allocation2 + $0x4c] sm:$0x1]  ;;  %v3035_v10 = vrot.slane %v3033_v55, 5  ;;  %v3049_v20 = vrot.slane %v3047_v3, 5 }
 0x27a   : > { %6519 = vmatprep.subr.bf16.mxu1 %v7091_v8 }
 0x27d   : > { %6520 = vmatpush3.bf16.msra.mxu1 %v7091_v8  ;;  %v2980_v8 = vsel %vm7480_vm2, %v2975_v0, %v2979_v5  ;;  %v3031_v0 = vrot.slane %v3030_v50, 4  ;;  %v3235_v50 = vld [vmem:[#allocation2 + $0x28] sm:$0xe] }
 0x27e   : > { %6529 = vmatprep.subr.bf16.mxu1 %v7092_v17  ;;  %v5950_v33 = vcombine.low %v2980_v8, %v2994_v12  ;;  %v7112_v8 = vld [vmem:[%s8645_s4 + $0x200] sm:$0xff]   ;;  %v5965_v55 = vrot.slane %v3235_v50, 9 }
 0x27f   : > { %v8177_v12 = vld [vmem:[#allocation2 + $0x44] sm:$0x1] }
 0x280   : > { %6522 = vmatmul.mubr.bf16.vlgmr.msra.gmra.mrb[0].mxu1 %v5927_v2 }
 0x281   : > { %6525 = vmatprep.mubr.bf16.mxu1 %v5928_v30  ;;  %6530 = vmatpush3.bf16.msra.mxu1 %v7092_v17  ;;  %v2955_v17 = vld [vmem:[#allocation2 + $0x20] sm:$0xf]  ;;  %v2965_v30 = vld [vmem:[#allocation2 + $0x48] sm:$0xf] }
 0x282   : > { %6531 = vmatprep.subr.bf16.mxu1 %v7093_v6  ;;  %v2996_v62 = vshrl.u32 %v2955_v17, 16  ;;  %v2999_v2 = vshll.u32 %v2955_v17, 16  ;;  %v3069_v46 = vshll.u32 %v2965_v30, 16  ;;  %v3036_v17 = vsel %vm7480_vm2, %v3031_v0, %v3035_v10 }
 0x283   : > { %v3278_v0 = vrot.slane %v8164_v53, 5  ;;  %v3282_v53 = vrot.slane %v8177_v12, 5 }
 0x284   : > { %v2998_v42 = vrot.slane %v2996_v62, 4  ;;  %v3001_v43 = vrot.slane %v2999_v2, 5  ;;  %v7113_v2 = vld [vmem:[%s8645_s4 + $0x208] sm:$0xff]  }
 0x285   : > { %6532 = vmatpush3.bf16.msra.mxu1 %v7093_v6  ;;  %v3038_v6 = vshrl.u32 %v2961_v14, 16  ;;  %v3061_v14 = vshll.u32 %v8177_v12, 16  ;;  %v7123_v12 = vld [vmem:[#allocation4 + $0x58] sm:$0xff]  }
 0x286   : > { %6533 = vmatprep.subr.bf16.mxu1 %v7094_v39  ;;  %v3002_v51 = vor.u32 %v3001_v43, %v2998_v42  ;;  %v3262_v43 = vrot.slane %v8131_v9, 5 }
 0x287   : > { %v3063_v38 = vrot.slane %v3061_v14, 5  ;;  %v7125_v14 = vld [vmem:[#allocation4 + $0x68] sm:$0xff]  }
 0x288   : > { %6526 = vmatmul.mubr.bf16.gmra.mrb[4].mxu1 %v5929_v44  ;;  %v3066_v44 = vshrl.u32 %v2965_v30, 16 }
 0x289   : > { %6534 = vmatpush3.bf16.msra.mxu1 %v7094_v39  ;;  %6545 = vmatprep.mubr.bf16.mxu1 %v7095_v45  ;;  %v2963_v39 = vld [vmem:[#allocation2 + $0x40] sm:$0xf]  ;;  %v8157_v45 = vld [vmem:[#allocation2 + $0x2c] sm:$0x1] }
 0x28a   : > { %6535 = vmatprep.subr.bf16.mxu1 %v7096_v31  ;;  %v3052_v21 = vshrl.u32 %v2963_v39, 16  ;;  %v3055_v49 = vshll.u32 %v2963_v39, 16  ;;  %v3019_v52 = vshll.u32 %v8157_v45, 16  ;;  %v3068_v60 = vrot.slane %v3066_v44, 4  ;;  %v7114_v39 = vld [vmem:[%s8645_s4 + $0x210] sm:$0xff]  }
 0x28c   : > { %v3054_v13 = vrot.slane %v3052_v21, 4  ;;  %v3021_v5 = vrot.slane %v3019_v52, 5  ;;  %v7117_v21 = vld [vmem:[%s8645_s4 + $0x228] sm:$0xff]   ;;  %v7119_v52 = vld [vmem:[%s8645_s4 + $0x238] sm:$0xff]  }
 0x28d   : > { %6536 = vmatpush3.bf16.msra.mxu1 %v7096_v31  ;;  %v7110_v31 = vld [vmem:[%s8645_s4 + $0x1f0] sm:$0xff]  }
 0x28e   : > { %6537 = vmatprep.subr.bf16.mxu1 %v7097_v40 }
 0x291   : > { %6538 = vmatpush3.bf16.msra.mxu1 %v7097_v40  ;;  %v3040_v40 = vrot.slane %v3038_v6, 4 }
 0x292   : > { %6539 = vmatprep.subr.bf16.mxu1 %v7098_v41 }
 0x295   : > { %6540 = vmatpush3.bf16.msra.mxu1 %v7098_v41  ;;  %v3043_v41 = vrot.slane %v3041_v28, 5 }
 0x296   : > { %6541 = vmatprep.subr.bf16.mxu1 %v7099_v47 }
 0x297   : > { %v3044_v57 = vor.u32 %v3043_v41, %v3040_v40 }
 0x299   : > { %6542 = vmatpush3.bf16.msra.mxu1 %v7099_v47  ;;  %v3016_v47 = vor.u32 %v3015_v37, %v3012_v32  ;;  %v3233_v32 = vld [vmem:[#allocation2 + $0x18] sm:$0xe]  ;;  %v5962_v37 = vrot.slane %v3232_v59, 9  ;;  %v7126_v59 = vld [vmem:[#allocation4 + $0x70] sm:$0xff]  }
 0x29a   : > { %6543 = vmatprep.subr.bf16.mxu1 %v7100_v15  ;;  %v5963_v42 = vrot.slane %v3233_v32, 9 }
 0x29b   : > { %v3017_v35 = vrot.slane %v3016_v47, 4  ;;  %v3259_v58 = vsel %vm7916_vm8, %v5962_v37, %v3258_v16  ;;  %v7116_v47 = vld [vmem:[%s8645_s4 + $0x220] sm:$0xff]  }
 0x29c   : > { %v3263_v41 = vsel %vm7916_vm8, %v5963_v42, %v3262_v43 }
 0x29d   : > { %6544 = vmatpush3.bf16.msra.mxu1 %v7100_v15  ;;  %v8161_v15 = vld [vmem:[#allocation2 + $0x24] sm:$0x1]  ;;  %v3022_v56 = vsel %vm7480_vm2, %v3017_v35, %v3021_v5  ;;  %v5970_v9 = vcombine.low %v3259_v58, %v3263_v41 }
 0x29e   : > { %6553 = vmatprep.subr.bf16.mxu1 %v7102_v54 }
 0x2a0   : > { %6546 = vmatmul.mubr.bf16.vlgmr.msra.gmra.mrb[0].mxu1 %v7101_v36  ;;  %v3071_v36 = vrot.slane %v3069_v46, 5  ;;  %v7115_v46 = vld [vmem:[%s8645_s4 + $0x218] sm:$0xff]  }
 0x2a1   : > { %6549 = vmatprep.mubr.bf16.mxu1 %v7103_v63  ;;  %6554 = vmatpush3.bf16.msra.mxu1 %v7102_v54  ;;  %v7111_v54 = vld [vmem:[%s8645_s4 + $0x1f8] sm:$0xff]   ;;  %v3057_v63 = vrot.slane %v3055_v49, 5  ;;  %v7118_v49 = vld [vmem:[%s8645_s4 + $0x230] sm:$0xff]  }
 0x2a2   : > { %6555 = vmatprep.subr.bf16.mxu1 %v7104_v61 }
 0x2a3   : > { %v3058_v19 = vor.u32 %v3057_v63, %v3054_v13  ;;  %v3266_v13 = vrot.slane %v8161_v15, 5 }
 0x2a5   : > { %6556 = vmatpush3.bf16.msra.mxu1 %v7104_v61  ;;  %v3005_v61 = vshll.u32 %v8161_v15, 16  ;;  %v3059_v6 = vrot.slane %v3058_v19, 4 }
 0x2a6   : > { %6557 = vmatprep.subr.bf16.mxu1 %v7106_v4 }
 0x2a7   : > { %v3064_v44 = vsel %vm7480_vm2, %v3059_v6, %v3063_v38 }
 0x2a8   : > { %6550 = vmatmul.mubr.bf16.gmra.mrb[4].mxu1 %v7105_v11  ;;  %v3045_v11 = vrot.slane %v3044_v57, 4  ;;  %v3270_v57 = vrot.slane %v8157_v45, 5  ;;  %v3238_v45 = vld [vmem:[#allocation2 + $0x40] sm:$0xe] }
 0x2a9   : > { %6558 = vmatpush3.bf16.msra.mxu1 %v7106_v4  ;;  %6569 = vmatprep.mubr.bf16.mxu1 %v5950_v33  ;;  %v3003_v4 = vrot.slane %v3002_v51, 4  ;;  %v3007_v33 = vrot.slane %v3005_v61, 5  ;;  %v3236_v51 = vld [vmem:[#allocation2 + $0x30] sm:$0xe]  ;;  %v3274_v61 = vrot.slane %v8159_v34, 5 }
 0x2aa   : > { %6559 = vmatprep.subr.bf16.mxu1 %v7107_v23  ;;  %v3050_v62 = vsel %vm7480_vm2, %v3045_v11, %v3049_v20  ;;  %v3271_v3 = vsel %vm7916_vm8, %v5965_v55, %v3270_v57  ;;  %v7121_v20 = vld [vmem:[#allocation4 + $0x48] sm:$0xff]  }
 0x2ab   : > { %v3008_v25 = vsel %vm7480_vm2, %v3003_v4, %v3007_v33  ;;  %v3239_v4 = vld [vmem:[#allocation2 + $0x48] sm:$0xe]  ;;  %v3286_v33 = vrot.slane %v8172_v7, 5 }
 0x2ac   : > { %v5951_v18 = vcombine.low %v3008_v25, %v3022_v56  ;;  %v5969_v10 = vrot.slane %v3239_v4, 9  ;;  %v7122_v25 = vld [vmem:[#allocation4 + $0x50] sm:$0xff]  }
 0x2ad   : > { %6560 = vmatpush3.bf16.msra.mxu1 %v7107_v23  ;;  %v3072_v23 = vor.u32 %v3071_v36, %v3068_v60  ;;  %v3237_v60 = vld [vmem:[#allocation2 + $0x38] sm:$0xe]  ;;  %v5966_v36 = vrot.slane %v3236_v51, 9  ;;  %v8267_v51 = vld [vmem:[#allocation2 + $0x4] sm:$0x1] }
 0x2ae   : > { %6561 = vmatprep.subr.bf16.mxu1 %v7108_v24  ;;  %v5967_v63 = vrot.slane %v3237_v60, 9  ;;  %v3287_v19 = vsel %vm7916_vm8, %v5969_v10, %v3286_v33  ;;  %v3672_v60 = vshll.u32 %v8267_v51, 16 }
 0x2af   : > { %v3073_v28 = vrot.slane %v3072_v23, 4  ;;  %v3275_v5 = vsel %vm7916_vm8, %v5966_v36, %v3274_v61  ;;  %v5968_v23 = vrot.slane %v3238_v45, 9 }
 0x2b0   : > { %v3279_v15 = vsel %vm7916_vm8, %v5967_v63, %v3278_v0 }
 0x2b1   : > { %6562 = vmatpush3.bf16.msra.mxu1 %v7108_v24  ;;  %v3075_v24 = vshll.u32 %v8172_v7, 16  ;;  %v5972_v11 = vcombine.low %v3275_v5, %v3279_v15  ;;  %v3283_v56 = vsel %vm7916_vm8, %v5968_v23, %v3282_v53  ;;  %v7124_v7 = vld [vmem:[#allocation4 + $0x60] sm:$0xff]  }
 0x2b2   : > { %6563 = vmatprep.subr.bf16.mxu1 %v7109_v26 }
 0x2b3   : > { %v3077_v30 = vrot.slane %v3075_v24, 5  ;;  %v5973_v24 = vcombine.low %v3283_v56, %v3287_v19 }
 0x2b5   : > { %6564 = vmatpush3.bf16.msra.mxu1 %v7109_v26  ;;  %v5952_v26 = vcombine.low %v3036_v17, %v3050_v62  ;;  %v7120_v17 = vld [vmem:[#allocation4 + $0x40] sm:$0xff]  }
 0x2b6   : > { %6565 = vmatprep.subr.bf16.mxu1 %v7110_v31  ;;  %6601 = vmatprep.subr.bf16.mxu0 %v7120_v17  ;;  %v8238_v62 = vld [vmem:[#allocation4] sm:$0xff]  }
 0x2b7   : > { %6602 = vmatpush3.bf16.msra.mxu0 %v7120_v17  ;;  %v3594_v17 = vld [vmem:[#allocation2 + $0x18] sm:$0xf] }
 0x2b8   : > { %6603 = vmatprep.subr.bf16.mxu0 %v7121_v20 }
 0x2b9   : > { %6566 = vmatpush3.bf16.msra.mxu1 %v7110_v31  ;;  %v3078_v31 = vsel %vm7480_vm2, %v3073_v28, %v3077_v30  ;;  %v8251_v28 = vld [vmem:[%s8647_s6] ss:$0 sm:$0xff] }
 0x2ba   : > { %6567 = vmatprep.subr.bf16.mxu1 %v7111_v54  ;;  %v5953_v40 = vcombine.low %v3064_v44, %v3078_v31 }
 0x2bb   : > { %6604 = vmatpush3.bf16.msra.mxu0 %v7121_v20 }
 0x2bc   : > { %6605 = vmatprep.subr.bf16.mxu0 %v7122_v25 }
 0x2bd   : > { %6568 = vmatpush3.bf16.msra.mxu1 %v7111_v54  ;;  %v3234_v54 = vld [vmem:[#allocation2 + $0x20] sm:$0xe] }
 0x2be   : > { %6577 = vmatprep.subr.bf16.mxu1 %v7112_v8  ;;  %v5964_v35 = vrot.slane %v3234_v54, 9 }
 0x2bf   : > { %6606 = vmatpush3.bf16.msra.mxu0 %v7122_v25 }
 0x2c0   : > { %6570 = vmatmul.mubr.bf16.vlgmr.msra.gmra.mrb[0].mxu1 %v5951_v18  ;;  %v3267_v34 = vsel %vm7916_vm8, %v5964_v35, %v3266_v13  ;;  %6607 = vmatprep.subr.bf16.mxu0 %v7123_v12  ;;  %v7127_v18 = vld [vmem:[#allocation4 + $0x78] sm:$0xff]  }
 0x2c1   : > { %6573 = vmatprep.mubr.bf16.mxu1 %v5952_v26  ;;  %6578 = vmatpush3.bf16.msra.mxu1 %v7112_v8  ;;  %v5971_v8 = vcombine.low %v3267_v34, %v3271_v3  ;;  %v8246_v26 = vld [vmem:[%s8646_s5] ss:$0 sm:$0xff] }
 0x2c2   : > { %6579 = vmatprep.subr.bf16.mxu1 %v7113_v2 }
 0x2c3   : > { %6608 = vmatpush3.bf16.msra.mxu0 %v7123_v12  ;;  %v3597_v12 = vld [vmem:[#allocation2 + $0x1c] sm:$0x1] }
 0x2c4   : > { %6609 = vmatprep.subr.bf16.mxu0 %v7124_v7 }
 0x2c5   : > { %6580 = vmatpush3.bf16.msra.mxu1 %v7113_v2  ;;  %v8241_v2 = vld [vmem:[#allocation2] sm:$0xf] }
 0x2c6   : > { %6581 = vmatprep.subr.bf16.mxu1 %v7114_v39  ;;  %v3663_v30 = vshrl.u32 %v8241_v2, 16  ;;  %v3666_v32 = vshll.u32 %v8241_v2, 16 }
 0x2c7   : > { %6610 = vmatpush3.bf16.msra.mxu0 %v7124_v7 }
 0x2c8   : > { %6574 = vmatmul.mubr.bf16.gmra.mrb[4].mxu1 %v5953_v40  ;;  %6611 = vmatprep.subr.bf16.mxu0 %v7125_v14  ;;  %v8261_v40 = vrot.slane %v3663_v30, 4  ;;  %v8263_v41 = vrot.slane %v3666_v32, 5  ;;  %v3585_v32 = vld [vmem:[#allocation2 + $0xc] sm:$0x1] }
 0x2c9   : > { %6582 = vmatpush3.bf16.msra.mxu1 %v7114_v39  ;;  %6593 = vmatprep.mubr.bf16.mxu1 %v5970_v9 }
 0x2ca   : > { %6583 = vmatprep.subr.bf16.mxu1 %v7115_v46  ;;  %v3669_v57 = vor.u32 %v8263_v41, %v8261_v40  ;;  %v3609_v40 = vld [vmem:[#allocation2 + $0x2c] sm:$0x1] }
 0x2cb   : > { %6612 = vmatpush3.bf16.msra.mxu0 %v7125_v14 }
 0x2cc   : > { %6613 = vmatprep.subr.bf16.mxu0 %v7126_v59 }
 0x2cd   : > { %6584 = vmatpush3.bf16.msra.mxu1 %v7115_v46 }
 0x2ce   : > { %6585 = vmatprep.subr.bf16.mxu1 %v7116_v47 }
 0x2cf   : > { %6614 = vmatpush3.bf16.msra.mxu0 %v7126_v59 }
 0x2d0   : > { %6615 = vmatprep.subr.bf16.mxu0 %v7127_v18 }
 0x2d1   : > { %6586 = vmatpush3.bf16.msra.mxu1 %v7116_v47 }
 0x2d2   : > { %6587 = vmatprep.subr.bf16.mxu1 %v7117_v21 }
 0x2d3   : > { %6616 = vmatpush3.bf16.msra.mxu0 %v7127_v18 }
 0x2d4   : > { %6625 = vmatprep.subr.bf16.mxu0 %v8238_v62 }
 0x2d5   : > { %6588 = vmatpush3.bf16.msra.mxu1 %v7117_v21 }
 0x2d6   : > { %6589 = vmatprep.subr.bf16.mxu1 %v7118_v49 }
 0x2d9   : > { %6590 = vmatpush3.bf16.msra.mxu1 %v7118_v49 }
 0x2da   : > { %6591 = vmatprep.subr.bf16.mxu1 %v7119_v52 }
 0x2dd   : > { %6592 = vmatpush3.bf16.msra.mxu1 %v7119_v52 }
 0x2e0   : > { %6594 = vmatmul.mubr.bf16.vlgmr.msra.gmra.mrb[0].mxu1 %v5971_v8 }
 0x2e1   : > { %6597 = vmatprep.mubr.bf16.mxu1 %v5972_v11 }
 0x2e8   : > { %6598 = vmatmul.mubr.bf16.gmra.mrb[4].mxu1 %v5973_v24 }
 0x3b3   : > { %v6595_v6 = vpop.f32.mrb[0].mxu1 }
 0x3b4   : > { %v3450_v37 = vmul.f32 %v6595_v6, %v8246_v26  ;;  %v3402_v16 = vpop.f32.mrb[1].mxu1 }
 0x3b5   : > { %v3448_v38 = vmul.f32 %v8246_v26, %v3402_v16  ;;  %v6596_v39 = vpop.f32.mrb[2].mxu1 }
 0x3b6   : > { %v3465_v42 = vadd.f32 %v8251_v28, %v3450_v37  ;;  %v3451_v43 = vmul.f32 %v6596_v39, %v8246_v26  ;;  %v3405_v44 = vpop.f32.mrb[3].mxu1 }
 0x3b7   : > { %v3463_v31 = vadd.f32 %v8251_v28, %v3448_v38  ;;  %v3449_v58 = vmul.f32 %v8246_v26, %v3405_v44 }
 0x3b8   : > { %v3473_v46 = vmax.f32 %v3465_v42, 0.0  ;;  %v3466_v9 = vadd.f32 %v8251_v28, %v3451_v43  ;;  %v3600_v42 = vld [vmem:[#allocation2 + $0x20] sm:$0xf]  ;;  %v3603_v43 = vld [vmem:[#allocation2 + $0x24] sm:$0x1] }
 0x3b9   : > { %v3471_v47 = vmax.f32 %v3463_v31, 0.0  ;;  %v3464_v21 = vadd.f32 %v8251_v28, %v3449_v58 }
 0x3ba   : > { %v6141_v49 = vpack.c.bf16 %v3473_v46, %v3473_v46  ;;  %v3474_v50 = vmax.f32 %v3466_v9, 0.0  ;;  %v3588_v9 = vld [vmem:[#allocation2 + $0x10] sm:$0xf] }
 0x3bb   : > { %v6139_v52 = vpack.c.bf16 %v3471_v47, %v3471_v47  ;;  %v3472_v54 = vmax.f32 %v3464_v21, 0.0  ;;  %v6599_v55 = vpop.f32.mrb[4].mxu1  ;;  %v3591_v47 = vld [vmem:[#allocation2 + $0x14] sm:$0x1] }
 0x3bc   : > { %v3520_v36 = vshrl.u32 %v6141_v49, 16  ;;  %v3523_v61 = vshll.u32 %v6141_v49, 16  ;;  %v6142_v35 = vpack.c.bf16 %v3474_v50, %v3474_v50  ;;  %v3454_v13 = vmul.f32 %v6599_v55, %v8246_v26  ;;  %v3418_v63 = vpop.f32.mrb[5].mxu1 }
 0x3bd   : > { %v3504_v0 = vshrl.u32 %v6139_v52, 16  ;;  %v3507_v3 = vshll.u32 %v6139_v52, 16  ;;  %v6140_v4 = vpack.c.bf16 %v3472_v54, %v3472_v54  ;;  %v3452_v5 = vmul.f32 %v8246_v26, %v3418_v63  ;;  %v6600_v45 = vpop.f32.mrb[6].mxu1 }
 0x3be   : > { %v3522_v34 = vrot.slane %v3520_v36, 7  ;;  %v3528_v8 = vshrl.u32 %v6142_v35, 16  ;;  %v3531_v15 = vshll.u32 %v6142_v35, 16  ;;  %v3469_v10 = vadd.f32 %v8251_v28, %v3454_v13  ;;  %v3421_v11 = vpop.f32.mrb[7].mxu1 }
 0x3bf   : > { %v3506_v23 = vrot.slane %v3504_v0, 7  ;;  %v3512_v53 = vshrl.u32 %v6140_v4, 16  ;;  %v3515_v33 = vshll.u32 %v6140_v4, 16  ;;  %v3467_v56 = vadd.f32 %v8251_v28, %v3452_v5  ;;  %v3618_v5 = vld [vmem:[#allocation2 + $0x38] sm:$0xf] }
 0x3c0   : > { %v3525_v19 = vor.u32 %v3523_v61, %v3522_v34  ;;  %v3526_v24 = vrot.slane %v3522_v34, 4  ;;  %v3530_v20 = vrot.slane %v3528_v8, 7  ;;  %v3477_v25 = vmax.f32 %v3469_v10, 0.0  ;;  %v3606_v34 = vld [vmem:[#allocation2 + $0x28] sm:$0xf] }
 0x3c1   : > { %v3509_v7 = vor.u32 %v3507_v3, %v3506_v23  ;;  %v3510_v14 = vrot.slane %v3506_v23, 4  ;;  %v3514_v59 = vrot.slane %v3512_v53, 7  ;;  %v3475_v18 = vmax.f32 %v3467_v56, 0.0 }
 0x3c2   : > { %v3595_v6 = vsel %vm7767_vm5, %v3525_v19, %v3594_v17  ;;  %v3598_v30 = vsel %vm7669_vm0, %v3526_v24, %v3597_v12  ;;  %v3533_v37 = vor.u32 %v3531_v15, %v3530_v20  ;;  %v3534_v16 = vrot.slane %v3530_v20, 4 }
 0x3c3   : > { %3599 = vst [vmem:[#allocation2 + $0x1c] sm:$0x1] %v3598_v30  ;;  %3596 = vst [vmem:[#allocation2 + $0x18] sm:$0xf] %v3595_v6  ;;  %v3583_v38 = vsel %vm7767_vm5, %v3509_v7, %v7983_v1  ;;  %v3586_v39 = vsel %vm7669_vm0, %v3510_v14, %v3585_v32  ;;  %v3517_v44 = vor.u32 %v3515_v33, %v3514_v59  ;;  %v3518_v31 = vrot.slane %v3514_v59, 4 }
 0x3c4   : > { %3584 = vst [vmem:[#allocation2 + $0x8] sm:$0xf] %v3583_v38  ;;  %3587 = vst [vmem:[#allocation2 + $0xc] sm:$0x1] %v3586_v39  ;;  %v3601_v58 = vsel %vm7767_vm5, %v3533_v37, %v3600_v42  ;;  %v3604_v46 = vsel %vm7669_vm0, %v3534_v16, %v3603_v43  ;;  %v6145_v21 = vpack.c.bf16 %v3477_v25, %v3477_v25  ;;  %v8300_v13 = vrot.slane %v3669_v57, 4 }
 0x3c5   : > { %v6143_v49 = vpack.c.bf16 %v3475_v18, %v3475_v18  ;;  %3605 = vst [vmem:[#allocation2 + $0x24] sm:$0x1] %v3604_v46  ;;  %3602 = vst [vmem:[#allocation2 + $0x20] sm:$0xf] %v3601_v58  ;;  %v3589_v1 = vsel %vm7767_vm5, %v3517_v44, %v3588_v9  ;;  %v3592_v50 = vsel %vm7669_vm0, %v3518_v31, %v3591_v47  ;;  %v8304_v63 = vrot.slane %v3672_v60, 5 }
 0x3c6   : > { %v3455_v52 = vmul.f32 %v6600_v45, %v8246_v26  ;;  %v3453_v54 = vmul.f32 %v8246_v26, %v3421_v11  ;;  %3593 = vst [vmem:[#allocation2 + $0x14] sm:$0x1] %v3592_v50  ;;  %3590 = vst [vmem:[#allocation2 + $0x10] sm:$0xf] %v3589_v1  ;;  %v3552_v55 = vshrl.u32 %v6145_v21, 16  ;;  %v3555_v3 = vshll.u32 %v6145_v21, 16 }
 0x3c7   : > { %v3536_v36 = vshrl.u32 %v6143_v49, 16  ;;  %v3539_v4 = vshll.u32 %v6143_v49, 16  ;;  %v3621_v45 = vld [vmem:[#allocation2 + $0x3c] sm:$0x1]  ;;  %v3675_v56 = vsel %vm7480_vm2, %v8300_v13, %v8304_v63  ;;  %v3624_v44 = vld [vmem:[#allocation2 + $0x40] sm:$0xf] }
 0x3c8   : > { %v3470_v61 = vadd.f32 %v8251_v28, %v3455_v52  ;;  %v3468_v35 = vadd.f32 %v8251_v28, %v3453_v54  ;;  %v3554_v0 = vrot.slane %v3552_v55, 7  ;;  %v3627_v31 = vld [vmem:[#allocation2 + $0x44] sm:$0x1]  ;;  %v3612_v58 = vld [vmem:[#allocation2 + $0x30] sm:$0xf] }
 0x3c9   : > { %v3538_v26 = vrot.slane %v3536_v36, 7  ;;  %v3615_v46 = vld [vmem:[#allocation2 + $0x34] sm:$0x1] }
 0x3ca   : > { %v3478_v8 = vmax.f32 %v3470_v61, 0.0  ;;  %v3476_v15 = vmax.f32 %v3468_v35, 0.0  ;;  %v3557_v10 = vor.u32 %v3555_v3, %v3554_v0  ;;  %v3558_v28 = vrot.slane %v3554_v0, 4  ;;  %v8306_v41 = vld [vmem:[#allocation2 + $0x18] sm:$0xf] }
 0x3cb   : > { %v3541_v11 = vor.u32 %v3539_v4, %v3538_v26  ;;  %v3542_v23 = vrot.slane %v3538_v26, 4  ;;  %v8308_v60 = vld [vmem:[#allocation2 + $0x8] sm:$0xf]  ;;  %v8310_v33 = vld [vmem:[#allocation2 + $0xc] sm:$0x1]  ;;  %v3705_v19 = vshrl.u32 %v8306_v41, 16 }
 0x3cc   : > { %v6146_v57 = vpack.c.bf16 %v3478_v8, %v3478_v8  ;;  %v6144_v53 = vpack.c.bf16 %v3476_v15, %v3476_v15  ;;  %v3619_v24 = vsel %vm7767_vm5, %v3557_v10, %v3618_v5  ;;  %v3622_v17 = vsel %vm7669_vm0, %v3558_v28, %v3621_v45  ;;  %v8335_v21 = vld [vmem:[#allocation2 + $0x1c] sm:$0x1]  ;;  %v8338_v36 = vld [vmem:[#allocation2 + $0x20] sm:$0xf] }
 0x3cd   : > { %v3607_v20 = vsel %vm7767_vm5, %v3541_v11, %v3606_v34  ;;  %v3610_v25 = vsel %vm7669_vm0, %v3542_v23, %v3609_v40  ;;  %3623 = vst [vmem:[#allocation2 + $0x3c] sm:$0x1] %v3622_v17  ;;  %3620 = vst [vmem:[#allocation2 + $0x38] sm:$0xf] %v3619_v24  ;;  %v8325_v59 = vld [vmem:[#allocation2 + $0x10] sm:$0xf] }
 0x3ce   : > { %3611 = vst [vmem:[#allocation2 + $0x2c] sm:$0x1] %v3610_v25  ;;  %3608 = vst [vmem:[#allocation2 + $0x28] sm:$0xf] %v3607_v20  ;;  %v3560_v12 = vshrl.u32 %v6146_v57, 16  ;;  %v3563_v7 = vshll.u32 %v6146_v57, 16 }
 0x3cf   : > { %v3544_v14 = vshrl.u32 %v6144_v53, 16  ;;  %v3708_v18 = vshll.u32 %v8306_v41, 16  ;;  %v3677_v6 = vshrl.u32 %v8308_v60, 16  ;;  %v3680_v30 = vshll.u32 %v8308_v60, 16  ;;  %v8331_v37 = vld [vmem:[#allocation2 + $0x14] sm:$0x1] }
 0x3d0   : > { %v3686_v32 = vshll.u32 %v8310_v33, 16  ;;  %v3691_v16 = vshrl.u32 %v8325_v59, 16  ;;  %v3562_v38 = vrot.slane %v3560_v12, 7  ;;  %v3547_v42 = vshll.u32 %v6144_v53, 16  ;;  %v8348_v34 = vld [vmem:[#allocation2 + $0x24] sm:$0x1] }
 0x3d1   : > { %v3546_v39 = vrot.slane %v3544_v14, 7  ;;  %v3694_v43 = vshll.u32 %v8325_v59, 16  ;;  %v3679_v9 = vrot.slane %v3677_v6, 4  ;;  %v3682_v47 = vrot.slane %v3680_v30, 5 }
 0x3d2   : > { %v3693_v49 = vrot.slane %v3691_v16, 4  ;;  %v3700_v1 = vshll.u32 %v8331_v37, 16  ;;  %v3565_v50 = vor.u32 %v3563_v7, %v3562_v38  ;;  %v3566_v52 = vrot.slane %v3562_v38, 4 }
 0x3d3   : > { %v3549_v54 = vor.u32 %v3547_v42, %v3546_v39  ;;  %v3550_v55 = vrot.slane %v3546_v39, 4  ;;  %v3683_v61 = vor.u32 %v3682_v47, %v3679_v9  ;;  %v3688_v35 = vrot.slane %v3686_v32, 5 }
 0x3d4   : > { %v3696_v0 = vrot.slane %v3694_v43, 5  ;;  %v3707_v3 = vrot.slane %v3705_v19, 4  ;;  %v3625_v26 = vsel %vm7767_vm5, %v3565_v50, %v3624_v44  ;;  %v3628_v4 = vsel %vm7669_vm0, %v3566_v52, %v3627_v31  ;;  %v8361_v20 = vld [vmem:[#allocation2 + $0x38] sm:$0xf]  ;;  %v8372_v39 = vld [vmem:[#allocation2 + $0x3c] sm:$0x1] }
 0x3d5   : > { %v3613_v5 = vsel %vm7767_vm5, %v3549_v54, %v3612_v58  ;;  %v3616_v45 = vsel %vm7669_vm0, %v3550_v55, %v3615_v46  ;;  %3629 = vst [vmem:[#allocation2 + $0x44] sm:$0x1] %v3628_v4  ;;  %3626 = vst [vmem:[#allocation2 + $0x40] sm:$0xf] %v3625_v26  ;;  %v3684_v8 = vrot.slane %v3683_v61, 4  ;;  %v3710_v10 = vrot.slane %v3708_v18, 5 }
 0x3d6   : > { %3617 = vst [vmem:[#allocation2 + $0x34] sm:$0x1] %v3616_v45  ;;  %3614 = vst [vmem:[#allocation2 + $0x30] sm:$0xf] %v3613_v5  ;;  %v3697_v15 = vor.u32 %v3696_v0, %v3693_v49  ;;  %v3714_v28 = vshll.u32 %v8335_v21, 16  ;;  %v3702_v23 = vrot.slane %v3700_v1, 5 }
 0x3d7   : > { %v8351_v11 = vld [vmem:[#allocation2 + $0x28] sm:$0xf]  ;;  %v3719_v48 = vshrl.u32 %v8338_v36, 16  ;;  %v3722_v40 = vshll.u32 %v8338_v36, 16  ;;  %v3689_v57 = vsel %vm7480_vm2, %v3684_v8, %v3688_v35  ;;  %v3711_v19 = vor.u32 %v3710_v10, %v3707_v3  ;;  %v8358_v24 = vld [vmem:[#allocation2 + $0x2c] sm:$0x1] }
 0x3d8   : > { %v3733_v27 = vshrl.u32 %v8351_v11, 16  ;;  %v3698_v53 = vrot.slane %v3697_v15, 4  ;;  %v3728_v17 = vshll.u32 %v8348_v34, 16  ;;  %v5992_v25 = vcombine.low %v3675_v56, %v3689_v57  ;;  %v7129_v44 = vld [vmem:[#allocation4 + $0x8] sm:$0xff]   ;;  %v4058_v50 = vld [vmem:[#allocation2 + $0x10] sm:$0xe] }
 0x3d9   : > { %v3716_v12 = vrot.slane %v3714_v28, 5  ;;  %v3721_v7 = vrot.slane %v3719_v48, 4  ;;  %v3724_v14 = vrot.slane %v3722_v40, 5  ;;  %v3712_v6 = vrot.slane %v3711_v19, 4  ;;  %v4059_v4 = vld [vmem:[#allocation2 + $0x18] sm:$0xe] }
 0x3da   : > { %v3703_v18 = vsel %vm7480_vm2, %v3698_v53, %v3702_v23  ;;  %v3735_v30 = vrot.slane %v3733_v27, 4  ;;  %v3736_v32 = vshll.u32 %v8351_v11, 16  ;;  %6617 = vmatprep.mubr.bf16.mxu0 %v5992_v25  ;;  %v3742_v38 = vshll.u32 %v8358_v24, 16  ;;  %v7130_v5 = vld [vmem:[#allocation4 + $0x10] sm:$0xff]   ;;  %v7132_v25 = vld [vmem:[#allocation4 + $0x18] sm:$0xff]  }
 0x3db   : > { %v3725_v16 = vor.u32 %v3724_v14, %v3721_v7  ;;  %v3761_v42 = vshrl.u32 %v8361_v20, 16  ;;  %v3764_v13 = vshll.u32 %v8361_v20, 16  ;;  %v3717_v63 = vsel %vm7480_vm2, %v3712_v6, %v3716_v12  ;;  %v4063_v7 = vld [vmem:[#allocation2 + $0x38] sm:$0xe] }
 0x3dc   : > { %v3738_v56 = vrot.slane %v3736_v32, 5  ;;  %v5993_v43 = vcombine.low %v3703_v18, %v3717_v63  ;;  %v3730_v31 = vrot.slane %v3728_v17, 5  ;;  %v3744_v52 = vrot.slane %v3742_v38, 5 }
 0x3dd   : > { %v8378_v58 = vld [vmem:[#allocation2 + $0x30] sm:$0xf]  ;;  %v3660_v46 = vld [vmem:[#allocation2 + $0x34] sm:$0x1]  ;;  %v3726_v9 = vrot.slane %v3725_v16, 4  ;;  %v3763_v54 = vrot.slane %v3761_v42, 4  ;;  %v6004_v32 = vcombine.low %v8241_v2, %v8308_v60 }
 0x3de   : > { %v3739_v47 = vor.u32 %v3738_v56, %v3735_v30  ;;  %v3747_v49 = vshrl.u32 %v8378_v58, 16  ;;  %v3750_v1 = vshll.u32 %v8378_v58, 16  ;;  %6618 = vmatmul.mubr.bf16.vlgmr.msra.gmra.mrb[8].mxu0 %v5993_v43  ;;  %v3766_v55 = vrot.slane %v3764_v13, 5  ;;  %v4062_v17 = vld [vmem:[#allocation2 + $0x30] sm:$0xe]  ;;  %v7134_v2 = vld [vmem:[#allocation4 + $0x28] sm:$0xff]  }
 0x3df   : > { %v3770_v61 = vshll.u32 %v8372_v39, 16  ;;  %6626 = vmatpush3.bf16.msra.mxu0 %v8238_v62  ;;  %v3756_v26 = vshll.u32 %v3660_v46, 16  ;;  %v3731_v8 = vsel %vm7480_vm2, %v3726_v9, %v3730_v31  ;;  %v6018_v28 = vrot.slane %v4058_v50, 9  ;;  %v7133_v13 = vld [vmem:[#allocation4 + $0x20] sm:$0xff]   ;;  %v7135_v60 = vld [vmem:[#allocation4 + $0x30] sm:$0xff]  }
 0x3e0   : > { %v3740_v35 = vrot.slane %v3739_v47, 4  ;;  %v3749_v0 = vrot.slane %v3747_v49, 4  ;;  %v3752_v3 = vrot.slane %v3750_v1, 5  ;;  %6627 = vmatprep.subr.bf16.mxu0 %v7129_v44  ;;  %v3767_v45 = vor.u32 %v3766_v55, %v3763_v54  ;;  %v4056_v31 = vld [vmem:[#allocation2] sm:$0xe]  ;;  %v7140_v47 = vld [vmem:[#allocation4 + $0x88] sm:$0xff]  }
 0x3e1   : > { %v4090_v62 = vrot.slane %v8331_v37, 5  ;;  %v6019_v40 = vrot.slane %v4059_v4, 9  ;;  %v3758_v57 = vrot.slane %v3756_v26, 5  ;;  %v3772_v53 = vrot.slane %v3770_v61, 5  ;;  %v7142_v55 = vld [vmem:[#allocation4 + $0x90] sm:$0xff]   ;;  %v7148_v4 = vld [vmem:[#allocation4 + $0xc0] sm:$0xff]  }
 0x3e2   : > { %v3745_v15 = vsel %vm7480_vm2, %v3740_v35, %v3744_v52  ;;  %v3753_v10 = vor.u32 %v3752_v3, %v3749_v0  ;;  %v3768_v48 = vrot.slane %v3767_v45, 4  ;;  %v4094_v19 = vrot.slane %v8335_v21, 5  ;;  %v7146_v35 = vld [vmem:[#allocation4 + $0xb0] sm:$0xff]   ;;  %v4061_v0 = vld [vmem:[#allocation2 + $0x28] sm:$0xe] }
 0x3e3   : > { %v5994_v23 = vcombine.low %v3731_v8, %v3745_v15  ;;  %6628 = vmatpush3.bf16.msra.mxu0 %v7129_v44  ;;  %v8392_v12 = vsel %vm7916_vm8, %v6018_v28, %v4090_v62  ;;  %v6022_v30 = vrot.slane %v4062_v17, 9  ;;  %v4106_v16 = vrot.slane %v3660_v46, 5  ;;  %v7138_v44 = vld [vmem:[#allocation4 + $0x80] sm:$0xff]   ;;  %v4057_v46 = vld [vmem:[#allocation2 + $0x8] sm:$0xe]  ;;  %v7154_v62 = vld [vmem:[#allocation4 + $0xe8] sm:$0xff]  }
 0x3e4   : > { %v3754_v27 = vrot.slane %v3753_v10, 4  ;;  %6629 = vmatprep.subr.bf16.mxu0 %v7130_v5  ;;  %v3773_v37 = vsel %vm7480_vm2, %v3768_v48, %v3772_v53  ;;  %v8400_v18 = vsel %vm7916_vm8, %v6019_v40, %v4094_v19  ;;  %v6023_v38 = vrot.slane %v4063_v7, 9  ;;  %v7147_v3 = vld [vmem:[#allocation4 + $0xb8] sm:$0xff]   ;;  %v4060_v26 = vld [vmem:[#allocation2 + $0x20] sm:$0xe]  ;;  %v7149_v10 = vld [vmem:[#allocation4 + $0xc8] sm:$0xff]  }
 0x3e5   : > { %6621 = vmatprep.mubr.bf16.mxu0 %v5994_v23  ;;  %v6025_v6 = vcombine.low %v8392_v12, %v8400_v18  ;;  %v4110_v42 = vrot.slane %v8372_v39, 5  ;;  %v8409_v63 = vsel %vm7916_vm8, %v6022_v30, %v4106_v16  ;;  %v7136_v39 = vld [vmem:[#allocation4 + $0x38] sm:$0xff]   ;;  %v6005_v9 = vcombine.low %v8325_v59, %v8306_v41  ;;  %v7153_v48 = vld [vmem:[#allocation4 + $0xe0] sm:$0xff]   ;;  %v7157_v16 = vld [vmem:[#allocation2 + $0x18] ss:$8 sps:$4 sm:$0xff]  }
 0x3e6   : > { %v3759_v14 = vsel %vm7480_vm2, %v3754_v27, %v3758_v57  ;;  %v6006_v49 = vcombine.low %v8338_v36, %v8351_v11  ;;  %v6016_v1 = vrot.slane %v4056_v31, 9  ;;  %v4082_v50 = vrot.slane %v8267_v51, 5  ;;  %v7143_v36 = vld [vmem:[#allocation4 + $0x98] sm:$0xff]   ;;  %v7145_v11 = vld [vmem:[#allocation4 + $0xa8] sm:$0xff]   ;;  %v4436_v40 = vld [vmem:[#allocation2 + $0x10] sm:$0xf] }
 0x3e7   : > { %v5995_v21 = vcombine.low %v3759_v14, %v3773_v37  ;;  %6630 = vmatpush3.bf16.msra.mxu0 %v7130_v5  ;;  %v8413_v56 = vsel %vm7916_vm8, %v6023_v38, %v4110_v42  ;;  %v6017_v52 = vrot.slane %v4057_v46, 9  ;;  %v4086_v54 = vrot.slane %v8310_v33, 5  ;;  %v7144_v33 = vld [vmem:[#allocation4 + $0xa0] sm:$0xff]   ;;  %v7155_v27 = vld [vmem:[#allocation4 + $0xf0] sm:$0xff]   ;;  %v4434_v57 = vld [vmem:[#allocation2 + $0x8] sm:$0xf] }
 0x3e8   : > { %6631 = vmatprep.subr.bf16.mxu0 %v7132_v25  ;;  %v6027_v43 = vcombine.low %v8409_v63, %v8413_v56  ;;  %v4083_v61 = vsel %vm7916_vm8, %v6016_v1, %v4082_v50  ;;  %v6007_v59 = vcombine.low %v8378_v58, %v8361_v20  ;;  %v6021_v20 = vrot.slane %v4061_v0, 9  ;;  %v7151_v23 = vld [vmem:[#allocation2 + $0x8] ss:$8 sps:$4 sm:$0xff]   ;;  %v7160_v38 = vld [vmem:[#allocation4 + $0x108] sm:$0xff]   ;;  %v4440_v1 = vld [vmem:[#allocation2 + $0x20] sm:$0xf] }
 0x3e9   : > { %6622 = vmatmul.mubr.bf16.gmra.mrb[12].mxu0 %v5995_v21  ;;  %v4087_v41 = vsel %vm7916_vm8, %v6017_v52, %v4086_v54  ;;  %v4102_v58 = vrot.slane %v8358_v24, 5  ;;  %v6020_v5 = vrot.slane %v4060_v26, 9  ;;  %v4098_v45 = vrot.slane %v8348_v34, 5  ;;  %v7150_v24 = vld [vmem:[#allocation4 + $0xd0] sm:$0xff]   ;;  %v7152_v34 = vld [vmem:[#allocation4 + $0xd8] sm:$0xff]   ;;  %v7158_v37 = vld [vmem:[#allocation4 + $0x100] sm:$0xff]  }
 0x3ea   : > { %6641 = vmatprep.mubr.bf16.mxu0 %v6004_v32  ;;  %v6024_v51 = vcombine.low %v4083_v61, %v4087_v41  ;;  %v4465_v53 = vshrl.u32 %v4436_v40, 16  ;;  %v4468_v19 = vshll.u32 %v4436_v40, 16  ;;  %v7156_v17 = vld [vmem:[#allocation4 + $0xf8] sm:$0xff]   ;;  %v4454_v12 = vshll.u32 %v4434_v57, 16  ;;  %v7161_v46 = vld [vmem:[#allocation2 + $0x38] ss:$8 sps:$4 sm:$0xff]  }
 0x3eb   : > { %6632 = vmatpush3.bf16.msra.mxu0 %v7132_v25  ;;  %v4103_v8 = vsel %vm7916_vm8, %v6021_v20, %v4102_v58  ;;  %v4099_v15 = vsel %vm7916_vm8, %v6020_v5, %v4098_v45  ;;  %v4451_v25 = vshrl.u32 %v4434_v57, 16  ;;  %v8443_v32 = vld [vmem:[#allocation2 + $0xc] sm:$0x1]  ;;  %v7159_v63 = vld [vmem:[#allocation2 + $0x28] ss:$8 sps:$4 sm:$0xff]   ;;  %v4496_v61 = vshll.u32 %v4440_v1, 16 }
 0x3ec   : > { %6633 = vmatprep.subr.bf16.mxu0 %v7133_v13  ;;  %v6026_v28 = vcombine.low %v4099_v15, %v4103_v8  ;;  %v4467_v7 = vrot.slane %v4465_v53, 4  ;;  %v4470_v14 = vrot.slane %v4468_v19, 5  ;;  %v4456_v21 = vrot.slane %v4454_v12, 5  ;;  %v4444_v50 = vld [vmem:[#allocation2 + $0x30] sm:$0xf]  ;;  %v7166_v5 = vld [vmem:[#allocation4 + $0x130] sm:$0xff]  }
 0x3ed   : > { %v4453_v18 = vrot.slane %v4451_v25, 4  ;;  %v4460_v56 = vshll.u32 %v8443_v32, 16  ;;  %v7164_v52 = vld [vmem:[#allocation4 + $0x120] sm:$0xff]   ;;  %v4438_v54 = vld [vmem:[#allocation2 + $0x18] sm:$0xf]  ;;  %v4498_v26 = vrot.slane %v4496_v61, 5 }
 0x3ee   : > { %v4471_v30 = vor.u32 %v4470_v14, %v4467_v7  ;;  %v4442_v41 = vld [vmem:[#allocation2 + $0x28] sm:$0xf]  ;;  %v8451_v15 = vld [vmem:[#allocation2 + $0x24] sm:$0x1]  ;;  %v8455_v40 = vld [vmem:[#allocation2 + $0x1c] sm:$0x1] }
 0x3ef   : > { %6634 = vmatpush3.bf16.msra.mxu0 %v7133_v13  ;;  %v4457_v42 = vor.u32 %v4456_v21, %v4453_v18  ;;  %v4510_v0 = vshll.u32 %v4442_v41, 16  ;;  %v4502_v53 = vshll.u32 %v8451_v15, 16  ;;  %v8458_v19 = vld [vmem:[#allocation2 + $0x2c] sm:$0x1] }
 0x3f0   : > { %6635 = vmatprep.subr.bf16.mxu0 %v7134_v2  ;;  %v7167_v12 = vld [vmem:[#allocation4 + $0x138] sm:$0xff]  }
 0x3f3   : > { %6636 = vmatpush3.bf16.msra.mxu0 %v7134_v2  ;;  %v7162_v2 = vld [vmem:[#allocation4 + $0x110] sm:$0xff]  }
 0x3f4   : > { %6637 = vmatprep.subr.bf16.mxu0 %v7135_v60 }
 0x3f7   : > { %6638 = vmatpush3.bf16.msra.mxu0 %v7135_v60  ;;  %v4458_v60 = vrot.slane %v4457_v42, 4 }
 0x3f8   : > { %6639 = vmatprep.subr.bf16.mxu0 %v7136_v39 }
 0x3fb   : > { %6640 = vmatpush3.bf16.msra.mxu0 %v7136_v39 }
 0x3fc   : > { %6649 = vmatprep.subr.bf16.mxu0 %v7138_v44 }
 0x3fe   : > { %6642 = vmatmul.mubr.bf16.vlgmr.msra.gmra.mrb[8].mxu0 %v6005_v9 }
 0x3ff   : > { %6645 = vmatprep.mubr.bf16.mxu0 %v6006_v49  ;;  %6650 = vmatpush3.bf16.msra.mxu0 %v7138_v44  ;;  %v4462_v44 = vrot.slane %v4460_v56, 5 }
 0x400   : > { %6651 = vmatprep.subr.bf16.mxu0 %v7140_v47 }
 0x401   : > { %v4463_v9 = vsel %vm7480_vm2, %v4458_v60, %v4462_v44 }
 0x403   : > { %6652 = vmatpush3.bf16.msra.mxu0 %v7140_v47  ;;  %v7163_v47 = vld [vmem:[#allocation4 + $0x118] sm:$0xff]  }
 0x404   : > { %6653 = vmatprep.subr.bf16.mxu0 %v7142_v55 }
 0x406   : > { %6646 = vmatmul.mubr.bf16.gmra.mrb[12].mxu0 %v6007_v59  ;;  %v4521_v59 = vshrl.u32 %v4444_v50, 16 }
 0x407   : > { %6654 = vmatpush3.bf16.msra.mxu0 %v7142_v55  ;;  %6665 = vmatprep.mubr.bf16.mxu0 %v6024_v51  ;;  %v4493_v55 = vshrl.u32 %v4440_v1, 16  ;;  %v4479_v51 = vshrl.u32 %v4438_v54, 16 }
 0x408   : > { %6655 = vmatprep.subr.bf16.mxu0 %v7143_v36  ;;  %v4523_v20 = vrot.slane %v4521_v59, 4 }
 0x409   : > { %v4481_v45 = vrot.slane %v4479_v51, 4 }
 0x40b   : > { %6656 = vmatpush3.bf16.msra.mxu0 %v7143_v36  ;;  %v4524_v36 = vshll.u32 %v4444_v50, 16 }
 0x40c   : > { %6657 = vmatprep.subr.bf16.mxu0 %v7144_v33 }
 0x40d   : > { %v4526_v58 = vrot.slane %v4524_v36, 5 }
 0x40f   : > { %6658 = vmatpush3.bf16.msra.mxu0 %v7144_v33  ;;  %v4482_v33 = vshll.u32 %v4438_v54, 16  ;;  %v4716_v54 = vld [vmem:[#allocation2 + $0x10] sm:$0xe] }
 0x410   : > { %6659 = vmatprep.subr.bf16.mxu0 %v7145_v11 }
 0x411   : > { %v4484_v8 = vrot.slane %v4482_v33, 5  ;;  %v4715_v33 = vld [vmem:[#allocation2 + $0x8] sm:$0xe] }
 0x413   : > { %6660 = vmatpush3.bf16.msra.mxu0 %v7145_v11  ;;  %v7165_v11 = vld [vmem:[#allocation4 + $0x128] sm:$0xff]   ;;  %v4485_v57 = vor.u32 %v4484_v8, %v4481_v45 }
 0x414   : > { %6661 = vmatprep.subr.bf16.mxu0 %v7146_v35 }
 0x415   : > { %v4486_v42 = vrot.slane %v4485_v57, 4  ;;  %v7175_v57 = vld [vmem:[#allocation4 + $0x178] sm:$0xff]  }
 0x417   : > { %6662 = vmatpush3.bf16.msra.mxu0 %v7146_v35  ;;  %v4507_v35 = vshrl.u32 %v4442_v41, 16  ;;  %v7169_v41 = vld [vmem:[#allocation4 + $0x148] sm:$0xff]  }
 0x418   : > { %6663 = vmatprep.subr.bf16.mxu0 %v7147_v3 }
 0x41b   : > { %6664 = vmatpush3.bf16.msra.mxu0 %v7147_v3  ;;  %v4495_v3 = vrot.slane %v4493_v55, 4 }
 0x41c   : > { %6673 = vmatprep.subr.bf16.mxu0 %v7148_v4 }
 0x41e   : > { %6666 = vmatmul.mubr.bf16.vlgmr.msra.gmra.mrb[8].mxu0 %v6025_v6  ;;  %v8441_v6 = vld [vmem:[#allocation2 + $0x14] sm:$0x1] }
 0x41f   : > { %6669 = vmatprep.mubr.bf16.mxu0 %v6026_v28  ;;  %6674 = vmatpush3.bf16.msra.mxu0 %v7148_v4  ;;  %v4474_v13 = vshll.u32 %v8441_v6, 16  ;;  %v4448_v4 = vld [vmem:[#allocation2 + $0x40] sm:$0xf]  ;;  %v4512_v28 = vrot.slane %v4510_v0, 5 }
 0x420   : > { %6675 = vmatprep.subr.bf16.mxu0 %v7149_v10 }
 0x421   : > { %v4476_v39 = vrot.slane %v4474_v13, 5  ;;  %v4504_v13 = vrot.slane %v4502_v53, 5  ;;  %v4717_v53 = vld [vmem:[#allocation2 + $0x18] sm:$0xe] }
 0x423   : > { %6676 = vmatpush3.bf16.msra.mxu0 %v7149_v10  ;;  %v4509_v10 = vrot.slane %v4507_v35, 4  ;;  %v4745_v35 = vrot.slane %v8441_v6, 5 }
 0x424   : > { %6677 = vmatprep.subr.bf16.mxu0 %v7150_v24 }
 0x425   : > { %v4513_v7 = vor.u32 %v4512_v28, %v4509_v10  ;;  %v7171_v28 = vld [vmem:[#allocation4 + $0x158] sm:$0xff]  }
 0x426   : > { %6670 = vmatmul.mubr.bf16.gmra.mrb[12].mxu0 %v6027_v43  ;;  %v4472_v43 = vrot.slane %v4471_v30, 4 }
 0x427   : > { %6678 = vmatpush3.bf16.msra.mxu0 %v7150_v24  ;;  %6689 = vmatprep.mubr.bf16.mxu0 %v7151_v23  ;;  %v4446_v24 = vld [vmem:[#allocation2 + $0x38] sm:$0xf]  ;;  %v8453_v23 = vld [vmem:[#allocation2 + $0x34] sm:$0x1] }
 0x428   : > { %6679 = vmatprep.subr.bf16.mxu0 %v7152_v34  ;;  %v4477_v31 = vsel %vm7480_vm2, %v4472_v43, %v4476_v39  ;;  %v4538_v25 = vshll.u32 %v4446_v24, 16  ;;  %v4530_v14 = vshll.u32 %v8453_v23, 16  ;;  %v7168_v43 = vld [vmem:[#allocation4 + $0x140] sm:$0xff]   ;;  %v8463_v39 = vld [vmem:[#allocation2 + $0x44] sm:$0x1] }
 0x429   : > { %v6048_v49 = vcombine.low %v4463_v9, %v4477_v31 }
 0x42a   : > { %v4540_v56 = vrot.slane %v4538_v25, 5  ;;  %v4532_v60 = vrot.slane %v4530_v14, 5  ;;  %v4753_v25 = vrot.slane %v8451_v15, 5  ;;  %v4761_v14 = vrot.slane %v8453_v23, 5  ;;  %v4722_v15 = vld [vmem:[#allocation2 + $0x40] sm:$0xe] }
 0x42b   : > { %6680 = vmatpush3.bf16.msra.mxu0 %v7152_v34  ;;  %v4499_v34 = vor.u32 %v4498_v26, %v4495_v3  ;;  %v7170_v26 = vld [vmem:[#allocation4 + $0x150] sm:$0xff]  }
 0x42c   : > { %6681 = vmatprep.subr.bf16.mxu0 %v7153_v48 }
 0x42d   : > { %v4500_v18 = vrot.slane %v4499_v34, 4  ;;  %v7173_v34 = vld [vmem:[#allocation4 + $0x168] sm:$0xff]  }
 0x42f   : > { %6682 = vmatpush3.bf16.msra.mxu0 %v7153_v48  ;;  %v4549_v48 = vshrl.u32 %v4448_v4, 16  ;;  %v4505_v31 = vsel %vm7480_vm2, %v4500_v18, %v4504_v13  ;;  %v4749_v18 = vrot.slane %v8455_v40, 5 }
 0x430   : > { %6683 = vmatprep.subr.bf16.mxu0 %v7154_v62 }
 0x431   : > { %v4551_v21 = vrot.slane %v4549_v48, 4  ;;  %v7174_v48 = vld [vmem:[#allocation4 + $0x170] sm:$0xff]  }
 0x433   : > { %6684 = vmatpush3.bf16.msra.mxu0 %v7154_v62  ;;  %v4552_v62 = vshll.u32 %v4448_v4, 16 }
 0x434   : > { %6685 = vmatprep.subr.bf16.mxu0 %v7155_v27 }
 0x435   : > { %v4554_v30 = vrot.slane %v4552_v62, 5  ;;  %v4718_v62 = vld [vmem:[#allocation2 + $0x20] sm:$0xe] }
 0x437   : > { %6686 = vmatpush3.bf16.msra.mxu0 %v7155_v27  ;;  %v4527_v27 = vor.u32 %v4526_v58, %v4523_v20  ;;  %v6060_v20 = vrot.slane %v4715_v33, 9  ;;  %v4741_v58 = vrot.slane %v8443_v32, 5  ;;  %v7172_v32 = vld [vmem:[#allocation4 + $0x160] sm:$0xff]  }
 0x438   : > { %6687 = vmatprep.subr.bf16.mxu0 %v7156_v17 }
 0x439   : > { %v4742_v10 = vsel %vm7916_vm8, %v6060_v20, %v4741_v58  ;;  %v8507_v58 = vld [vmem:[#allocation2 + $0x1c] sm:$0x1] }
 0x43b   : > { %6688 = vmatpush3.bf16.msra.mxu0 %v7156_v17  ;;  %v4535_v17 = vshrl.u32 %v4446_v24, 16 }
 0x43c   : > { %6697 = vmatprep.subr.bf16.mxu0 %v7158_v37 }
 0x43e   : > { %6690 = vmatmul.mubr.bf16.vlgmr.msra.gmra.mrb[8].mxu0 %v7157_v16  ;;  %v4516_v16 = vshll.u32 %v8458_v19, 16 }
 0x43f   : > { %6693 = vmatprep.mubr.bf16.mxu0 %v7159_v63  ;;  %6698 = vmatpush3.bf16.msra.mxu0 %v7158_v37  ;;  %v4488_v37 = vshll.u32 %v8455_v40, 16  ;;  %v4537_v63 = vrot.slane %v4535_v17, 4  ;;  %v6063_v17 = vrot.slane %v4718_v62, 9 }
 0x440   : > { %6699 = vmatprep.subr.bf16.mxu0 %v7160_v38  ;;  %v4518_v9 = vrot.slane %v4516_v16, 5  ;;  %v4757_v16 = vrot.slane %v8458_v19, 5  ;;  %v6067_v19 = vrot.slane %v4722_v15, 9  ;;  %v7193_v15 = vld [vmem:[#allocation4 + $0x1e8] sm:$0xff]  }
 0x441   : > { %v4490_v44 = vrot.slane %v4488_v37, 5  ;;  %v4541_v50 = vor.u32 %v4540_v56, %v4537_v63  ;;  %v6062_v37 = vrot.slane %v4717_v53, 9  ;;  %v7177_v63 = vld [vmem:[#allocation4 + $0x188] sm:$0xff]   ;;  %v7191_v53 = vld [vmem:[#allocation4 + $0x1d8] sm:$0xff]  }
 0x442   : > { %v4721_v56 = vld [vmem:[#allocation2 + $0x38] sm:$0xe] }
 0x443   : > { %6700 = vmatpush3.bf16.msra.mxu0 %v7160_v38  ;;  %v4528_v38 = vrot.slane %v4527_v27, 4  ;;  %v4491_v1 = vsel %vm7480_vm2, %v4486_v42, %v4490_v44  ;;  %v4542_v0 = vrot.slane %v4541_v50, 4  ;;  %v4720_v27 = vld [vmem:[#allocation2 + $0x30] sm:$0xe]  ;;  %v4750_v23 = vsel %vm7916_vm8, %v6062_v37, %v4749_v18 }
 0x444   : > { %6701 = vmatprep.subr.bf16.mxu0 %v7162_v2  ;;  %v6049_v55 = vcombine.low %v4491_v1, %v4505_v31  ;;  %v7178_v31 = vld [vmem:[#allocation4 + $0x190] sm:$0xff]   ;;  %v7180_v1 = vld [vmem:[#allocation4 + $0x198] sm:$0xff]   ;;  %v7179_v50 = vld [vmem:[#allocation2 + $0x10] ss:$8 sps:$4 sm:$0xff]  }
 0x446   : > { %6694 = vmatmul.mubr.bf16.gmra.mrb[12].mxu0 %v7161_v46  ;;  %v4555_v46 = vor.u32 %v4554_v30, %v4551_v21  ;;  %v7176_v21 = vld [vmem:[#allocation4 + $0x180] sm:$0xff]  }
 0x447   : > { %6702 = vmatpush3.bf16.msra.mxu0 %v7162_v2  ;;  %6713 = vmatprep.mubr.bf16.mxu0 %v6048_v49  ;;  %v4514_v2 = vrot.slane %v4513_v7, 4  ;;  %v8469_v49 = vld [vmem:[#allocation2 + $0x3c] sm:$0x1]  ;;  %v6065_v7 = vrot.slane %v4720_v27, 9  ;;  %v7189_v27 = vld [vmem:[#allocation2 + $0x40] ss:$8 sps:$4 sm:$0xff]  }
 0x448   : > { %6703 = vmatprep.subr.bf16.mxu0 %v7163_v47  ;;  %v4544_v36 = vshll.u32 %v8469_v49, 16  ;;  %v4556_v51 = vrot.slane %v4555_v46, 4  ;;  %v4765_v44 = vrot.slane %v8469_v49, 5  ;;  %v7182_v49 = vld [vmem:[#allocation4 + $0x1a8] sm:$0xff]  }
 0x449   : > { %v4519_v61 = vsel %vm7480_vm2, %v4514_v2, %v4518_v9  ;;  %v4762_v42 = vsel %vm7916_vm8, %v6065_v7, %v4761_v14  ;;  %v4769_v2 = vrot.slane %v8463_v39, 5  ;;  %v7192_v7 = vld [vmem:[#allocation4 + $0x1e0] sm:$0xff]   ;;  %v5097_v14 = vld [vmem:[#allocation2 + $0x20] sm:$0xf] }
 0x44a   : > { %v4546_v4 = vrot.slane %v4544_v36, 5 }
 0x44b   : > { %6704 = vmatpush3.bf16.msra.mxu0 %v7163_v47  ;;  %v4533_v47 = vsel %vm7480_vm2, %v4528_v38, %v4532_v60  ;;  %v4754_v38 = vsel %vm7916_vm8, %v6063_v17, %v4753_v25  ;;  %v6066_v60 = vrot.slane %v4721_v56, 9  ;;  %v4770_v46 = vsel %vm7916_vm8, %v6067_v19, %v4769_v2  ;;  %v5099_v25 = vld [vmem:[#allocation2 + $0x28] sm:$0xf]  ;;  %v5105_v2 = vld [vmem:[#allocation2 + $0x40] sm:$0xf] }
 0x44c   : > { %6705 = vmatprep.subr.bf16.mxu0 %v7164_v52  ;;  %v6050_v59 = vcombine.low %v4519_v61, %v4533_v47  ;;  %v4547_v6 = vsel %vm7480_vm2, %v4542_v0, %v4546_v4  ;;  %v6069_v13 = vcombine.low %v4750_v23, %v4754_v38  ;;  %v7185_v4 = vld [vmem:[#allocation2 + $0x20] ss:$8 sps:$4 sm:$0xff]   ;;  %v5152_v37 = vshrl.u32 %v5099_v25, 16 }
 0x44d   : > { %v4766_v9 = vsel %vm7916_vm8, %v6066_v60, %v4765_v44  ;;  %v5155_v18 = vshll.u32 %v5099_v25, 16  ;;  %v5138_v38 = vshrl.u32 %v5097_v14, 16 }
 0x44e   : > { %v6071_v47 = vcombine.low %v4766_v9, %v4770_v46  ;;  %v7194_v46 = vld [vmem:[#allocation4 + $0x1f0] sm:$0xff]   ;;  %v8515_v9 = vld [vmem:[#allocation2 + $0x2c] sm:$0x1] }
 0x44f   : > { %6706 = vmatpush3.bf16.msra.mxu0 %v7164_v52  ;;  %v4558_v52 = vshll.u32 %v8463_v39, 16  ;;  %v7181_v39 = vld [vmem:[#allocation4 + $0x1a0] sm:$0xff]   ;;  %v5157_v56 = vrot.slane %v5155_v18, 5  ;;  %v5140_v60 = vrot.slane %v5138_v38, 4 }
 0x450   : > { %6707 = vmatprep.subr.bf16.mxu0 %v7165_v11 }
 0x451   : > { %v4560_v3 = vrot.slane %v4558_v52, 5  ;;  %v5093_v52 = vld [vmem:[#allocation2 + $0x10] sm:$0xf] }
 0x452   : > { %v5110_v61 = vshrl.u32 %v5093_v52, 16 }
 0x453   : > { %6708 = vmatpush3.bf16.msra.mxu0 %v7165_v11  ;;  %v6061_v11 = vrot.slane %v4716_v54, 9  ;;  %v7183_v54 = vld [vmem:[#allocation4 + $0x1b0] sm:$0xff]  }
 0x454   : > { %6709 = vmatprep.subr.bf16.mxu0 %v7166_v5  ;;  %v5112_v33 = vrot.slane %v5110_v61, 4 }
 0x455   : > { %v4746_v45 = vsel %vm7916_vm8, %v6061_v11, %v4745_v35  ;;  %v7186_v35 = vld [vmem:[#allocation4 + $0x1c0] sm:$0xff]  }
 0x456   : > { %v6068_v24 = vcombine.low %v4742_v10, %v4746_v45 }
 0x457   : > { %6710 = vmatpush3.bf16.msra.mxu0 %v7166_v5  ;;  %v4561_v5 = vsel %vm7480_vm2, %v4556_v51, %v4560_v3 }
 0x458   : > { %6711 = vmatprep.subr.bf16.mxu0 %v7167_v12  ;;  %v6051_v8 = vcombine.low %v4547_v6, %v4561_v5  ;;  %v7188_v5 = vld [vmem:[#allocation4 + $0x1c8] sm:$0xff]  }
 0x45b   : > { %6712 = vmatpush3.bf16.msra.mxu0 %v7167_v12  ;;  %v4719_v12 = vld [vmem:[#allocation2 + $0x28] sm:$0xe] }
 0x45c   : > { %6721 = vmatprep.subr.bf16.mxu0 %v7168_v43  ;;  %v6064_v30 = vrot.slane %v4719_v12, 9  ;;  %v5101_v12 = vld [vmem:[#allocation2 + $0x30] sm:$0xf] }
 0x45e   : > { %6714 = vmatmul.mubr.bf16.vlgmr.msra.gmra.mrb[8].mxu0 %v6049_v55  ;;  %v4758_v40 = vsel %vm7916_vm8, %v6064_v30, %v4757_v16  ;;  %v5095_v55 = vld [vmem:[#allocation2 + $0x18] sm:$0xf]  ;;  %v5166_v30 = vshrl.u32 %v5101_v12, 16  ;;  %v5169_v16 = vshll.u32 %v5101_v12, 16 }
 0x45f   : > { %6717 = vmatprep.mubr.bf16.mxu0 %v6050_v59  ;;  %6722 = vmatpush3.bf16.msra.mxu0 %v7168_v43  ;;  %v6070_v43 = vcombine.low %v4758_v40, %v4762_v42  ;;  %v7184_v59 = vld [vmem:[#allocation4 + $0x1b8] sm:$0xff]   ;;  %v5124_v36 = vshrl.u32 %v5095_v55, 16  ;;  %v5127_v51 = vshll.u32 %v5095_v55, 16  ;;  %v5141_v42 = vshll.u32 %v5097_v14, 16  ;;  %v8519_v55 = vld [vmem:[#allocation2 + $0x24] sm:$0x1] }
 0x460   : > { %6723 = vmatprep.subr.bf16.mxu0 %v7169_v41  ;;  %v5107_v40 = vld [vmem:[#allocation2 + $0x48] sm:$0xf]  ;;  %v5171_v19 = vrot.slane %v5169_v16, 5 }
 0x461   : > { %v5126_v0 = vrot.slane %v5124_v36, 4  ;;  %v5129_v3 = vrot.slane %v5127_v51, 5  ;;  %v5143_v44 = vrot.slane %v5141_v42, 5  ;;  %v8522_v36 = vld [vmem:[#allocation2 + $0x3c] sm:$0x1]  ;;  %v7195_v51 = vld [vmem:[#allocation4 + $0x1f8] sm:$0xff]  }
 0x463   : > { %6724 = vmatpush3.bf16.msra.mxu0 %v7169_v41  ;;  %v5113_v41 = vshll.u32 %v5093_v52, 16  ;;  %v5130_v6 = vor.u32 %v5129_v3, %v5126_v0  ;;  %v5194_v52 = vshrl.u32 %v5105_v2, 16  ;;  %v5147_v3 = vshll.u32 %v8519_v55, 16 }
 0x464   : > { %6725 = vmatprep.subr.bf16.mxu0 %v7170_v26 }
 0x465   : > { %v5115_v11 = vrot.slane %v5113_v41, 5  ;;  %v5144_v41 = vor.u32 %v5143_v44, %v5140_v60 }
 0x466   : > { %6718 = vmatmul.mubr.bf16.gmra.mrb[12].mxu0 %v6051_v8  ;;  %v7187_v8 = vld [vmem:[#allocation2 + $0x30] ss:$8 sps:$4 sm:$0xff]  }
 0x467   : > { %6726 = vmatpush3.bf16.msra.mxu0 %v7170_v26  ;;  %6737 = vmatprep.mubr.bf16.mxu0 %v6068_v24  ;;  %v8505_v26 = vld [vmem:[#allocation2 + $0x14] sm:$0x1]  ;;  %v5116_v20 = vor.u32 %v5115_v11, %v5112_v33  ;;  %v7190_v24 = vld [vmem:[#allocation4 + $0x1d0] sm:$0xff]  }
 0x468   : > { %6727 = vmatprep.subr.bf16.mxu0 %v7171_v28  ;;  %v5119_v45 = vshll.u32 %v8505_v26, 16 }
 0x469   : > { %v5117_v10 = vrot.slane %v5116_v20, 4 }
 0x46b   : > { %6728 = vmatpush3.bf16.msra.mxu0 %v7171_v28  ;;  %v5133_v28 = vshll.u32 %v8507_v58, 16 }
 0x46c   : > { %6729 = vmatprep.subr.bf16.mxu0 %v7172_v32 }
 0x46d   : > { %v5135_v62 = vrot.slane %v5133_v28, 5  ;;  %v8527_v28 = vld [vmem:[#allocation2 + $0x4c] sm:$0x1] }
 0x46f   : > { %6730 = vmatpush3.bf16.msra.mxu0 %v7172_v32  ;;  %v5121_v32 = vrot.slane %v5119_v45, 5 }
 0x470   : > { %6731 = vmatprep.subr.bf16.mxu0 %v7173_v34 }
 0x473   : > { %6732 = vmatpush3.bf16.msra.mxu0 %v7173_v34  ;;  %v5131_v34 = vrot.slane %v5130_v6, 4  ;;  %v5189_v6 = vshll.u32 %v8522_v36, 16 }
 0x474   : > { %6733 = vmatprep.subr.bf16.mxu0 %v7174_v48 }
 0x475   : > { %v5191_v12 = vrot.slane %v5189_v6, 5 }
 0x477   : > { %6734 = vmatpush3.bf16.msra.mxu0 %v7174_v48  ;;  %v5122_v48 = vsel %vm7480_vm2, %v5117_v10, %v5121_v32 }
 0x478   : > { %6735 = vmatprep.subr.bf16.mxu0 %v7175_v57 }
 0x47b   : > { %6736 = vmatpush3.bf16.msra.mxu0 %v7175_v57  ;;  %v5136_v57 = vsel %vm7480_vm2, %v5131_v34, %v5135_v62 }
 0x47c   : > { %6745 = vmatprep.subr.bf16.mxu0 %v7176_v21  ;;  %v6092_v17 = vcombine.low %v5122_v48, %v5136_v57  ;;  %v8529_v48 = vld [vmem:[#allocation2 + $0x44] sm:$0x1] }
 0x47d   : > { %v5203_v14 = vshll.u32 %v8529_v48, 16 }
 0x47e   : > { %6738 = vmatmul.mubr.bf16.vlgmr.msra.gmra.mrb[8].mxu0 %v6069_v13 }
 0x47f   : > { %6741 = vmatprep.mubr.bf16.mxu0 %v6070_v43  ;;  %6746 = vmatpush3.bf16.msra.mxu0 %v7176_v21  ;;  %v5103_v21 = vld [vmem:[#allocation2 + $0x38] sm:$0xf]  ;;  %v5168_v43 = vrot.slane %v5166_v30, 4 }
 0x480   : > { %6747 = vmatprep.subr.bf16.mxu0 %v7177_v63  ;;  %v5180_v23 = vshrl.u32 %v5103_v21, 16  ;;  %v5183_v13 = vshll.u32 %v5103_v21, 16  ;;  %v7197_v30 = vld [vmem:[#allocation4 + $0x208] sm:$0xff]  }
 0x481   : > { %v5172_v61 = vor.u32 %v5171_v19, %v5168_v43  ;;  %v5404_v19 = vrot.slane %v8507_v58, 5  ;;  %v7200_v58 = vld [vmem:[#allocation4 + $0x220] sm:$0xff]  }
 0x483   : > { %6748 = vmatpush3.bf16.msra.mxu0 %v7177_v63  ;;  %v5154_v63 = vrot.slane %v5152_v37, 4  ;;  %v5173_v45 = vrot.slane %v5172_v61, 4  ;;  %v5374_v37 = vld [vmem:[#allocation2 + $0x10] sm:$0xe] }
 0x484   : > { %6749 = vmatprep.subr.bf16.mxu0 %v7178_v31 }
 0x486   : > { %6742 = vmatmul.mubr.bf16.gmra.mrb[12].mxu0 %v6071_v47  ;;  %v5182_v47 = vrot.slane %v5180_v23, 4  ;;  %v5375_v23 = vld [vmem:[#allocation2 + $0x18] sm:$0xe] }
 0x487   : > { %6750 = vmatpush3.bf16.msra.mxu0 %v7178_v31  ;;  %6761 = vmatprep.mubr.bf16.mxu0 %v7179_v50  ;;  %v5208_v31 = vshrl.u32 %v5107_v40, 16  ;;  %v5211_v50 = vshll.u32 %v5107_v40, 16  ;;  %v5400_v40 = vrot.slane %v8505_v26, 5  ;;  %v6105_v43 = vrot.slane %v5375_v23, 9 }
 0x488   : > { %6751 = vmatprep.subr.bf16.mxu0 %v7180_v1 }
 0x489   : > { %v5213_v0 = vrot.slane %v5211_v50, 5  ;;  %v5405_v26 = vsel %vm7916_vm8, %v6105_v43, %v5404_v19  ;;  %v5377_v50 = vld [vmem:[#allocation2 + $0x28] sm:$0xe] }
 0x48a   : > { %v6107_v61 = vrot.slane %v5377_v50, 9 }
 0x48b   : > { %6752 = vmatpush3.bf16.msra.mxu0 %v7180_v1  ;;  %v5185_v1 = vrot.slane %v5183_v13, 5  ;;  %v6104_v13 = vrot.slane %v5374_v37, 9 }
 0x48c   : > { %6753 = vmatprep.subr.bf16.mxu0 %v7181_v39 }
 0x48d   : > { %v5186_v11 = vor.u32 %v5185_v1, %v5182_v47  ;;  %v5401_v44 = vsel %vm7916_vm8, %v6104_v13, %v5400_v40  ;;  %v7202_v1 = vld [vmem:[#allocation4 + $0x230] sm:$0xff]  }
 0x48e   : > { %v6112_v47 = vcombine.low %v5401_v44, %v5405_v26 }
 0x48f   : > { %6754 = vmatpush3.bf16.msra.mxu0 %v7181_v39  ;;  %v5158_v39 = vor.u32 %v5157_v56, %v5154_v63  ;;  %v5187_v34 = vrot.slane %v5186_v11, 4  ;;  %v5205_v63 = vrot.slane %v5203_v14, 5  ;;  %v7198_v56 = vld [vmem:[#allocation4 + $0x210] sm:$0xff]  }
 0x490   : > { %6755 = vmatprep.subr.bf16.mxu0 %v7182_v49 }
 0x491   : > { %v5159_v20 = vrot.slane %v5158_v39, 4  ;;  %v5192_v21 = vsel %vm7480_vm2, %v5187_v34, %v5191_v12  ;;  %v5378_v39 = vld [vmem:[#allocation2 + $0x30] sm:$0xe] }
 0x493   : > { %6756 = vmatpush3.bf16.msra.mxu0 %v7182_v49  ;;  %v8517_v49 = vld [vmem:[#allocation2 + $0x34] sm:$0x1] }
 0x494   : > { %6757 = vmatprep.subr.bf16.mxu0 %v7183_v54  ;;  %v5175_v33 = vshll.u32 %v8517_v49, 16 }
 0x496   : > { %v5177_v32 = vrot.slane %v5175_v33, 5  ;;  %v5416_v33 = vrot.slane %v8517_v49, 5 }
 0x497   : > { %6758 = vmatpush3.bf16.msra.mxu0 %v7183_v54  ;;  %v5197_v54 = vshll.u32 %v5105_v2, 16 }
 0x498   : > { %6759 = vmatprep.subr.bf16.mxu0 %v7184_v59  ;;  %v5178_v25 = vsel %vm7480_vm2, %v5173_v45, %v5177_v32 }
 0x499   : > { %v6094_v16 = vcombine.low %v5178_v25, %v5192_v21 }
 0x49b   : > { %6760 = vmatpush3.bf16.msra.mxu0 %v7184_v59  ;;  %v5161_v59 = vshll.u32 %v8515_v9, 16 }
 0x49c   : > { %6769 = vmatprep.subr.bf16.mxu0 %v7186_v35 }
 0x49d   : > { %v5163_v10 = vrot.slane %v5161_v59, 5  ;;  %v5379_v59 = vld [vmem:[#allocation2 + $0x38] sm:$0xe] }
 0x49e   : > { %6762 = vmatmul.mubr.bf16.vlgmr.msra.gmra.mrb[8].mxu0 %v7185_v4  ;;  %v5196_v4 = vrot.slane %v5194_v52, 4  ;;  %v7203_v52 = vld [vmem:[#allocation4 + $0x238] sm:$0xff]  }
 0x49f   : > { %6765 = vmatprep.mubr.bf16.mxu0 %v7187_v8  ;;  %6770 = vmatpush3.bf16.msra.mxu0 %v7186_v35  ;;  %v5210_v35 = vrot.slane %v5208_v31, 4  ;;  %v5145_v8 = vrot.slane %v5144_v41, 4  ;;  %v5164_v57 = vsel %vm7480_vm2, %v5159_v20, %v5163_v10  ;;  %v5412_v41 = vrot.slane %v8515_v9, 5  ;;  %v5380_v9 = vld [vmem:[#allocation2 + $0x40] sm:$0xe] }
 0x4a0   : > { %6771 = vmatprep.subr.bf16.mxu0 %v7188_v5  ;;  %v5424_v10 = vrot.slane %v8529_v48, 5 }
 0x4a1   : > { %v5214_v62 = vor.u32 %v5213_v0, %v5210_v35  ;;  %v5408_v35 = vrot.slane %v8519_v55, 5  ;;  %v6109_v0 = vrot.slane %v5379_v59, 9  ;;  %v5413_v20 = vsel %vm7916_vm8, %v6107_v61, %v5412_v41 }
 0x4a3   : > { %6772 = vmatpush3.bf16.msra.mxu0 %v7188_v5  ;;  %v5199_v5 = vrot.slane %v5197_v54, 5  ;;  %v5215_v42 = vrot.slane %v5214_v62, 4  ;;  %v5376_v54 = vld [vmem:[#allocation2 + $0x20] sm:$0xe] }
 0x4a4   : > { %6773 = vmatprep.subr.bf16.mxu0 %v7190_v24  ;;  %v6106_v11 = vrot.slane %v5376_v54, 9 }
 0x4a6   : > { %6766 = vmatmul.mubr.bf16.gmra.mrb[12].mxu0 %v7189_v27  ;;  %v5149_v27 = vrot.slane %v5147_v3, 5  ;;  %v5420_v3 = vrot.slane %v8522_v36, 5  ;;  %v5409_v49 = vsel %vm7916_vm8, %v6106_v11, %v5408_v35 }
 0x4a7   : > { %6774 = vmatpush3.bf16.msra.mxu0 %v7190_v24  ;;  %6785 = vmatprep.mubr.bf16.mxu0 %v6092_v17  ;;  %v7196_v24 = vld [vmem:[#allocation4 + $0x200] sm:$0xff]   ;;  %v5217_v17 = vshll.u32 %v8527_v28, 16  ;;  %v6113_v45 = vcombine.low %v5409_v49, %v5413_v20 }
 0x4a8   : > { %6775 = vmatprep.subr.bf16.mxu0 %v7191_v53  ;;  %v5421_v55 = vsel %vm7916_vm8, %v6109_v0, %v5420_v3 }
 0x4ab   : > { %6776 = vmatpush3.bf16.msra.mxu0 %v7191_v53  ;;  %v5200_v53 = vor.u32 %v5199_v5, %v5196_v4  ;;  %v5381_v4 = vld [vmem:[#allocation2 + $0x48] sm:$0xe] }
 0x4ac   : > { %6777 = vmatprep.subr.bf16.mxu0 %v7192_v7  ;;  %v6111_v6 = vrot.slane %v5381_v4, 9 }
 0x4ad   : > { %v5201_v38 = vrot.slane %v5200_v53, 4 }
 0x4af   : > { %6778 = vmatpush3.bf16.msra.mxu0 %v7192_v7  ;;  %v5150_v7 = vsel %vm7480_vm2, %v5145_v8, %v5149_v27  ;;  %v5206_v2 = vsel %vm7480_vm2, %v5201_v38, %v5205_v63  ;;  %v6110_v8 = vrot.slane %v5380_v9, 9  ;;  %v6124_v27 = vld [vmem:[%s8649_s8] ss:$0 sm:$0xff] }
 0x4b0   : > { %6779 = vmatprep.subr.bf16.mxu0 %v7193_v15  ;;  %v6093_v18 = vcombine.low %v5150_v7, %v5164_v57 }
 0x4b1   : > { %v5425_v32 = vsel %vm7916_vm8, %v6110_v8, %v5424_v10 }
 0x4b3   : > { %6780 = vmatpush3.bf16.msra.mxu0 %v7193_v15  ;;  %v5219_v15 = vrot.slane %v5217_v17, 5 }
 0x4b4   : > { %6781 = vmatprep.subr.bf16.mxu0 %v7194_v46 }
 0x4b5   : > { %v5220_v60 = vsel %vm7480_vm2, %v5215_v42, %v5219_v15 }
 0x4b6   : > { %v6095_v31 = vcombine.low %v5206_v2, %v5220_v60 }
 0x4b7   : > { %6782 = vmatpush3.bf16.msra.mxu0 %v7194_v46  ;;  %v7199_v46 = vld [vmem:[#allocation4 + $0x218] sm:$0xff]  }
 0x4b8   : > { %6783 = vmatprep.subr.bf16.mxu0 %v7195_v51 }
 0x4bb   : > { %6784 = vmatpush3.bf16.msra.mxu0 %v7195_v51  ;;  %v6108_v51 = vrot.slane %v5378_v39, 9 }
 0x4bc   : > { %6793 = vmatprep.subr.bf16.mxu0 %v7196_v24 }
 0x4bd   : > { %v5417_v5 = vsel %vm7916_vm8, %v6108_v51, %v5416_v33 }
 0x4be   : > { %6786 = vmatmul.mubr.bf16.vlgmr.msra.gmra.mrb[8].mxu0 %v6093_v18  ;;  %v6114_v36 = vcombine.low %v5417_v5, %v5421_v55 }
 0x4bf   : > { %6789 = vmatprep.mubr.bf16.mxu0 %v6094_v16  ;;  %6794 = vmatpush3.bf16.msra.mxu0 %v7196_v24  ;;  %v5428_v24 = vrot.slane %v8527_v28, 5  ;;  %v6125_v28 = vld [vmem:[%s8650_s9] ss:$0 sm:$0xff] }
 0x4c0   : > { %6795 = vmatprep.subr.bf16.mxu0 %v7197_v30 }
 0x4c1   : > { %v5429_v34 = vsel %vm7916_vm8, %v6111_v6, %v5428_v24 }
 0x4c2   : > { %v6115_v62 = vcombine.low %v5425_v32, %v5429_v34 }
 0x4c3   : > { %6796 = vmatpush3.bf16.msra.mxu0 %v7197_v30 }
 0x4c4   : > { %6797 = vmatprep.subr.bf16.mxu0 %v7198_v56 }
 0x4c6   : > { %6790 = vmatmul.mubr.bf16.gmra.mrb[12].mxu0 %v6095_v31 }
 0x4c7   : > { %6798 = vmatpush3.bf16.msra.mxu0 %v7198_v56  ;;  %6809 = vmatprep.mubr.bf16.mxu0 %v6112_v47 }
 0x4c8   : > { %6799 = vmatprep.subr.bf16.mxu0 %v7199_v46 }
 0x4cb   : > { %6800 = vmatpush3.bf16.msra.mxu0 %v7199_v46 }
 0x4cc   : > { %6801 = vmatprep.subr.bf16.mxu0 %v7200_v58 }
 0x4cf   : > { %6802 = vmatpush3.bf16.msra.mxu0 %v7200_v58 }
 0x4d0   : > { %6803 = vmatprep.subr.bf16.mxu0 %v7201_v29 }
 0x4d3   : > { %6804 = vmatpush3.bf16.msra.mxu0 %v7201_v29 }
 0x4d4   : > { %6805 = vmatprep.subr.bf16.mxu0 %v7202_v1 }
 0x4d7   : > { %6806 = vmatpush3.bf16.msra.mxu0 %v7202_v1 }
 0x4d8   : > { %6807 = vmatprep.subr.bf16.mxu0 %v7203_v52 }
 0x4db   : > { %6808 = vmatpush3.bf16.msra.mxu0 %v7203_v52 }
 0x4de   : > { %6810 = vmatmul.mubr.bf16.vlgmr.msra.gmra.mrb[8].mxu0 %v6113_v45 }
 0x4df   : > { %6813 = vmatprep.mubr.bf16.mxu0 %v6114_v36 }
 0x4e6   : > { %6814 = vmatmul.mubr.bf16.gmra.mrb[12].mxu0 %v6115_v62 }
 0x5b1   : > { %v6811_v57 = vpop.f32.mrb[8].mxu0 }
 0x5b2   : > { %v5592_v48 = vmul.f32 %v6811_v57, %v6124_v27  ;;  %v5544_v53 = vpop.f32.mrb[9].mxu0 }
 0x5b3   : > { %v5590_v17 = vmul.f32 %v6124_v27, %v5544_v53  ;;  %v6812_v25 = vpop.f32.mrb[10].mxu0 }
 0x5b4   : > { %v5607_v22 = vadd.f32 %v6125_v28, %v5592_v48  ;;  %v5593_v12 = vmul.f32 %v6812_v25, %v6124_v27  ;;  %v5547_v7 = vpop.f32.mrb[11].mxu0 }
 0x5b5   : > { %v5605_v14 = vadd.f32 %v6125_v28, %v5590_v17  ;;  %v5591_v37 = vmul.f32 %v6124_v27, %v5547_v7 }
 0x5b6   : > { %v5615_v18 = vmax.f32 %v5607_v22, 0.0  ;;  %v5608_v21 = vadd.f32 %v6125_v28, %v5593_v12 }
 0x5b7   : > { %v5613_v30 = vmax.f32 %v5605_v14, 0.0  ;;  %v5606_v16 = vadd.f32 %v6125_v28, %v5591_v37 }
 0x5b8   : > { %5623 = vst [vmem:[%s8578_s25 + $0x10] sm:$0xff] %v5615_v18  ;;  %v5616_v38 = vmax.f32 %v5608_v21, 0.0 }
 0x5b9   : > { %5621 = vst [vmem:[%s8578_s25] sm:$0xff] %v5613_v30  ;;  %v5614_v42 = vmax.f32 %v5606_v16, 0.0  ;;  %v6815_v15 = vpop.f32.mrb[12].mxu0 }
 0x5ba   : > { %5624 = vst [vmem:[%s8578_s25 + $0x18] sm:$0xff] %v5616_v38  ;;  %v5596_v23 = vmul.f32 %v6815_v15, %v6124_v27  ;;  %v5560_v13 = vpop.f32.mrb[13].mxu0 }
 0x5bb   : > { %5622 = vst [vmem:[%s8578_s25 + $0x8] sm:$0xff] %v5614_v42  ;;  %v5594_v40 = vmul.f32 %v6124_v27, %v5560_v13  ;;  %v6816_v63 = vpop.f32.mrb[14].mxu0 }
 0x5bc   : > { %v5611_v56 = vadd.f32 %v6125_v28, %v5596_v23  ;;  %v5597_v43 = vmul.f32 %v6816_v63, %v6124_v27  ;;  %v5563_v19 = vpop.f32.mrb[15].mxu0 }
 0x5bd   : > { %v5609_v2 = vadd.f32 %v6125_v28, %v5594_v40  ;;  %v5595_v60 = vmul.f32 %v6124_v27, %v5563_v19 }
 0x5be   : > { %v5619_v44 = vmax.f32 %v5611_v56, 0.0  ;;  %v5612_v31 = vadd.f32 %v6125_v28, %v5597_v43 }
 0x5bf   : > { %v5617_v26 = vmax.f32 %v5609_v2, 0.0  ;;  %v5610_v46 = vadd.f32 %v6125_v28, %v5595_v60 }
 0x5c0   : > { %5627 = vst [vmem:[%s8578_s25 + $0x30] sm:$0xff] %v5619_v44  ;;  %v5620_v47 = vmax.f32 %v5612_v31, 0.0 }
 0x5c1   : > { %5625 = vst [vmem:[%s8578_s25 + $0x20] sm:$0xff] %v5617_v26  ;;  %v5618_v58 = vmax.f32 %v5610_v46, 0.0 }
 0x5c2   : > { %5628 = vst [vmem:[%s8578_s25 + $0x38] sm:$0xff] %v5620_v47 }
 0x5c3   : > { %5626 = vst [vmem:[%s8578_s25 + $0x28] sm:$0xff] %v5618_v58 }
 0x5c4   : > { %7245 = shalt.err (!%p7242_p7)
}
 0x5c5   : > { %s7246_s11 = scalar_lea.hbm %s8593_s21, 1024  ;;  %s7250_s29 = scalar_lea.hbm %s8651_s10, 2048 }
 0x5c6   : > { %p7247_p8 = scmp.ne.s32.totalorder %s8593_s21, %s7246_s11  ;;  %p7251_p1 = scmp.lt.u32.totalorder %s8593_s21, %s8651_s10 }
 0x5c7   : > { %p7252_p0 = scmp.lt.u32.totalorder %s7250_s29, %s7246_s11  ;;  %p7254_p6 = scmp.lt.u32.totalorder %s7246_s11, %s8593_s21 }
 0x5c8   : > { %p7248_p11 = pnand %p7247_p8, %p8673_p9 }
 0x5c9   : > { %p7253_p5 = por %p7252_p0, %p7251_p1 }
 0x5ca   : > { %p7249_p13 = pneg %p7248_p11 }
 0x5cb   : > { %p7255_p10 = por %p7254_p6, %p7253_p5 }
 0x5cd   : > { %p7256_p12 = pnand %p7255_p10, %p7249_p13 }
 0x5cf   : > { %7259 = shalt.err (!%p7256_p12)
}
 0x5d0   : > { %s7313_s30 = smov 128   ;;  %s8674_s28 = smov 8  }
 0x5d1   : > { %6951 = dma.vmem_to_hbm [thread:$0]  (%p8673_p9), %s8586_s27, 1024, %s8593_s21, %s8599_s17, %s7313_s30, %s7313_s30, %s8674_s28  }
 0x5d2 PF: > { %p6963_p2 = scmp.ge.s32.totalorder %s7298_s16, 2  ;;  %s5658_s18 = sand.u32 1, %s7286_s13  }
 0x5d3   : > { %p8675_p3 = scmp.ne.s32.totalorder %s8657_s24, 0  ;;  %s5659_s11 = scalar_lea.sflag [#allocation6], %s5658_s18 }
 0x5d5   : > { %p6958_p4 = pnand %p6963_p2, %p8675_p3 }
 0x5d7   : > { %7281 = dma.done.wait (!%p6958_p4), %s5659_s11, 1024  }
 0x5d8   : > { %7283 = vsyncadd (!%p6958_p4), %s5659_s11, 4294966272  ;;  %p21_p7 = scmp.ge.s32.totalorder %s7394_s19, 4   ;;  %s8676_s13 = smov %s7290_s14 }
 0x5d9   : > { %s8677_s14 = smov %s7294_s15  ;;  %s8678_s15 = smov %s7405_s22 }
 0x5da   : > { %s8679_s16 = smov %s7394_s19  ;;  %23 = sbr.rel (!%p21_p7) target bundleno = 4 (0x4), region = 108 }
 0x5e1   :  { %5664 = vsyncpa [#allocation5], 1 }
 0x5e2   :  { %5666 = vsyncpa [#allocation5 + $0x1], 1 }
 0x5e3   :  { %5667 = vsyncpa [#allocation6], 1 }
 0x5e4   :  { %5669 = vsyncpa [#allocation6 + $0x1], 1 }

</bundles_post_ra>
